<compile_context>
chip_gen: v7x
topology: tpu7x:2x2x1
jax: 0.10.0
libtpu: 0.0.40
codegen_flags: <defaults>
</compile_context>

<pallas_src>
import numpy as np
import jax
import jax.numpy as jnp
from jax import lax
from jax.experimental import pallas as pl
from jax.experimental.pallas import tpu as pltpu

# Matmul operand dtype (accumulation is always f32 via preferred_element_type).
# bf16 = full-rate MXU on v6e/v7x; set to jnp.float32 for a 2e-2-tight numeric check.
MM_DTYPE = jnp.bfloat16


def _rup8(x):
    return ((x + 7) // 8) * 8


# ----------------------------------------------------------------------------
# Fused UBlock kernel (spatial-minor layout, shift-buffer taps)
# ----------------------------------------------------------------------------

def _make_ublock_kernel(H, W, c_in, hidden, inner_out):
    n = H * W
    up_c = inner_out // 2
    cat_c = up_c + hidden
    CMAX = max(_rup8(c_in), hidden, inner_out, cat_c)
    PAD = 2 * W + 2                 # largest |lane shift| used by any tap (stride-2 conv)
    P = 128                         # lane offset of the activation window (tile-aligned stores)
    assert PAD <= P
    SBL = P + n + 128               # one 128-lane zero halo tile on each side of the window
    taps = [(kh, kw) for kh in range(3) for kw in range(3)]

    def kernel(x_ref, w1, w2, w3, w4, w5, b1, b2, b3, b4, b5, wt, bt, o_ref, sb):
        # Zero only the two halo tiles.  Re-done every grid step so each TensorCore of a
        # megacore-split "parallel" batch axis sees zeroed halos.  The activation window
        # [P, P+n) is always fully overwritten before each read.
        sb[:, 0:P] = jnp.zeros((CMAX, P), jnp.float32)
        sb[:, P + n:SBL] = jnp.zeros((CMAX, SBL - P - n), jnp.float32)

        pidx = lax.broadcasted_iota(jnp.int32, (1, n), 1)
        col = jnp.bitwise_and(pidx, W - 1)                 # w coordinate (W is a power of 2)
        anchor = jnp.bitwise_and(pidx, W | 1) == 0         # even row AND even column

        def conv3x3(w_ref, b_ref, stride):
            """3x3 'same' conv (+ folded-BN shift + ReLU) on the activation currently in
            sb[:, P:P+n].  Each tap is a static lane-offset slice of the zero-haloed
            buffer (row overflow -> zero halo; column wrap -> iota mask), feeding one
            accumulating (Cout, Cin) @ (Cin, H*W) MXU dot."""
            cout, cin_p = w_ref.shape[1], w_ref.shape[2]
            acc = jnp.zeros((cout, n), jnp.float32)
            for t, (kh, kw) in enumerate(taps):
                d = stride * ((kh - 1) * W + (kw - 1))
                tap = sb[0:cin_p, P + d:P + d + n]
                if kw == 0:
                    tap = jnp.where(col >= stride, tap, 0.0)
                elif kw == 2:
                    tap = jnp.where(col <= W - 2 * stride, tap, 0.0)
                acc = acc + jnp.dot(w_ref[t], tap.astype(w_ref.dtype),
                                    preferred_element_type=jnp.float32)
            return jnp.maximum(acc + b_ref[...], 0.0)

        # ------------------ encoder: in_conv = ConvBlock x2 ------------------
        sb[0:c_in, P:P + n] = x_ref[0]
        cin1p = w1.shape[2]
        if cin1p > c_in:                                   # zero the padded input channels
            sb[c_in:cin1p, P:P + n] = jnp.zeros((cin1p - c_in, n), jnp.float32)
        y1 = conv3x3(w1, b1, 1)                            # (hidden, n)
        sb[0:hidden, P:P + n] = y1
        x_skip = conv3x3(w2, b2, 1)                        # (hidden, n)

        # ------------------ MaxPool2d(2), embedded on the full grid ----------
        sb[0:hidden, P:P + n] = x_skip
        pooled = jnp.maximum(
            jnp.maximum(sb[0:hidden, P:P + n], sb[0:hidden, P + 1:P + 1 + n]),
            jnp.maximum(sb[0:hidden, P + W:P + W + n],
                        sb[0:hidden, P + W + 1:P + W + 1 + n]))
        # `pooled` is only meaningful at anchor lanes (even row, even col).

        # ------------------ inner ConvBlock on the pooled grid (stride-2 taps)
        sb[0:hidden, P:P + n] = pooled
        z = conv3x3(w3, b3, 2)                             # (inner_out, n), valid at anchors

        # ------------------ ConvTranspose2d(k=2, s=2): inner_out -> up_c -----
        z = jnp.where(anchor, z, 0.0)                      # kill garbage at non-anchor lanes
        sb[0:inner_out, P:P + n] = z
        up = jnp.zeros((up_c, n), jnp.float32)
        for k, (dh, dw) in enumerate(((0, 0), (0, 1), (1, 0), (1, 1))):
            off = P - (dh * W + dw)
            tap = sb[0:inner_out, off:off + n]
            up = up + jnp.dot(wt[k], tap.astype(wt.dtype),
                              preferred_element_type=jnp.float32)
        up = up + bt[...]

        # ------------------ decoder: cat([up, x_skip]) + out_conv = ConvBlock x2
        sb[0:up_c, P:P + n] = up
        sb[up_c:cat_c, P:P + n] = x_skip
        y4 = conv3x3(w4, b4, 1)                            # (hidden, n)
        sb[0:hidden, P:P + n] = y4
        o_ref[0] = conv3x3(w5, b5, 1)                      # (c_in, n), lane-dense store

    return kernel, (CMAX, SBL)


# ----------------------------------------------------------------------------
# Wrapper: BN folded into weights, tap-major weight layout, single pallas_call
# ----------------------------------------------------------------------------

def _fold_conv_block(w, scale, shift):
    """Fold eval-mode BN into the conv weight; relayout to tap-major (9, Cout, Cin_pad)."""
    cout, cin = int(w.shape[0]), int(w.shape[1])
    cin_p = max(8, _rup8(cin))
    wm = jnp.transpose(w, (2, 3, 0, 1)).reshape(9, cout, cin) * scale[None, :, None]
    if cin_p != cin:
        wm = jnp.pad(wm, ((0, 0), (0, 0), (0, cin_p - cin)))
    return wm.astype(MM_DTYPE), shift.reshape(cout, 1).astype(jnp.float32)


def ublock_forward(x_nchw, params):
    B, c_in, H, W = x_nchw.shape
    hidden = int(params["in_conv"][0][0].shape[0])
    inner_out = int(params["inner"][-1][0].shape[0])
    up_c = inner_out // 2
    n = H * W

    # Shape assumptions of this kernel (all hold for the test configuration).
    assert W & (W - 1) == 0 and H % 2 == 0 and W % 2 == 0 and n % 128 == 0
    assert hidden % 8 == 0 and up_c % 8 == 0 and inner_out % 8 == 0

    x = x_nchw.reshape(B, c_in, n).astype(jnp.float32)           # flattened NCHW: lane-dense

    convs = params["in_conv"] + params["inner"] + params["out_conv"]
    (w1, b1), (w2, b2), (w3, b3), (w4, b4), (w5, b5) = [_fold_conv_block(*c) for c in convs]

    # ConvTranspose2d weight (in, out, 2, 2) -> (4, up_c, inner_out), tap k = dh*2 + dw.
    wt = jnp.transpose(params["up_w"], (2, 3, 1, 0)).reshape(4, up_c, inner_out).astype(MM_DTYPE)
    bt = params["up_b"].reshape(up_c, 1).astype(jnp.float32)

    kernel, (CMAX, SBL) = _make_ublock_kernel(H, W, c_in, hidden, inner_out)

    c3 = lambda b: (0, 0, 0)
    c2 = lambda b: (0, 0)

    out = pl.pallas_call(
        kernel,
        out_shape=jax.ShapeDtypeStruct((B, c_in, n), jnp.float32),
        grid=(B,),
        in_specs=[
            pl.BlockSpec((1, c_in, n), lambda b: (b, 0, 0)),
            pl.BlockSpec(w1.shape, c3), pl.BlockSpec(w2.shape, c3),
            pl.BlockSpec(w3.shape, c3), pl.BlockSpec(w4.shape, c3),
            pl.BlockSpec(w5.shape, c3),
            pl.BlockSpec(b1.shape, c2), pl.BlockSpec(b2.shape, c2),
            pl.BlockSpec(b3.shape, c2), pl.BlockSpec(b4.shape, c2),
            pl.BlockSpec(b5.shape, c2),
            pl.BlockSpec(wt.shape, c3), pl.BlockSpec(bt.shape, c2),
        ],
        out_specs=pl.BlockSpec((1, c_in, n), lambda b: (b, 0, 0)),
        scratch_shapes=[pltpu.VMEM((CMAX, SBL), jnp.float32)],    # single shift/halo buffer
        compiler_params=pltpu.CompilerParams(
            dimension_semantics=("parallel",)),                   # v7x: one image per TensorCore
    )(x, w1, w2, w3, w4, w5, b1, b2, b3, b4, b5, wt, bt)

    return out.reshape(B, c_in, H, W)


# ----------------------------------------------------------------------------
# Pure-JAX NCHW reference (correctness check)
# ----------------------------------------------------------------------------

def _ref_conv_block(x, w, scale, shift):
    y = lax.conv_general_dilated(x, w, (1, 1), "SAME",
                                 dimension_numbers=("NCHW", "OIHW", "NCHW"),
                                 precision=lax.Precision.HIGHEST)
    y = y * scale[None, :, None, None] + shift[None, :, None, None]
    return jnp.maximum(y, 0.0)


def _ref_maxpool(x):
    return lax.reduce_window(x, -jnp.inf, lax.max, (1, 1, 2, 2), (1, 1, 2, 2), "VALID")


def _ref_convtr(x, wt, b):
    Bn, Cin, H, W = x.shape
    Cout = wt.shape[1]
    y = jnp.einsum("bcij,cokl->boikjl", x, wt, precision=lax.Precision.HIGHEST)
    y = y.reshape(Bn, Cout, 2 * H, 2 * W)
    return y + b[None, :, None, None]


def ref_forward(x, params):
    h = x
    for (w, s, b) in params["in_conv"]:
        h = _ref_conv_block(h, w, s, b)
    x_skip = h
    z = _ref_maxpool(x_skip)
    for (w, s, b) in params["inner"]:
        z = _ref_conv_block(z, w, s, b)
    up = _ref_convtr(z, params["up_w"], params["up_b"])
    cat = jnp.concatenate([up, x_skip], axis=1)
    o = cat
    for (w, s, b) in params["out_conv"]:
        o = _ref_conv_block(o, w, s, b)
    return o


# ----------------------------------------------------------------------------
# Deterministic parameters (ConvBlock = conv3x3(no bias) + BN(eval) + ReLU)
# ----------------------------------------------------------------------------

def make_conv_block(key, cin, cout):
    w = jax.random.normal(key, (cout, cin, 3, 3), jnp.float32) * (2.0 / (cin * 9)) ** 0.5
    eps = 1e-5
    gamma = jnp.ones((cout,), jnp.float32)
    beta = jnp.zeros((cout,), jnp.float32)
    rmean = jnp.zeros((cout,), jnp.float32)
    rvar = jnp.ones((cout,), jnp.float32)
    scale = gamma / jnp.sqrt(rvar + eps)
    shift = beta - rmean * scale
    return (w, scale, shift)


if __name__ == "__main__":
    key = jax.random.PRNGKey(0)
    B, C_IN, H, W = 2, 4, 16, 16
    HIDDEN = 8
    INNER_OUT = 2 * HIDDEN          # inner = ConvBlock(HIDDEN, 2*HIDDEN, 3)

    keys = jax.random.split(key, 8)
    x = jax.random.normal(keys[0], (B, C_IN, H, W), jnp.float32)

    params = {
        "in_conv": [make_conv_block(keys[1], C_IN, HIDDEN),
                    make_conv_block(keys[2], HIDDEN, HIDDEN)],
        "inner":   [make_conv_block(keys[3], HIDDEN, INNER_OUT)],
        # ConvTranspose2d(inner.out_channels, inner.out_channels // 2, k=2, s=2)
        "up_w": jax.random.normal(keys[4], (INNER_OUT, INNER_OUT // 2, 2, 2),
                                  jnp.float32) * (1.0 / (INNER_OUT * 4)) ** 0.5,
        "up_b": jax.random.normal(keys[5], (INNER_OUT // 2,), jnp.float32) * 0.1,
        "out_conv": [make_conv_block(keys[6], INNER_OUT // 2 + HIDDEN, HIDDEN),
                     make_conv_block(keys[7], HIDDEN, C_IN)],
    }

    fwd = jax.jit(ublock_forward)
    out = jax.block_until_ready(fwd(x, params))
    ref = jax.block_until_ready(ref_forward(x, params))

    assert out.shape == (B, C_IN, H, W), out.shape
    # bf16 MXU operands (per perf review) accumulate rounding error through 6 stacked
    # matmul stages vs. the exact f32 HIGHEST reference; the algorithm itself is exact.
    # Flip MM_DTYPE to jnp.float32 for a 2e-2-tight check.
    tol = 2e-2 if MM_DTYPE == jnp.float32 else 5e-2
    np.testing.assert_allclose(np.asarray(out), np.asarray(ref), atol=tol, rtol=tol)
    print("KERNEL_OK")
</pallas_src>

<mosaic_0001>
module attributes {stable_mosaic.version = 11 : i64} {
  func.func @kernel(%arg0: i32, %arg1: memref<1x4x256xf32, #tpu.memory_space<vmem>>, %arg2: memref<9x8x8xbf16, #tpu.memory_space<vmem>>, %arg3: memref<9x8x8xbf16, #tpu.memory_space<vmem>>, %arg4: memref<9x16x8xbf16, #tpu.memory_space<vmem>>, %arg5: memref<9x8x16xbf16, #tpu.memory_space<vmem>>, %arg6: memref<9x4x8xbf16, #tpu.memory_space<vmem>>, %arg7: memref<8x1xf32, #tpu.memory_space<vmem>>, %arg8: memref<8x1xf32, #tpu.memory_space<vmem>>, %arg9: memref<16x1xf32, #tpu.memory_space<vmem>>, %arg10: memref<8x1xf32, #tpu.memory_space<vmem>>, %arg11: memref<4x1xf32, #tpu.memory_space<vmem>>, %arg12: memref<4x8x16xbf16, #tpu.memory_space<vmem>>, %arg13: memref<8x1xf32, #tpu.memory_space<vmem>>, %arg14: memref<1x4x256xf32, #tpu.memory_space<vmem>>, %arg15: memref<16x512xf32, #tpu.memory_space<vmem>>) attributes {dimension_semantics = [#tpu.dimension_semantics<parallel>], iteration_bounds = array<i64: 2>, scalar_prefetch = 0 : i64, scratch_operands = 1 : i64, tpu.core_type = #tpu.core_type<tc>, window_params = [{transform_indices = @transform_0, window_bounds = array<i64: 1, 4, 256>}, {pipeline_mode = #tpu.pipeline_mode<synchronous>, transform_indices = @transform_1, window_bounds = array<i64: 9, 8, 8>}, {pipeline_mode = #tpu.pipeline_mode<synchronous>, transform_indices = @transform_2, window_bounds = array<i64: 9, 8, 8>}, {pipeline_mode = #tpu.pipeline_mode<synchronous>, transform_indices = @transform_3, window_bounds = array<i64: 9, 16, 8>}, {pipeline_mode = #tpu.pipeline_mode<synchronous>, transform_indices = @transform_4, window_bounds = array<i64: 9, 8, 16>}, {pipeline_mode = #tpu.pipeline_mode<synchronous>, transform_indices = @transform_5, window_bounds = array<i64: 9, 4, 8>}, {pipeline_mode = #tpu.pipeline_mode<synchronous>, transform_indices = @transform_6, window_bounds = array<i64: 8, 1>}, {pipeline_mode = #tpu.pipeline_mode<synchronous>, transform_indices = @transform_7, window_bounds = array<i64: 8, 1>}, {pipeline_mode = #tpu.pipeline_mode<synchronous>, transform_indices = @transform_8, window_bounds = array<i64: 16, 1>}, {pipeline_mode = #tpu.pipeline_mode<synchronous>, transform_indices = @transform_9, window_bounds = array<i64: 8, 1>}, {pipeline_mode = #tpu.pipeline_mode<synchronous>, transform_indices = @transform_10, window_bounds = array<i64: 4, 1>}, {pipeline_mode = #tpu.pipeline_mode<synchronous>, transform_indices = @transform_11, window_bounds = array<i64: 4, 8, 16>}, {pipeline_mode = #tpu.pipeline_mode<synchronous>, transform_indices = @transform_12, window_bounds = array<i64: 8, 1>}, {transform_indices = @transform_13, window_bounds = array<i64: 1, 4, 256>}]} {
    %cst = arith.constant 0.000000e+00 : f32
    %0 = vector.broadcast %cst : f32 to vector<16x128xf32>
    %c0 = arith.constant 0 : index
    %c0_0 = arith.constant 0 : index
    %1 = vector.load %arg15[%c0, %c0_0] : memref<16x512xf32, #tpu.memory_space<vmem>>, vector<16x128xf32>
    tpu.vector_store %arg15[%c0, %c0_0], %0 {strides = array<i32>} : memref<16x512xf32, #tpu.memory_space<vmem>>, vector<16x128xf32>,
    %cst_1 = arith.constant 0.000000e+00 : f32
    %2 = vector.broadcast %cst_1 : f32 to vector<16x128xf32>
    %c0_2 = arith.constant 0 : index
    %c384 = arith.constant 384 : index
    %3 = vector.load %arg15[%c0_2, %c384] : memref<16x512xf32, #tpu.memory_space<vmem>>, vector<16x128xf32>
    tpu.vector_store %arg15[%c0_2, %c384], %2 {strides = array<i32>} : memref<16x512xf32, #tpu.memory_space<vmem>>, vector<16x128xf32>,
    %4 = tpu.iota {dimensions = array<i32: 1>} : vector<1x256xi32>
    %c15_i32 = arith.constant 15 : i32
    %5 = vector.broadcast %c15_i32 : i32 to vector<1x256xi32>
    %6 = arith.andi %4, %5 : vector<1x256xi32>
    %c17_i32 = arith.constant 17 : i32
    %7 = vector.broadcast %c17_i32 : i32 to vector<1x256xi32>
    %8 = arith.andi %4, %7 : vector<1x256xi32>
    %c0_i32 = arith.constant 0 : i32
    %9 = vector.broadcast %c0_i32 : i32 to vector<1x256xi32>
    %10 = arith.cmpi eq, %8, %9 : vector<1x256xi32>
    %c0_3 = arith.constant 0 : index
    %c0_4 = arith.constant 0 : index
    %c0_5 = arith.constant 0 : index
    %11 = vector.load %arg1[%c0_3, %c0_4, %c0_5] : memref<1x4x256xf32, #tpu.memory_space<vmem>>, vector<1x4x256xf32>
    %12 = vector.shape_cast %11 : vector<1x4x256xf32> to vector<4x256xf32>
    %c0_6 = arith.constant 0 : index
    %c128 = arith.constant 128 : index
    %13 = vector.load %arg15[%c0_6, %c128] : memref<16x512xf32, #tpu.memory_space<vmem>>, vector<4x256xf32>
    tpu.vector_store %arg15[%c0_6, %c128], %12 {strides = array<i32>} : memref<16x512xf32, #tpu.memory_space<vmem>>, vector<4x256xf32>,
    %cst_7 = arith.constant 0.000000e+00 : f32
    %14 = vector.broadcast %cst_7 : f32 to vector<4x256xf32>
    %c4 = arith.constant 4 : index
    %c128_8 = arith.constant 128 : index
    %15 = vector.load %arg15[%c4, %c128_8] : memref<16x512xf32, #tpu.memory_space<vmem>>, vector<4x256xf32>
    tpu.vector_store %arg15[%c4, %c128_8], %14 {strides = array<i32>} : memref<16x512xf32, #tpu.memory_space<vmem>>, vector<4x256xf32>,
    %cst_9 = arith.constant 0.000000e+00 : f32
    %16 = vector.broadcast %cst_9 : f32 to vector<8x256xf32>
    %c0_10 = arith.constant 0 : index
    %c111 = arith.constant 111 : index
    %17 = vector.load %arg15[%c0_10, %c111] : memref<16x512xf32, #tpu.memory_space<vmem>>, vector<8x256xf32>
    %c1_i32 = arith.constant 1 : i32
    %18 = vector.broadcast %c1_i32 : i32 to vector<1x256xi32>
    %19 = arith.cmpi sge, %6, %18 : vector<1x256xi32>
    %cst_11 = arith.constant 0.000000e+00 : f32
    %20 = vector.shape_cast %19 : vector<1x256xi1> to vector<1x256xi1>
    %21 = vector.broadcast %20 : vector<1x256xi1> to vector<8x256xi1>
    %22 = vector.broadcast %cst_11 : f32 to vector<8x256xf32>
    %23 = arith.select %21, %17, %22 : vector<8x256xi1>, vector<8x256xf32>
    %c0_12 = arith.constant 0 : index
    %c0_13 = arith.constant 0 : index
    %c0_14 = arith.constant 0 : index
    %24 = vector.load %arg2[%c0_12, %c0_13, %c0_14] : memref<9x8x8xbf16, #tpu.memory_space<vmem>>, vector<1x8x8xbf16>
    %25 = vector.shape_cast %24 : vector<1x8x8xbf16> to vector<8x8xbf16>
    %26 = arith.truncf %23 : vector<8x256xf32> to vector<8x256xbf16>
    %cst_15 = arith.constant dense<0.000000e+00> : vector<8x256xf32>
    %27 = tpu.matmul %25, %26, %cst_15 {dimension_numbers = #tpu.dot_dimension_numbers<[1], [0], [0], [1], [0, 0, 1, 1], [], []>} : vector<8x8xbf16>, vector<8x256xbf16>, vector<8x256xf32> -> vector<8x256xf32>
    %28 = arith.addf %16, %27 : vector<8x256xf32>
    %c0_16 = arith.constant 0 : index
    %c112 = arith.constant 112 : index
    %29 = vector.load %arg15[%c0_16, %c112] : memref<16x512xf32, #tpu.memory_space<vmem>>, vector<8x256xf32>
    %c1 = arith.constant 1 : index
    %c0_17 = arith.constant 0 : index
    %c0_18 = arith.constant 0 : index
    %30 = vector.load %arg2[%c1, %c0_17, %c0_18] : memref<9x8x8xbf16, #tpu.memory_space<vmem>>, vector<1x8x8xbf16>
    %31 = vector.shape_cast %30 : vector<1x8x8xbf16> to vector<8x8xbf16>
    %32 = arith.truncf %29 : vector<8x256xf32> to vector<8x256xbf16>
    %cst_19 = arith.constant dense<0.000000e+00> : vector<8x256xf32>
    %33 = tpu.matmul %31, %32, %cst_19 {dimension_numbers = #tpu.dot_dimension_numbers<[1], [0], [0], [1], [0, 0, 1, 1], [], []>} : vector<8x8xbf16>, vector<8x256xbf16>, vector<8x256xf32> -> vector<8x256xf32>
    %34 = arith.addf %28, %33 : vector<8x256xf32>
    %c0_20 = arith.constant 0 : index
    %c113 = arith.constant 113 : index
    %35 = vector.load %arg15[%c0_20, %c113] : memref<16x512xf32, #tpu.memory_space<vmem>>, vector<8x256xf32>
    %c14_i32 = arith.constant 14 : i32
    %36 = vector.broadcast %c14_i32 : i32 to vector<1x256xi32>
    %37 = arith.cmpi sle, %6, %36 : vector<1x256xi32>
    %cst_21 = arith.constant 0.000000e+00 : f32
    %38 = vector.shape_cast %37 : vector<1x256xi1> to vector<1x256xi1>
    %39 = vector.broadcast %38 : vector<1x256xi1> to vector<8x256xi1>
    %40 = vector.broadcast %cst_21 : f32 to vector<8x256xf32>
    %41 = arith.select %39, %35, %40 : vector<8x256xi1>, vector<8x256xf32>
    %c2 = arith.constant 2 : index
    %c0_22 = arith.constant 0 : index
    %c0_23 = arith.constant 0 : index
    %42 = vector.load %arg2[%c2, %c0_22, %c0_23] : memref<9x8x8xbf16, #tpu.memory_space<vmem>>, vector<1x8x8xbf16>
    %43 = vector.shape_cast %42 : vector<1x8x8xbf16> to vector<8x8xbf16>
    %44 = arith.truncf %41 : vector<8x256xf32> to vector<8x256xbf16>
    %cst_24 = arith.constant dense<0.000000e+00> : vector<8x256xf32>
    %45 = tpu.matmul %43, %44, %cst_24 {dimension_numbers = #tpu.dot_dimension_numbers<[1], [0], [0], [1], [0, 0, 1, 1], [], []>} : vector<8x8xbf16>, vector<8x256xbf16>, vector<8x256xf32> -> vector<8x256xf32>
    %46 = arith.addf %34, %45 : vector<8x256xf32>
    %c0_25 = arith.constant 0 : index
    %c127 = arith.constant 127 : index
    %47 = vector.load %arg15[%c0_25, %c127] : memref<16x512xf32, #tpu.memory_space<vmem>>, vector<8x256xf32>
    %c1_i32_26 = arith.constant 1 : i32
    %48 = vector.broadcast %c1_i32_26 : i32 to vector<1x256xi32>
    %49 = arith.cmpi sge, %6, %48 : vector<1x256xi32>
    %cst_27 = arith.constant 0.000000e+00 : f32
    %50 = vector.shape_cast %49 : vector<1x256xi1> to vector<1x256xi1>
    %51 = vector.broadcast %50 : vector<1x256xi1> to vector<8x256xi1>
    %52 = vector.broadcast %cst_27 : f32 to vector<8x256xf32>
    %53 = arith.select %51, %47, %52 : vector<8x256xi1>, vector<8x256xf32>
    %c3 = arith.constant 3 : index
    %c0_28 = arith.constant 0 : index
    %c0_29 = arith.constant 0 : index
    %54 = vector.load %arg2[%c3, %c0_28, %c0_29] : memref<9x8x8xbf16, #tpu.memory_space<vmem>>, vector<1x8x8xbf16>
    %55 = vector.shape_cast %54 : vector<1x8x8xbf16> to vector<8x8xbf16>
    %56 = arith.truncf %53 : vector<8x256xf32> to vector<8x256xbf16>
    %cst_30 = arith.constant dense<0.000000e+00> : vector<8x256xf32>
    %57 = tpu.matmul %55, %56, %cst_30 {dimension_numbers = #tpu.dot_dimension_numbers<[1], [0], [0], [1], [0, 0, 1, 1], [], []>} : vector<8x8xbf16>, vector<8x256xbf16>, vector<8x256xf32> -> vector<8x256xf32>
    %58 = arith.addf %46, %57 : vector<8x256xf32>
    %c0_31 = arith.constant 0 : index
    %c128_32 = arith.constant 128 : index
    %59 = vector.load %arg15[%c0_31, %c128_32] : memref<16x512xf32, #tpu.memory_space<vmem>>, vector<8x256xf32>
    %c4_33 = arith.constant 4 : index
    %c0_34 = arith.constant 0 : index
    %c0_35 = arith.constant 0 : index
    %60 = vector.load %arg2[%c4_33, %c0_34, %c0_35] : memref<9x8x8xbf16, #tpu.memory_space<vmem>>, vector<1x8x8xbf16>
    %61 = vector.shape_cast %60 : vector<1x8x8xbf16> to vector<8x8xbf16>
    %62 = arith.truncf %59 : vector<8x256xf32> to vector<8x256xbf16>
    %cst_36 = arith.constant dense<0.000000e+00> : vector<8x256xf32>
    %63 = tpu.matmul %61, %62, %cst_36 {dimension_numbers = #tpu.dot_dimension_numbers<[1], [0], [0], [1], [0, 0, 1, 1], [], []>} : vector<8x8xbf16>, vector<8x256xbf16>, vector<8x256xf32> -> vector<8x256xf32>
    %64 = arith.addf %58, %63 : vector<8x256xf32>
    %c0_37 = arith.constant 0 : index
    %c129 = arith.constant 129 : index
    %65 = vector.load %arg15[%c0_37, %c129] : memref<16x512xf32, #tpu.memory_space<vmem>>, vector<8x256xf32>
    %c14_i32_38 = arith.constant 14 : i32
    %66 = vector.broadcast %c14_i32_38 : i32 to vector<1x256xi32>
    %67 = arith.cmpi sle, %6, %66 : vector<1x256xi32>
    %cst_39 = arith.constant 0.000000e+00 : f32
    %68 = vector.shape_cast %67 : vector<1x256xi1> to vector<1x256xi1>
    %69 = vector.broadcast %68 : vector<1x256xi1> to vector<8x256xi1>
    %70 = vector.broadcast %cst_39 : f32 to vector<8x256xf32>
    %71 = arith.select %69, %65, %70 : vector<8x256xi1>, vector<8x256xf32>
    %c5 = arith.constant 5 : index
    %c0_40 = arith.constant 0 : index
    %c0_41 = arith.constant 0 : index
    %72 = vector.load %arg2[%c5, %c0_40, %c0_41] : memref<9x8x8xbf16, #tpu.memory_space<vmem>>, vector<1x8x8xbf16>
    %73 = vector.shape_cast %72 : vector<1x8x8xbf16> to vector<8x8xbf16>
    %74 = arith.truncf %71 : vector<8x256xf32> to vector<8x256xbf16>
    %cst_42 = arith.constant dense<0.000000e+00> : vector<8x256xf32>
    %75 = tpu.matmul %73, %74, %cst_42 {dimension_numbers = #tpu.dot_dimension_numbers<[1], [0], [0], [1], [0, 0, 1, 1], [], []>} : vector<8x8xbf16>, vector<8x256xbf16>, vector<8x256xf32> -> vector<8x256xf32>
    %76 = arith.addf %64, %75 : vector<8x256xf32>
    %c0_43 = arith.constant 0 : index
    %c143 = arith.constant 143 : index
    %77 = vector.load %arg15[%c0_43, %c143] : memref<16x512xf32, #tpu.memory_space<vmem>>, vector<8x256xf32>
    %c1_i32_44 = arith.constant 1 : i32
    %78 = vector.broadcast %c1_i32_44 : i32 to vector<1x256xi32>
    %79 = arith.cmpi sge, %6, %78 : vector<1x256xi32>
    %cst_45 = arith.constant 0.000000e+00 : f32
    %80 = vector.shape_cast %79 : vector<1x256xi1> to vector<1x256xi1>
    %81 = vector.broadcast %80 : vector<1x256xi1> to vector<8x256xi1>
    %82 = vector.broadcast %cst_45 : f32 to vector<8x256xf32>
    %83 = arith.select %81, %77, %82 : vector<8x256xi1>, vector<8x256xf32>
    %c6 = arith.constant 6 : index
    %c0_46 = arith.constant 0 : index
    %c0_47 = arith.constant 0 : index
    %84 = vector.load %arg2[%c6, %c0_46, %c0_47] : memref<9x8x8xbf16, #tpu.memory_space<vmem>>, vector<1x8x8xbf16>
    %85 = vector.shape_cast %84 : vector<1x8x8xbf16> to vector<8x8xbf16>
    %86 = arith.truncf %83 : vector<8x256xf32> to vector<8x256xbf16>
    %cst_48 = arith.constant dense<0.000000e+00> : vector<8x256xf32>
    %87 = tpu.matmul %85, %86, %cst_48 {dimension_numbers = #tpu.dot_dimension_numbers<[1], [0], [0], [1], [0, 0, 1, 1], [], []>} : vector<8x8xbf16>, vector<8x256xbf16>, vector<8x256xf32> -> vector<8x256xf32>
    %88 = arith.addf %76, %87 : vector<8x256xf32>
    %c0_49 = arith.constant 0 : index
    %c144 = arith.constant 144 : index
    %89 = vector.load %arg15[%c0_49, %c144] : memref<16x512xf32, #tpu.memory_space<vmem>>, vector<8x256xf32>
    %c7 = arith.constant 7 : index
    %c0_50 = arith.constant 0 : index
    %c0_51 = arith.constant 0 : index
    %90 = vector.load %arg2[%c7, %c0_50, %c0_51] : memref<9x8x8xbf16, #tpu.memory_space<vmem>>, vector<1x8x8xbf16>
    %91 = vector.shape_cast %90 : vector<1x8x8xbf16> to vector<8x8xbf16>
    %92 = arith.truncf %89 : vector<8x256xf32> to vector<8x256xbf16>
    %cst_52 = arith.constant dense<0.000000e+00> : vector<8x256xf32>
    %93 = tpu.matmul %91, %92, %cst_52 {dimension_numbers = #tpu.dot_dimension_numbers<[1], [0], [0], [1], [0, 0, 1, 1], [], []>} : vector<8x8xbf16>, vector<8x256xbf16>, vector<8x256xf32> -> vector<8x256xf32>
    %94 = arith.addf %88, %93 : vector<8x256xf32>
    %c0_53 = arith.constant 0 : index
    %c145 = arith.constant 145 : index
    %95 = vector.load %arg15[%c0_53, %c145] : memref<16x512xf32, #tpu.memory_space<vmem>>, vector<8x256xf32>
    %c14_i32_54 = arith.constant 14 : i32
    %96 = vector.broadcast %c14_i32_54 : i32 to vector<1x256xi32>
    %97 = arith.cmpi sle, %6, %96 : vector<1x256xi32>
    %cst_55 = arith.constant 0.000000e+00 : f32
    %98 = vector.shape_cast %97 : vector<1x256xi1> to vector<1x256xi1>
    %99 = vector.broadcast %98 : vector<1x256xi1> to vector<8x256xi1>
    %100 = vector.broadcast %cst_55 : f32 to vector<8x256xf32>
    %101 = arith.select %99, %95, %100 : vector<8x256xi1>, vector<8x256xf32>
    %c8 = arith.constant 8 : index
    %c0_56 = arith.constant 0 : index
    %c0_57 = arith.constant 0 : index
    %102 = vector.load %arg2[%c8, %c0_56, %c0_57] : memref<9x8x8xbf16, #tpu.memory_space<vmem>>, vector<1x8x8xbf16>
    %103 = vector.shape_cast %102 : vector<1x8x8xbf16> to vector<8x8xbf16>
    %104 = arith.truncf %101 : vector<8x256xf32> to vector<8x256xbf16>
    %cst_58 = arith.constant dense<0.000000e+00> : vector<8x256xf32>
    %105 = tpu.matmul %103, %104, %cst_58 {dimension_numbers = #tpu.dot_dimension_numbers<[1], [0], [0], [1], [0, 0, 1, 1], [], []>} : vector<8x8xbf16>, vector<8x256xbf16>, vector<8x256xf32> -> vector<8x256xf32>
    %106 = arith.addf %94, %105 : vector<8x256xf32>
    %c0_59 = arith.constant 0 : index
    %c0_60 = arith.constant 0 : index
    %107 = vector.load %arg7[%c0_59, %c0_60] : memref<8x1xf32, #tpu.memory_space<vmem>>, vector<8x1xf32>
    %108 = vector.broadcast %107 : vector<8x1xf32> to vector<8x256xf32>
    %109 = arith.addf %106, %108 : vector<8x256xf32>
    %cst_61 = arith.constant 0.000000e+00 : f32
    %110 = vector.broadcast %cst_61 : f32 to vector<8x256xf32>
    %111 = arith.maximumf %109, %110 : vector<8x256xf32>
    %c0_62 = arith.constant 0 : index
    %c128_63 = arith.constant 128 : index
    %112 = vector.load %arg15[%c0_62, %c128_63] : memref<16x512xf32, #tpu.memory_space<vmem>>, vector<8x256xf32>
    tpu.vector_store %arg15[%c0_62, %c128_63], %111 {strides = array<i32>} : memref<16x512xf32, #tpu.memory_space<vmem>>, vector<8x256xf32>,
    %cst_64 = arith.constant 0.000000e+00 : f32
    %113 = vector.broadcast %cst_64 : f32 to vector<8x256xf32>
    %c0_65 = arith.constant 0 : index
    %c111_66 = arith.constant 111 : index
    %114 = vector.load %arg15[%c0_65, %c111_66] : memref<16x512xf32, #tpu.memory_space<vmem>>, vector<8x256xf32>
    %c1_i32_67 = arith.constant 1 : i32
    %115 = vector.broadcast %c1_i32_67 : i32 to vector<1x256xi32>
    %116 = arith.cmpi sge, %6, %115 : vector<1x256xi32>
    %cst_68 = arith.constant 0.000000e+00 : f32
    %117 = vector.shape_cast %116 : vector<1x256xi1> to vector<1x256xi1>
    %118 = vector.broadcast %117 : vector<1x256xi1> to vector<8x256xi1>
    %119 = vector.broadcast %cst_68 : f32 to vector<8x256xf32>
    %120 = arith.select %118, %114, %119 : vector<8x256xi1>, vector<8x256xf32>
    %c0_69 = arith.constant 0 : index
    %c0_70 = arith.constant 0 : index
    %c0_71 = arith.constant 0 : index
    %121 = vector.load %arg3[%c0_69, %c0_70, %c0_71] : memref<9x8x8xbf16, #tpu.memory_space<vmem>>, vector<1x8x8xbf16>
    %122 = vector.shape_cast %121 : vector<1x8x8xbf16> to vector<8x8xbf16>
    %123 = arith.truncf %120 : vector<8x256xf32> to vector<8x256xbf16>
    %cst_72 = arith.constant dense<0.000000e+00> : vector<8x256xf32>
    %124 = tpu.matmul %122, %123, %cst_72 {dimension_numbers = #tpu.dot_dimension_numbers<[1], [0], [0], [1], [0, 0, 1, 1], [], []>} : vector<8x8xbf16>, vector<8x256xbf16>, vector<8x256xf32> -> vector<8x256xf32>
    %125 = arith.addf %113, %124 : vector<8x256xf32>
    %c0_73 = arith.constant 0 : index
    %c112_74 = arith.constant 112 : index
    %126 = vector.load %arg15[%c0_73, %c112_74] : memref<16x512xf32, #tpu.memory_space<vmem>>, vector<8x256xf32>
    %c1_75 = arith.constant 1 : index
    %c0_76 = arith.constant 0 : index
    %c0_77 = arith.constant 0 : index
    %127 = vector.load %arg3[%c1_75, %c0_76, %c0_77] : memref<9x8x8xbf16, #tpu.memory_space<vmem>>, vector<1x8x8xbf16>
    %128 = vector.shape_cast %127 : vector<1x8x8xbf16> to vector<8x8xbf16>
    %129 = arith.truncf %126 : vector<8x256xf32> to vector<8x256xbf16>
    %cst_78 = arith.constant dense<0.000000e+00> : vector<8x256xf32>
    %130 = tpu.matmul %128, %129, %cst_78 {dimension_numbers = #tpu.dot_dimension_numbers<[1], [0], [0], [1], [0, 0, 1, 1], [], []>} : vector<8x8xbf16>, vector<8x256xbf16>, vector<8x256xf32> -> vector<8x256xf32>
    %131 = arith.addf %125, %130 : vector<8x256xf32>
    %c0_79 = arith.constant 0 : index
    %c113_80 = arith.constant 113 : index
    %132 = vector.load %arg15[%c0_79, %c113_80] : memref<16x512xf32, #tpu.memory_space<vmem>>, vector<8x256xf32>
    %c14_i32_81 = arith.constant 14 : i32
    %133 = vector.broadcast %c14_i32_81 : i32 to vector<1x256xi32>
    %134 = arith.cmpi sle, %6, %133 : vector<1x256xi32>
    %cst_82 = arith.constant 0.000000e+00 : f32
    %135 = vector.shape_cast %134 : vector<1x256xi1> to vector<1x256xi1>
    %136 = vector.broadcast %135 : vector<1x256xi1> to vector<8x256xi1>
    %137 = vector.broadcast %cst_82 : f32 to vector<8x256xf32>
    %138 = arith.select %136, %132, %137 : vector<8x256xi1>, vector<8x256xf32>
    %c2_83 = arith.constant 2 : index
    %c0_84 = arith.constant 0 : index
    %c0_85 = arith.constant 0 : index
    %139 = vector.load %arg3[%c2_83, %c0_84, %c0_85] : memref<9x8x8xbf16, #tpu.memory_space<vmem>>, vector<1x8x8xbf16>
    %140 = vector.shape_cast %139 : vector<1x8x8xbf16> to vector<8x8xbf16>
    %141 = arith.truncf %138 : vector<8x256xf32> to vector<8x256xbf16>
    %cst_86 = arith.constant dense<0.000000e+00> : vector<8x256xf32>
    %142 = tpu.matmul %140, %141, %cst_86 {dimension_numbers = #tpu.dot_dimension_numbers<[1], [0], [0], [1], [0, 0, 1, 1], [], []>} : vector<8x8xbf16>, vector<8x256xbf16>, vector<8x256xf32> -> vector<8x256xf32>
    %143 = arith.addf %131, %142 : vector<8x256xf32>
    %c0_87 = arith.constant 0 : index
    %c127_88 = arith.constant 127 : index
    %144 = vector.load %arg15[%c0_87, %c127_88] : memref<16x512xf32, #tpu.memory_space<vmem>>, vector<8x256xf32>
    %c1_i32_89 = arith.constant 1 : i32
    %145 = vector.broadcast %c1_i32_89 : i32 to vector<1x256xi32>
    %146 = arith.cmpi sge, %6, %145 : vector<1x256xi32>
    %cst_90 = arith.constant 0.000000e+00 : f32
    %147 = vector.shape_cast %146 : vector<1x256xi1> to vector<1x256xi1>
    %148 = vector.broadcast %147 : vector<1x256xi1> to vector<8x256xi1>
    %149 = vector.broadcast %cst_90 : f32 to vector<8x256xf32>
    %150 = arith.select %148, %144, %149 : vector<8x256xi1>, vector<8x256xf32>
    %c3_91 = arith.constant 3 : index
    %c0_92 = arith.constant 0 : index
    %c0_93 = arith.constant 0 : index
    %151 = vector.load %arg3[%c3_91, %c0_92, %c0_93] : memref<9x8x8xbf16, #tpu.memory_space<vmem>>, vector<1x8x8xbf16>
    %152 = vector.shape_cast %151 : vector<1x8x8xbf16> to vector<8x8xbf16>
    %153 = arith.truncf %150 : vector<8x256xf32> to vector<8x256xbf16>
    %cst_94 = arith.constant dense<0.000000e+00> : vector<8x256xf32>
    %154 = tpu.matmul %152, %153, %cst_94 {dimension_numbers = #tpu.dot_dimension_numbers<[1], [0], [0], [1], [0, 0, 1, 1], [], []>} : vector<8x8xbf16>, vector<8x256xbf16>, vector<8x256xf32> -> vector<8x256xf32>
    %155 = arith.addf %143, %154 : vector<8x256xf32>
    %c0_95 = arith.constant 0 : index
    %c128_96 = arith.constant 128 : index
    %156 = vector.load %arg15[%c0_95, %c128_96] : memref<16x512xf32, #tpu.memory_space<vmem>>, vector<8x256xf32>
    %c4_97 = arith.constant 4 : index
    %c0_98 = arith.constant 0 : index
    %c0_99 = arith.constant 0 : index
    %157 = vector.load %arg3[%c4_97, %c0_98, %c0_99] : memref<9x8x8xbf16, #tpu.memory_space<vmem>>, vector<1x8x8xbf16>
    %158 = vector.shape_cast %157 : vector<1x8x8xbf16> to vector<8x8xbf16>
    %159 = arith.truncf %156 : vector<8x256xf32> to vector<8x256xbf16>
    %cst_100 = arith.constant dense<0.000000e+00> : vector<8x256xf32>
    %160 = tpu.matmul %158, %159, %cst_100 {dimension_numbers = #tpu.dot_dimension_numbers<[1], [0], [0], [1], [0, 0, 1, 1], [], []>} : vector<8x8xbf16>, vector<8x256xbf16>, vector<8x256xf32> -> vector<8x256xf32>
    %161 = arith.addf %155, %160 : vector<8x256xf32>
    %c0_101 = arith.constant 0 : index
    %c129_102 = arith.constant 129 : index
    %162 = vector.load %arg15[%c0_101, %c129_102] : memref<16x512xf32, #tpu.memory_space<vmem>>, vector<8x256xf32>
    %c14_i32_103 = arith.constant 14 : i32
    %163 = vector.broadcast %c14_i32_103 : i32 to vector<1x256xi32>
    %164 = arith.cmpi sle, %6, %163 : vector<1x256xi32>
    %cst_104 = arith.constant 0.000000e+00 : f32
    %165 = vector.shape_cast %164 : vector<1x256xi1> to vector<1x256xi1>
    %166 = vector.broadcast %165 : vector<1x256xi1> to vector<8x256xi1>
    %167 = vector.broadcast %cst_104 : f32 to vector<8x256xf32>
    %168 = arith.select %166, %162, %167 : vector<8x256xi1>, vector<8x256xf32>
    %c5_105 = arith.constant 5 : index
    %c0_106 = arith.constant 0 : index
    %c0_107 = arith.constant 0 : index
    %169 = vector.load %arg3[%c5_105, %c0_106, %c0_107] : memref<9x8x8xbf16, #tpu.memory_space<vmem>>, vector<1x8x8xbf16>
    %170 = vector.shape_cast %169 : vector<1x8x8xbf16> to vector<8x8xbf16>
    %171 = arith.truncf %168 : vector<8x256xf32> to vector<8x256xbf16>
    %cst_108 = arith.constant dense<0.000000e+00> : vector<8x256xf32>
    %172 = tpu.matmul %170, %171, %cst_108 {dimension_numbers = #tpu.dot_dimension_numbers<[1], [0], [0], [1], [0, 0, 1, 1], [], []>} : vector<8x8xbf16>, vector<8x256xbf16>, vector<8x256xf32> -> vector<8x256xf32>
    %173 = arith.addf %161, %172 : vector<8x256xf32>
    %c0_109 = arith.constant 0 : index
    %c143_110 = arith.constant 143 : index
    %174 = vector.load %arg15[%c0_109, %c143_110] : memref<16x512xf32, #tpu.memory_space<vmem>>, vector<8x256xf32>
    %c1_i32_111 = arith.constant 1 : i32
    %175 = vector.broadcast %c1_i32_111 : i32 to vector<1x256xi32>
    %176 = arith.cmpi sge, %6, %175 : vector<1x256xi32>
    %cst_112 = arith.constant 0.000000e+00 : f32
    %177 = vector.shape_cast %176 : vector<1x256xi1> to vector<1x256xi1>
    %178 = vector.broadcast %177 : vector<1x256xi1> to vector<8x256xi1>
    %179 = vector.broadcast %cst_112 : f32 to vector<8x256xf32>
    %180 = arith.select %178, %174, %179 : vector<8x256xi1>, vector<8x256xf32>
    %c6_113 = arith.constant 6 : index
    %c0_114 = arith.constant 0 : index
    %c0_115 = arith.constant 0 : index
    %181 = vector.load %arg3[%c6_113, %c0_114, %c0_115] : memref<9x8x8xbf16, #tpu.memory_space<vmem>>, vector<1x8x8xbf16>
    %182 = vector.shape_cast %181 : vector<1x8x8xbf16> to vector<8x8xbf16>
    %183 = arith.truncf %180 : vector<8x256xf32> to vector<8x256xbf16>
    %cst_116 = arith.constant dense<0.000000e+00> : vector<8x256xf32>
    %184 = tpu.matmul %182, %183, %cst_116 {dimension_numbers = #tpu.dot_dimension_numbers<[1], [0], [0], [1], [0, 0, 1, 1], [], []>} : vector<8x8xbf16>, vector<8x256xbf16>, vector<8x256xf32> -> vector<8x256xf32>
    %185 = arith.addf %173, %184 : vector<8x256xf32>
    %c0_117 = arith.constant 0 : index
    %c144_118 = arith.constant 144 : index
    %186 = vector.load %arg15[%c0_117, %c144_118] : memref<16x512xf32, #tpu.memory_space<vmem>>, vector<8x256xf32>
    %c7_119 = arith.constant 7 : index
    %c0_120 = arith.constant 0 : index
    %c0_121 = arith.constant 0 : index
    %187 = vector.load %arg3[%c7_119, %c0_120, %c0_121] : memref<9x8x8xbf16, #tpu.memory_space<vmem>>, vector<1x8x8xbf16>
    %188 = vector.shape_cast %187 : vector<1x8x8xbf16> to vector<8x8xbf16>
    %189 = arith.truncf %186 : vector<8x256xf32> to vector<8x256xbf16>
    %cst_122 = arith.constant dense<0.000000e+00> : vector<8x256xf32>
    %190 = tpu.matmul %188, %189, %cst_122 {dimension_numbers = #tpu.dot_dimension_numbers<[1], [0], [0], [1], [0, 0, 1, 1], [], []>} : vector<8x8xbf16>, vector<8x256xbf16>, vector<8x256xf32> -> vector<8x256xf32>
    %191 = arith.addf %185, %190 : vector<8x256xf32>
    %c0_123 = arith.constant 0 : index
    %c145_124 = arith.constant 145 : index
    %192 = vector.load %arg15[%c0_123, %c145_124] : memref<16x512xf32, #tpu.memory_space<vmem>>, vector<8x256xf32>
    %c14_i32_125 = arith.constant 14 : i32
    %193 = vector.broadcast %c14_i32_125 : i32 to vector<1x256xi32>
    %194 = arith.cmpi sle, %6, %193 : vector<1x256xi32>
    %cst_126 = arith.constant 0.000000e+00 : f32
    %195 = vector.shape_cast %194 : vector<1x256xi1> to vector<1x256xi1>
    %196 = vector.broadcast %195 : vector<1x256xi1> to vector<8x256xi1>
    %197 = vector.broadcast %cst_126 : f32 to vector<8x256xf32>
    %198 = arith.select %196, %192, %197 : vector<8x256xi1>, vector<8x256xf32>
    %c8_127 = arith.constant 8 : index
    %c0_128 = arith.constant 0 : index
    %c0_129 = arith.constant 0 : index
    %199 = vector.load %arg3[%c8_127, %c0_128, %c0_129] : memref<9x8x8xbf16, #tpu.memory_space<vmem>>, vector<1x8x8xbf16>
    %200 = vector.shape_cast %199 : vector<1x8x8xbf16> to vector<8x8xbf16>
    %201 = arith.truncf %198 : vector<8x256xf32> to vector<8x256xbf16>
    %cst_130 = arith.constant dense<0.000000e+00> : vector<8x256xf32>
    %202 = tpu.matmul %200, %201, %cst_130 {dimension_numbers = #tpu.dot_dimension_numbers<[1], [0], [0], [1], [0, 0, 1, 1], [], []>} : vector<8x8xbf16>, vector<8x256xbf16>, vector<8x256xf32> -> vector<8x256xf32>
    %203 = arith.addf %191, %202 : vector<8x256xf32>
    %c0_131 = arith.constant 0 : index
    %c0_132 = arith.constant 0 : index
    %204 = vector.load %arg8[%c0_131, %c0_132] : memref<8x1xf32, #tpu.memory_space<vmem>>, vector<8x1xf32>
    %205 = vector.broadcast %204 : vector<8x1xf32> to vector<8x256xf32>
    %206 = arith.addf %203, %205 : vector<8x256xf32>
    %cst_133 = arith.constant 0.000000e+00 : f32
    %207 = vector.broadcast %cst_133 : f32 to vector<8x256xf32>
    %208 = arith.maximumf %206, %207 : vector<8x256xf32>
    %c0_134 = arith.constant 0 : index
    %c128_135 = arith.constant 128 : index
    %209 = vector.load %arg15[%c0_134, %c128_135] : memref<16x512xf32, #tpu.memory_space<vmem>>, vector<8x256xf32>
    tpu.vector_store %arg15[%c0_134, %c128_135], %208 {strides = array<i32>} : memref<16x512xf32, #tpu.memory_space<vmem>>, vector<8x256xf32>,
    %c0_136 = arith.constant 0 : index
    %c128_137 = arith.constant 128 : index
    %210 = vector.load %arg15[%c0_136, %c128_137] : memref<16x512xf32, #tpu.memory_space<vmem>>, vector<8x256xf32>
    %c0_138 = arith.constant 0 : index
    %c129_139 = arith.constant 129 : index
    %211 = vector.load %arg15[%c0_138, %c129_139] : memref<16x512xf32, #tpu.memory_space<vmem>>, vector<8x256xf32>
    %212 = arith.maximumf %210, %211 : vector<8x256xf32>
    %c0_140 = arith.constant 0 : index
    %c144_141 = arith.constant 144 : index
    %213 = vector.load %arg15[%c0_140, %c144_141] : memref<16x512xf32, #tpu.memory_space<vmem>>, vector<8x256xf32>
    %c0_142 = arith.constant 0 : index
    %c145_143 = arith.constant 145 : index
    %214 = vector.load %arg15[%c0_142, %c145_143] : memref<16x512xf32, #tpu.memory_space<vmem>>, vector<8x256xf32>
    %215 = arith.maximumf %213, %214 : vector<8x256xf32>
    %216 = arith.maximumf %212, %215 : vector<8x256xf32>
    %c0_144 = arith.constant 0 : index
    %c128_145 = arith.constant 128 : index
    %217 = vector.load %arg15[%c0_144, %c128_145] : memref<16x512xf32, #tpu.memory_space<vmem>>, vector<8x256xf32>
    tpu.vector_store %arg15[%c0_144, %c128_145], %216 {strides = array<i32>} : memref<16x512xf32, #tpu.memory_space<vmem>>, vector<8x256xf32>,
    %cst_146 = arith.constant 0.000000e+00 : f32
    %218 = vector.broadcast %cst_146 : f32 to vector<16x256xf32>
    %c0_147 = arith.constant 0 : index
    %c94 = arith.constant 94 : index
    %219 = vector.load %arg15[%c0_147, %c94] : memref<16x512xf32, #tpu.memory_space<vmem>>, vector<8x256xf32>
    %c2_i32 = arith.constant 2 : i32
    %220 = vector.broadcast %c2_i32 : i32 to vector<1x256xi32>
    %221 = arith.cmpi sge, %6, %220 : vector<1x256xi32>
    %cst_148 = arith.constant 0.000000e+00 : f32
    %222 = vector.shape_cast %221 : vector<1x256xi1> to vector<1x256xi1>
    %223 = vector.broadcast %222 : vector<1x256xi1> to vector<8x256xi1>
    %224 = vector.broadcast %cst_148 : f32 to vector<8x256xf32>
    %225 = arith.select %223, %219, %224 : vector<8x256xi1>, vector<8x256xf32>
    %c0_149 = arith.constant 0 : index
    %c0_150 = arith.constant 0 : index
    %c0_151 = arith.constant 0 : index
    %226 = vector.load %arg4[%c0_149, %c0_150, %c0_151] : memref<9x16x8xbf16, #tpu.memory_space<vmem>>, vector<1x16x8xbf16>
    %227 = vector.shape_cast %226 : vector<1x16x8xbf16> to vector<16x8xbf16>
    %228 = arith.truncf %225 : vector<8x256xf32> to vector<8x256xbf16>
    %cst_152 = arith.constant dense<0.000000e+00> : vector<16x256xf32>
    %229 = tpu.matmul %227, %228, %cst_152 {dimension_numbers = #tpu.dot_dimension_numbers<[1], [0], [0], [1], [0, 0, 1, 1], [], []>} : vector<16x8xbf16>, vector<8x256xbf16>, vector<16x256xf32> -> vector<16x256xf32>
    %230 = arith.addf %218, %229 : vector<16x256xf32>
    %c0_153 = arith.constant 0 : index
    %c96 = arith.constant 96 : index
    %231 = vector.load %arg15[%c0_153, %c96] : memref<16x512xf32, #tpu.memory_space<vmem>>, vector<8x256xf32>
    %c1_154 = arith.constant 1 : index
    %c0_155 = arith.constant 0 : index
    %c0_156 = arith.constant 0 : index
    %232 = vector.load %arg4[%c1_154, %c0_155, %c0_156] : memref<9x16x8xbf16, #tpu.memory_space<vmem>>, vector<1x16x8xbf16>
    %233 = vector.shape_cast %232 : vector<1x16x8xbf16> to vector<16x8xbf16>
    %234 = arith.truncf %231 : vector<8x256xf32> to vector<8x256xbf16>
    %cst_157 = arith.constant dense<0.000000e+00> : vector<16x256xf32>
    %235 = tpu.matmul %233, %234, %cst_157 {dimension_numbers = #tpu.dot_dimension_numbers<[1], [0], [0], [1], [0, 0, 1, 1], [], []>} : vector<16x8xbf16>, vector<8x256xbf16>, vector<16x256xf32> -> vector<16x256xf32>
    %236 = arith.addf %230, %235 : vector<16x256xf32>
    %c0_158 = arith.constant 0 : index
    %c98 = arith.constant 98 : index
    %237 = vector.load %arg15[%c0_158, %c98] : memref<16x512xf32, #tpu.memory_space<vmem>>, vector<8x256xf32>
    %c12_i32 = arith.constant 12 : i32
    %238 = vector.broadcast %c12_i32 : i32 to vector<1x256xi32>
    %239 = arith.cmpi sle, %6, %238 : vector<1x256xi32>
    %cst_159 = arith.constant 0.000000e+00 : f32
    %240 = vector.shape_cast %239 : vector<1x256xi1> to vector<1x256xi1>
    %241 = vector.broadcast %240 : vector<1x256xi1> to vector<8x256xi1>
    %242 = vector.broadcast %cst_159 : f32 to vector<8x256xf32>
    %243 = arith.select %241, %237, %242 : vector<8x256xi1>, vector<8x256xf32>
    %c2_160 = arith.constant 2 : index
    %c0_161 = arith.constant 0 : index
    %c0_162 = arith.constant 0 : index
    %244 = vector.load %arg4[%c2_160, %c0_161, %c0_162] : memref<9x16x8xbf16, #tpu.memory_space<vmem>>, vector<1x16x8xbf16>
    %245 = vector.shape_cast %244 : vector<1x16x8xbf16> to vector<16x8xbf16>
    %246 = arith.truncf %243 : vector<8x256xf32> to vector<8x256xbf16>
    %cst_163 = arith.constant dense<0.000000e+00> : vector<16x256xf32>
    %247 = tpu.matmul %245, %246, %cst_163 {dimension_numbers = #tpu.dot_dimension_numbers<[1], [0], [0], [1], [0, 0, 1, 1], [], []>} : vector<16x8xbf16>, vector<8x256xbf16>, vector<16x256xf32> -> vector<16x256xf32>
    %248 = arith.addf %236, %247 : vector<16x256xf32>
    %c0_164 = arith.constant 0 : index
    %c126 = arith.constant 126 : index
    %249 = vector.load %arg15[%c0_164, %c126] : memref<16x512xf32, #tpu.memory_space<vmem>>, vector<8x256xf32>
    %c2_i32_165 = arith.constant 2 : i32
    %250 = vector.broadcast %c2_i32_165 : i32 to vector<1x256xi32>
    %251 = arith.cmpi sge, %6, %250 : vector<1x256xi32>
    %cst_166 = arith.constant 0.000000e+00 : f32
    %252 = vector.shape_cast %251 : vector<1x256xi1> to vector<1x256xi1>
    %253 = vector.broadcast %252 : vector<1x256xi1> to vector<8x256xi1>
    %254 = vector.broadcast %cst_166 : f32 to vector<8x256xf32>
    %255 = arith.select %253, %249, %254 : vector<8x256xi1>, vector<8x256xf32>
    %c3_167 = arith.constant 3 : index
    %c0_168 = arith.constant 0 : index
    %c0_169 = arith.constant 0 : index
    %256 = vector.load %arg4[%c3_167, %c0_168, %c0_169] : memref<9x16x8xbf16, #tpu.memory_space<vmem>>, vector<1x16x8xbf16>
    %257 = vector.shape_cast %256 : vector<1x16x8xbf16> to vector<16x8xbf16>
    %258 = arith.truncf %255 : vector<8x256xf32> to vector<8x256xbf16>
    %cst_170 = arith.constant dense<0.000000e+00> : vector<16x256xf32>
    %259 = tpu.matmul %257, %258, %cst_170 {dimension_numbers = #tpu.dot_dimension_numbers<[1], [0], [0], [1], [0, 0, 1, 1], [], []>} : vector<16x8xbf16>, vector<8x256xbf16>, vector<16x256xf32> -> vector<16x256xf32>
    %260 = arith.addf %248, %259 : vector<16x256xf32>
    %c0_171 = arith.constant 0 : index
    %c128_172 = arith.constant 128 : index
    %261 = vector.load %arg15[%c0_171, %c128_172] : memref<16x512xf32, #tpu.memory_space<vmem>>, vector<8x256xf32>
    %c4_173 = arith.constant 4 : index
    %c0_174 = arith.constant 0 : index
    %c0_175 = arith.constant 0 : index
    %262 = vector.load %arg4[%c4_173, %c0_174, %c0_175] : memref<9x16x8xbf16, #tpu.memory_space<vmem>>, vector<1x16x8xbf16>
    %263 = vector.shape_cast %262 : vector<1x16x8xbf16> to vector<16x8xbf16>
    %264 = arith.truncf %261 : vector<8x256xf32> to vector<8x256xbf16>
    %cst_176 = arith.constant dense<0.000000e+00> : vector<16x256xf32>
    %265 = tpu.matmul %263, %264, %cst_176 {dimension_numbers = #tpu.dot_dimension_numbers<[1], [0], [0], [1], [0, 0, 1, 1], [], []>} : vector<16x8xbf16>, vector<8x256xbf16>, vector<16x256xf32> -> vector<16x256xf32>
    %266 = arith.addf %260, %265 : vector<16x256xf32>
    %c0_177 = arith.constant 0 : index
    %c130 = arith.constant 130 : index
    %267 = vector.load %arg15[%c0_177, %c130] : memref<16x512xf32, #tpu.memory_space<vmem>>, vector<8x256xf32>
    %c12_i32_178 = arith.constant 12 : i32
    %268 = vector.broadcast %c12_i32_178 : i32 to vector<1x256xi32>
    %269 = arith.cmpi sle, %6, %268 : vector<1x256xi32>
    %cst_179 = arith.constant 0.000000e+00 : f32
    %270 = vector.shape_cast %269 : vector<1x256xi1> to vector<1x256xi1>
    %271 = vector.broadcast %270 : vector<1x256xi1> to vector<8x256xi1>
    %272 = vector.broadcast %cst_179 : f32 to vector<8x256xf32>
    %273 = arith.select %271, %267, %272 : vector<8x256xi1>, vector<8x256xf32>
    %c5_180 = arith.constant 5 : index
    %c0_181 = arith.constant 0 : index
    %c0_182 = arith.constant 0 : index
    %274 = vector.load %arg4[%c5_180, %c0_181, %c0_182] : memref<9x16x8xbf16, #tpu.memory_space<vmem>>, vector<1x16x8xbf16>
    %275 = vector.shape_cast %274 : vector<1x16x8xbf16> to vector<16x8xbf16>
    %276 = arith.truncf %273 : vector<8x256xf32> to vector<8x256xbf16>
    %cst_183 = arith.constant dense<0.000000e+00> : vector<16x256xf32>
    %277 = tpu.matmul %275, %276, %cst_183 {dimension_numbers = #tpu.dot_dimension_numbers<[1], [0], [0], [1], [0, 0, 1, 1], [], []>} : vector<16x8xbf16>, vector<8x256xbf16>, vector<16x256xf32> -> vector<16x256xf32>
    %278 = arith.addf %266, %277 : vector<16x256xf32>
    %c0_184 = arith.constant 0 : index
    %c158 = arith.constant 158 : index
    %279 = vector.load %arg15[%c0_184, %c158] : memref<16x512xf32, #tpu.memory_space<vmem>>, vector<8x256xf32>
    %c2_i32_185 = arith.constant 2 : i32
    %280 = vector.broadcast %c2_i32_185 : i32 to vector<1x256xi32>
    %281 = arith.cmpi sge, %6, %280 : vector<1x256xi32>
    %cst_186 = arith.constant 0.000000e+00 : f32
    %282 = vector.shape_cast %281 : vector<1x256xi1> to vector<1x256xi1>
    %283 = vector.broadcast %282 : vector<1x256xi1> to vector<8x256xi1>
    %284 = vector.broadcast %cst_186 : f32 to vector<8x256xf32>
    %285 = arith.select %283, %279, %284 : vector<8x256xi1>, vector<8x256xf32>
    %c6_187 = arith.constant 6 : index
    %c0_188 = arith.constant 0 : index
    %c0_189 = arith.constant 0 : index
    %286 = vector.load %arg4[%c6_187, %c0_188, %c0_189] : memref<9x16x8xbf16, #tpu.memory_space<vmem>>, vector<1x16x8xbf16>
    %287 = vector.shape_cast %286 : vector<1x16x8xbf16> to vector<16x8xbf16>
    %288 = arith.truncf %285 : vector<8x256xf32> to vector<8x256xbf16>
    %cst_190 = arith.constant dense<0.000000e+00> : vector<16x256xf32>
    %289 = tpu.matmul %287, %288, %cst_190 {dimension_numbers = #tpu.dot_dimension_numbers<[1], [0], [0], [1], [0, 0, 1, 1], [], []>} : vector<16x8xbf16>, vector<8x256xbf16>, vector<16x256xf32> -> vector<16x256xf32>
    %290 = arith.addf %278, %289 : vector<16x256xf32>
    %c0_191 = arith.constant 0 : index
    %c160 = arith.constant 160 : index
    %291 = vector.load %arg15[%c0_191, %c160] : memref<16x512xf32, #tpu.memory_space<vmem>>, vector<8x256xf32>
    %c7_192 = arith.constant 7 : index
    %c0_193 = arith.constant 0 : index
    %c0_194 = arith.constant 0 : index
    %292 = vector.load %arg4[%c7_192, %c0_193, %c0_194] : memref<9x16x8xbf16, #tpu.memory_space<vmem>>, vector<1x16x8xbf16>
    %293 = vector.shape_cast %292 : vector<1x16x8xbf16> to vector<16x8xbf16>
    %294 = arith.truncf %291 : vector<8x256xf32> to vector<8x256xbf16>
    %cst_195 = arith.constant dense<0.000000e+00> : vector<16x256xf32>
    %295 = tpu.matmul %293, %294, %cst_195 {dimension_numbers = #tpu.dot_dimension_numbers<[1], [0], [0], [1], [0, 0, 1, 1], [], []>} : vector<16x8xbf16>, vector<8x256xbf16>, vector<16x256xf32> -> vector<16x256xf32>
    %296 = arith.addf %290, %295 : vector<16x256xf32>
    %c0_196 = arith.constant 0 : index
    %c162 = arith.constant 162 : index
    %297 = vector.load %arg15[%c0_196, %c162] : memref<16x512xf32, #tpu.memory_space<vmem>>, vector<8x256xf32>
    %c12_i32_197 = arith.constant 12 : i32
    %298 = vector.broadcast %c12_i32_197 : i32 to vector<1x256xi32>
    %299 = arith.cmpi sle, %6, %298 : vector<1x256xi32>
    %cst_198 = arith.constant 0.000000e+00 : f32
    %300 = vector.shape_cast %299 : vector<1x256xi1> to vector<1x256xi1>
    %301 = vector.broadcast %300 : vector<1x256xi1> to vector<8x256xi1>
    %302 = vector.broadcast %cst_198 : f32 to vector<8x256xf32>
    %303 = arith.select %301, %297, %302 : vector<8x256xi1>, vector<8x256xf32>
    %c8_199 = arith.constant 8 : index
    %c0_200 = arith.constant 0 : index
    %c0_201 = arith.constant 0 : index
    %304 = vector.load %arg4[%c8_199, %c0_200, %c0_201] : memref<9x16x8xbf16, #tpu.memory_space<vmem>>, vector<1x16x8xbf16>
    %305 = vector.shape_cast %304 : vector<1x16x8xbf16> to vector<16x8xbf16>
    %306 = arith.truncf %303 : vector<8x256xf32> to vector<8x256xbf16>
    %cst_202 = arith.constant dense<0.000000e+00> : vector<16x256xf32>
    %307 = tpu.matmul %305, %306, %cst_202 {dimension_numbers = #tpu.dot_dimension_numbers<[1], [0], [0], [1], [0, 0, 1, 1], [], []>} : vector<16x8xbf16>, vector<8x256xbf16>, vector<16x256xf32> -> vector<16x256xf32>
    %308 = arith.addf %296, %307 : vector<16x256xf32>
    %c0_203 = arith.constant 0 : index
    %c0_204 = arith.constant 0 : index
    %309 = vector.load %arg9[%c0_203, %c0_204] : memref<16x1xf32, #tpu.memory_space<vmem>>, vector<16x1xf32>
    %310 = vector.broadcast %309 : vector<16x1xf32> to vector<16x256xf32>
    %311 = arith.addf %308, %310 : vector<16x256xf32>
    %cst_205 = arith.constant 0.000000e+00 : f32
    %312 = vector.broadcast %cst_205 : f32 to vector<16x256xf32>
    %313 = arith.maximumf %311, %312 : vector<16x256xf32>
    %cst_206 = arith.constant 0.000000e+00 : f32
    %314 = vector.shape_cast %10 : vector<1x256xi1> to vector<1x256xi1>
    %315 = vector.broadcast %314 : vector<1x256xi1> to vector<16x256xi1>
    %316 = vector.broadcast %cst_206 : f32 to vector<16x256xf32>
    %317 = arith.select %315, %313, %316 : vector<16x256xi1>, vector<16x256xf32>
    %c0_207 = arith.constant 0 : index
    %c128_208 = arith.constant 128 : index
    %318 = vector.load %arg15[%c0_207, %c128_208] : memref<16x512xf32, #tpu.memory_space<vmem>>, vector<16x256xf32>
    tpu.vector_store %arg15[%c0_207, %c128_208], %317 {strides = array<i32>} : memref<16x512xf32, #tpu.memory_space<vmem>>, vector<16x256xf32>,
    %cst_209 = arith.constant 0.000000e+00 : f32
    %319 = vector.broadcast %cst_209 : f32 to vector<8x256xf32>
    %c0_210 = arith.constant 0 : index
    %c128_211 = arith.constant 128 : index
    %320 = vector.load %arg15[%c0_210, %c128_211] : memref<16x512xf32, #tpu.memory_space<vmem>>, vector<16x256xf32>
    %c0_212 = arith.constant 0 : index
    %c0_213 = arith.constant 0 : index
    %c0_214 = arith.constant 0 : index
    %321 = vector.load %arg12[%c0_212, %c0_213, %c0_214] : memref<4x8x16xbf16, #tpu.memory_space<vmem>>, vector<1x8x16xbf16>
    %322 = vector.shape_cast %321 : vector<1x8x16xbf16> to vector<8x16xbf16>
    %323 = arith.truncf %320 : vector<16x256xf32> to vector<16x256xbf16>
    %cst_215 = arith.constant dense<0.000000e+00> : vector<8x256xf32>
    %324 = tpu.matmul %322, %323, %cst_215 {dimension_numbers = #tpu.dot_dimension_numbers<[1], [0], [0], [1], [0, 0, 1, 1], [], []>} : vector<8x16xbf16>, vector<16x256xbf16>, vector<8x256xf32> -> vector<8x256xf32>
    %325 = arith.addf %319, %324 : vector<8x256xf32>
    %c0_216 = arith.constant 0 : index
    %c127_217 = arith.constant 127 : index
    %326 = vector.load %arg15[%c0_216, %c127_217] : memref<16x512xf32, #tpu.memory_space<vmem>>, vector<16x256xf32>
    %c1_218 = arith.constant 1 : index
    %c0_219 = arith.constant 0 : index
    %c0_220 = arith.constant 0 : index
    %327 = vector.load %arg12[%c1_218, %c0_219, %c0_220] : memref<4x8x16xbf16, #tpu.memory_space<vmem>>, vector<1x8x16xbf16>
    %328 = vector.shape_cast %327 : vector<1x8x16xbf16> to vector<8x16xbf16>
    %329 = arith.truncf %326 : vector<16x256xf32> to vector<16x256xbf16>
    %cst_221 = arith.constant dense<0.000000e+00> : vector<8x256xf32>
    %330 = tpu.matmul %328, %329, %cst_221 {dimension_numbers = #tpu.dot_dimension_numbers<[1], [0], [0], [1], [0, 0, 1, 1], [], []>} : vector<8x16xbf16>, vector<16x256xbf16>, vector<8x256xf32> -> vector<8x256xf32>
    %331 = arith.addf %325, %330 : vector<8x256xf32>
    %c0_222 = arith.constant 0 : index
    %c112_223 = arith.constant 112 : index
    %332 = vector.load %arg15[%c0_222, %c112_223] : memref<16x512xf32, #tpu.memory_space<vmem>>, vector<16x256xf32>
    %c2_224 = arith.constant 2 : index
    %c0_225 = arith.constant 0 : index
    %c0_226 = arith.constant 0 : index
    %333 = vector.load %arg12[%c2_224, %c0_225, %c0_226] : memref<4x8x16xbf16, #tpu.memory_space<vmem>>, vector<1x8x16xbf16>
    %334 = vector.shape_cast %333 : vector<1x8x16xbf16> to vector<8x16xbf16>
    %335 = arith.truncf %332 : vector<16x256xf32> to vector<16x256xbf16>
    %cst_227 = arith.constant dense<0.000000e+00> : vector<8x256xf32>
    %336 = tpu.matmul %334, %335, %cst_227 {dimension_numbers = #tpu.dot_dimension_numbers<[1], [0], [0], [1], [0, 0, 1, 1], [], []>} : vector<8x16xbf16>, vector<16x256xbf16>, vector<8x256xf32> -> vector<8x256xf32>
    %337 = arith.addf %331, %336 : vector<8x256xf32>
    %c0_228 = arith.constant 0 : index
    %c111_229 = arith.constant 111 : index
    %338 = vector.load %arg15[%c0_228, %c111_229] : memref<16x512xf32, #tpu.memory_space<vmem>>, vector<16x256xf32>
    %c3_230 = arith.constant 3 : index
    %c0_231 = arith.constant 0 : index
    %c0_232 = arith.constant 0 : index
    %339 = vector.load %arg12[%c3_230, %c0_231, %c0_232] : memref<4x8x16xbf16, #tpu.memory_space<vmem>>, vector<1x8x16xbf16>
    %340 = vector.shape_cast %339 : vector<1x8x16xbf16> to vector<8x16xbf16>
    %341 = arith.truncf %338 : vector<16x256xf32> to vector<16x256xbf16>
    %cst_233 = arith.constant dense<0.000000e+00> : vector<8x256xf32>
    %342 = tpu.matmul %340, %341, %cst_233 {dimension_numbers = #tpu.dot_dimension_numbers<[1], [0], [0], [1], [0, 0, 1, 1], [], []>} : vector<8x16xbf16>, vector<16x256xbf16>, vector<8x256xf32> -> vector<8x256xf32>
    %343 = arith.addf %337, %342 : vector<8x256xf32>
    %c0_234 = arith.constant 0 : index
    %c0_235 = arith.constant 0 : index
    %344 = vector.load %arg13[%c0_234, %c0_235] : memref<8x1xf32, #tpu.memory_space<vmem>>, vector<8x1xf32>
    %345 = vector.broadcast %344 : vector<8x1xf32> to vector<8x256xf32>
    %346 = arith.addf %343, %345 : vector<8x256xf32>
    %c0_236 = arith.constant 0 : index
    %c128_237 = arith.constant 128 : index
    %347 = vector.load %arg15[%c0_236, %c128_237] : memref<16x512xf32, #tpu.memory_space<vmem>>, vector<8x256xf32>
    tpu.vector_store %arg15[%c0_236, %c128_237], %346 {strides = array<i32>} : memref<16x512xf32, #tpu.memory_space<vmem>>, vector<8x256xf32>,
    %c8_238 = arith.constant 8 : index
    %c128_239 = arith.constant 128 : index
    %348 = vector.load %arg15[%c8_238, %c128_239] : memref<16x512xf32, #tpu.memory_space<vmem>>, vector<8x256xf32>
    tpu.vector_store %arg15[%c8_238, %c128_239], %208 {strides = array<i32>} : memref<16x512xf32, #tpu.memory_space<vmem>>, vector<8x256xf32>,
    %cst_240 = arith.constant 0.000000e+00 : f32
    %349 = vector.broadcast %cst_240 : f32 to vector<8x256xf32>
    %c0_241 = arith.constant 0 : index
    %c111_242 = arith.constant 111 : index
    %350 = vector.load %arg15[%c0_241, %c111_242] : memref<16x512xf32, #tpu.memory_space<vmem>>, vector<16x256xf32>
    %c1_i32_243 = arith.constant 1 : i32
    %351 = vector.broadcast %c1_i32_243 : i32 to vector<1x256xi32>
    %352 = arith.cmpi sge, %6, %351 : vector<1x256xi32>
    %cst_244 = arith.constant 0.000000e+00 : f32
    %353 = vector.shape_cast %352 : vector<1x256xi1> to vector<1x256xi1>
    %354 = vector.broadcast %353 : vector<1x256xi1> to vector<16x256xi1>
    %355 = vector.broadcast %cst_244 : f32 to vector<16x256xf32>
    %356 = arith.select %354, %350, %355 : vector<16x256xi1>, vector<16x256xf32>
    %c0_245 = arith.constant 0 : index
    %c0_246 = arith.constant 0 : index
    %c0_247 = arith.constant 0 : index
    %357 = vector.load %arg5[%c0_245, %c0_246, %c0_247] : memref<9x8x16xbf16, #tpu.memory_space<vmem>>, vector<1x8x16xbf16>
    %358 = vector.shape_cast %357 : vector<1x8x16xbf16> to vector<8x16xbf16>
    %359 = arith.truncf %356 : vector<16x256xf32> to vector<16x256xbf16>
    %cst_248 = arith.constant dense<0.000000e+00> : vector<8x256xf32>
    %360 = tpu.matmul %358, %359, %cst_248 {dimension_numbers = #tpu.dot_dimension_numbers<[1], [0], [0], [1], [0, 0, 1, 1], [], []>} : vector<8x16xbf16>, vector<16x256xbf16>, vector<8x256xf32> -> vector<8x256xf32>
    %361 = arith.addf %349, %360 : vector<8x256xf32>
    %c0_249 = arith.constant 0 : index
    %c112_250 = arith.constant 112 : index
    %362 = vector.load %arg15[%c0_249, %c112_250] : memref<16x512xf32, #tpu.memory_space<vmem>>, vector<16x256xf32>
    %c1_251 = arith.constant 1 : index
    %c0_252 = arith.constant 0 : index
    %c0_253 = arith.constant 0 : index
    %363 = vector.load %arg5[%c1_251, %c0_252, %c0_253] : memref<9x8x16xbf16, #tpu.memory_space<vmem>>, vector<1x8x16xbf16>
    %364 = vector.shape_cast %363 : vector<1x8x16xbf16> to vector<8x16xbf16>
    %365 = arith.truncf %362 : vector<16x256xf32> to vector<16x256xbf16>
    %cst_254 = arith.constant dense<0.000000e+00> : vector<8x256xf32>
    %366 = tpu.matmul %364, %365, %cst_254 {dimension_numbers = #tpu.dot_dimension_numbers<[1], [0], [0], [1], [0, 0, 1, 1], [], []>} : vector<8x16xbf16>, vector<16x256xbf16>, vector<8x256xf32> -> vector<8x256xf32>
    %367 = arith.addf %361, %366 : vector<8x256xf32>
    %c0_255 = arith.constant 0 : index
    %c113_256 = arith.constant 113 : index
    %368 = vector.load %arg15[%c0_255, %c113_256] : memref<16x512xf32, #tpu.memory_space<vmem>>, vector<16x256xf32>
    %c14_i32_257 = arith.constant 14 : i32
    %369 = vector.broadcast %c14_i32_257 : i32 to vector<1x256xi32>
    %370 = arith.cmpi sle, %6, %369 : vector<1x256xi32>
    %cst_258 = arith.constant 0.000000e+00 : f32
    %371 = vector.shape_cast %370 : vector<1x256xi1> to vector<1x256xi1>
    %372 = vector.broadcast %371 : vector<1x256xi1> to vector<16x256xi1>
    %373 = vector.broadcast %cst_258 : f32 to vector<16x256xf32>
    %374 = arith.select %372, %368, %373 : vector<16x256xi1>, vector<16x256xf32>
    %c2_259 = arith.constant 2 : index
    %c0_260 = arith.constant 0 : index
    %c0_261 = arith.constant 0 : index
    %375 = vector.load %arg5[%c2_259, %c0_260, %c0_261] : memref<9x8x16xbf16, #tpu.memory_space<vmem>>, vector<1x8x16xbf16>
    %376 = vector.shape_cast %375 : vector<1x8x16xbf16> to vector<8x16xbf16>
    %377 = arith.truncf %374 : vector<16x256xf32> to vector<16x256xbf16>
    %cst_262 = arith.constant dense<0.000000e+00> : vector<8x256xf32>
    %378 = tpu.matmul %376, %377, %cst_262 {dimension_numbers = #tpu.dot_dimension_numbers<[1], [0], [0], [1], [0, 0, 1, 1], [], []>} : vector<8x16xbf16>, vector<16x256xbf16>, vector<8x256xf32> -> vector<8x256xf32>
    %379 = arith.addf %367, %378 : vector<8x256xf32>
    %c0_263 = arith.constant 0 : index
    %c127_264 = arith.constant 127 : index
    %380 = vector.load %arg15[%c0_263, %c127_264] : memref<16x512xf32, #tpu.memory_space<vmem>>, vector<16x256xf32>
    %c1_i32_265 = arith.constant 1 : i32
    %381 = vector.broadcast %c1_i32_265 : i32 to vector<1x256xi32>
    %382 = arith.cmpi sge, %6, %381 : vector<1x256xi32>
    %cst_266 = arith.constant 0.000000e+00 : f32
    %383 = vector.shape_cast %382 : vector<1x256xi1> to vector<1x256xi1>
    %384 = vector.broadcast %383 : vector<1x256xi1> to vector<16x256xi1>
    %385 = vector.broadcast %cst_266 : f32 to vector<16x256xf32>
    %386 = arith.select %384, %380, %385 : vector<16x256xi1>, vector<16x256xf32>
    %c3_267 = arith.constant 3 : index
    %c0_268 = arith.constant 0 : index
    %c0_269 = arith.constant 0 : index
    %387 = vector.load %arg5[%c3_267, %c0_268, %c0_269] : memref<9x8x16xbf16, #tpu.memory_space<vmem>>, vector<1x8x16xbf16>
    %388 = vector.shape_cast %387 : vector<1x8x16xbf16> to vector<8x16xbf16>
    %389 = arith.truncf %386 : vector<16x256xf32> to vector<16x256xbf16>
    %cst_270 = arith.constant dense<0.000000e+00> : vector<8x256xf32>
    %390 = tpu.matmul %388, %389, %cst_270 {dimension_numbers = #tpu.dot_dimension_numbers<[1], [0], [0], [1], [0, 0, 1, 1], [], []>} : vector<8x16xbf16>, vector<16x256xbf16>, vector<8x256xf32> -> vector<8x256xf32>
    %391 = arith.addf %379, %390 : vector<8x256xf32>
    %c0_271 = arith.constant 0 : index
    %c128_272 = arith.constant 128 : index
    %392 = vector.load %arg15[%c0_271, %c128_272] : memref<16x512xf32, #tpu.memory_space<vmem>>, vector<16x256xf32>
    %c4_273 = arith.constant 4 : index
    %c0_274 = arith.constant 0 : index
    %c0_275 = arith.constant 0 : index
    %393 = vector.load %arg5[%c4_273, %c0_274, %c0_275] : memref<9x8x16xbf16, #tpu.memory_space<vmem>>, vector<1x8x16xbf16>
    %394 = vector.shape_cast %393 : vector<1x8x16xbf16> to vector<8x16xbf16>
    %395 = arith.truncf %392 : vector<16x256xf32> to vector<16x256xbf16>
    %cst_276 = arith.constant dense<0.000000e+00> : vector<8x256xf32>
    %396 = tpu.matmul %394, %395, %cst_276 {dimension_numbers = #tpu.dot_dimension_numbers<[1], [0], [0], [1], [0, 0, 1, 1], [], []>} : vector<8x16xbf16>, vector<16x256xbf16>, vector<8x256xf32> -> vector<8x256xf32>
    %397 = arith.addf %391, %396 : vector<8x256xf32>
    %c0_277 = arith.constant 0 : index
    %c129_278 = arith.constant 129 : index
    %398 = vector.load %arg15[%c0_277, %c129_278] : memref<16x512xf32, #tpu.memory_space<vmem>>, vector<16x256xf32>
    %c14_i32_279 = arith.constant 14 : i32
    %399 = vector.broadcast %c14_i32_279 : i32 to vector<1x256xi32>
    %400 = arith.cmpi sle, %6, %399 : vector<1x256xi32>
    %cst_280 = arith.constant 0.000000e+00 : f32
    %401 = vector.shape_cast %400 : vector<1x256xi1> to vector<1x256xi1>
    %402 = vector.broadcast %401 : vector<1x256xi1> to vector<16x256xi1>
    %403 = vector.broadcast %cst_280 : f32 to vector<16x256xf32>
    %404 = arith.select %402, %398, %403 : vector<16x256xi1>, vector<16x256xf32>
    %c5_281 = arith.constant 5 : index
    %c0_282 = arith.constant 0 : index
    %c0_283 = arith.constant 0 : index
    %405 = vector.load %arg5[%c5_281, %c0_282, %c0_283] : memref<9x8x16xbf16, #tpu.memory_space<vmem>>, vector<1x8x16xbf16>
    %406 = vector.shape_cast %405 : vector<1x8x16xbf16> to vector<8x16xbf16>
    %407 = arith.truncf %404 : vector<16x256xf32> to vector<16x256xbf16>
    %cst_284 = arith.constant dense<0.000000e+00> : vector<8x256xf32>
    %408 = tpu.matmul %406, %407, %cst_284 {dimension_numbers = #tpu.dot_dimension_numbers<[1], [0], [0], [1], [0, 0, 1, 1], [], []>} : vector<8x16xbf16>, vector<16x256xbf16>, vector<8x256xf32> -> vector<8x256xf32>
    %409 = arith.addf %397, %408 : vector<8x256xf32>
    %c0_285 = arith.constant 0 : index
    %c143_286 = arith.constant 143 : index
    %410 = vector.load %arg15[%c0_285, %c143_286] : memref<16x512xf32, #tpu.memory_space<vmem>>, vector<16x256xf32>
    %c1_i32_287 = arith.constant 1 : i32
    %411 = vector.broadcast %c1_i32_287 : i32 to vector<1x256xi32>
    %412 = arith.cmpi sge, %6, %411 : vector<1x256xi32>
    %cst_288 = arith.constant 0.000000e+00 : f32
    %413 = vector.shape_cast %412 : vector<1x256xi1> to vector<1x256xi1>
    %414 = vector.broadcast %413 : vector<1x256xi1> to vector<16x256xi1>
    %415 = vector.broadcast %cst_288 : f32 to vector<16x256xf32>
    %416 = arith.select %414, %410, %415 : vector<16x256xi1>, vector<16x256xf32>
    %c6_289 = arith.constant 6 : index
    %c0_290 = arith.constant 0 : index
    %c0_291 = arith.constant 0 : index
    %417 = vector.load %arg5[%c6_289, %c0_290, %c0_291] : memref<9x8x16xbf16, #tpu.memory_space<vmem>>, vector<1x8x16xbf16>
    %418 = vector.shape_cast %417 : vector<1x8x16xbf16> to vector<8x16xbf16>
    %419 = arith.truncf %416 : vector<16x256xf32> to vector<16x256xbf16>
    %cst_292 = arith.constant dense<0.000000e+00> : vector<8x256xf32>
    %420 = tpu.matmul %418, %419, %cst_292 {dimension_numbers = #tpu.dot_dimension_numbers<[1], [0], [0], [1], [0, 0, 1, 1], [], []>} : vector<8x16xbf16>, vector<16x256xbf16>, vector<8x256xf32> -> vector<8x256xf32>
    %421 = arith.addf %409, %420 : vector<8x256xf32>
    %c0_293 = arith.constant 0 : index
    %c144_294 = arith.constant 144 : index
    %422 = vector.load %arg15[%c0_293, %c144_294] : memref<16x512xf32, #tpu.memory_space<vmem>>, vector<16x256xf32>
    %c7_295 = arith.constant 7 : index
    %c0_296 = arith.constant 0 : index
    %c0_297 = arith.constant 0 : index
    %423 = vector.load %arg5[%c7_295, %c0_296, %c0_297] : memref<9x8x16xbf16, #tpu.memory_space<vmem>>, vector<1x8x16xbf16>
    %424 = vector.shape_cast %423 : vector<1x8x16xbf16> to vector<8x16xbf16>
    %425 = arith.truncf %422 : vector<16x256xf32> to vector<16x256xbf16>
    %cst_298 = arith.constant dense<0.000000e+00> : vector<8x256xf32>
    %426 = tpu.matmul %424, %425, %cst_298 {dimension_numbers = #tpu.dot_dimension_numbers<[1], [0], [0], [1], [0, 0, 1, 1], [], []>} : vector<8x16xbf16>, vector<16x256xbf16>, vector<8x256xf32> -> vector<8x256xf32>
    %427 = arith.addf %421, %426 : vector<8x256xf32>
    %c0_299 = arith.constant 0 : index
    %c145_300 = arith.constant 145 : index
    %428 = vector.load %arg15[%c0_299, %c145_300] : memref<16x512xf32, #tpu.memory_space<vmem>>, vector<16x256xf32>
    %c14_i32_301 = arith.constant 14 : i32
    %429 = vector.broadcast %c14_i32_301 : i32 to vector<1x256xi32>
    %430 = arith.cmpi sle, %6, %429 : vector<1x256xi32>
    %cst_302 = arith.constant 0.000000e+00 : f32
    %431 = vector.shape_cast %430 : vector<1x256xi1> to vector<1x256xi1>
    %432 = vector.broadcast %431 : vector<1x256xi1> to vector<16x256xi1>
    %433 = vector.broadcast %cst_302 : f32 to vector<16x256xf32>
    %434 = arith.select %432, %428, %433 : vector<16x256xi1>, vector<16x256xf32>
    %c8_303 = arith.constant 8 : index
    %c0_304 = arith.constant 0 : index
    %c0_305 = arith.constant 0 : index
    %435 = vector.load %arg5[%c8_303, %c0_304, %c0_305] : memref<9x8x16xbf16, #tpu.memory_space<vmem>>, vector<1x8x16xbf16>
    %436 = vector.shape_cast %435 : vector<1x8x16xbf16> to vector<8x16xbf16>
    %437 = arith.truncf %434 : vector<16x256xf32> to vector<16x256xbf16>
    %cst_306 = arith.constant dense<0.000000e+00> : vector<8x256xf32>
    %438 = tpu.matmul %436, %437, %cst_306 {dimension_numbers = #tpu.dot_dimension_numbers<[1], [0], [0], [1], [0, 0, 1, 1], [], []>} : vector<8x16xbf16>, vector<16x256xbf16>, vector<8x256xf32> -> vector<8x256xf32>
    %439 = arith.addf %427, %438 : vector<8x256xf32>
    %c0_307 = arith.constant 0 : index
    %c0_308 = arith.constant 0 : index
    %440 = vector.load %arg10[%c0_307, %c0_308] : memref<8x1xf32, #tpu.memory_space<vmem>>, vector<8x1xf32>
    %441 = vector.broadcast %440 : vector<8x1xf32> to vector<8x256xf32>
    %442 = arith.addf %439, %441 : vector<8x256xf32>
    %cst_309 = arith.constant 0.000000e+00 : f32
    %443 = vector.broadcast %cst_309 : f32 to vector<8x256xf32>
    %444 = arith.maximumf %442, %443 : vector<8x256xf32>
    %c0_310 = arith.constant 0 : index
    %c128_311 = arith.constant 128 : index
    %445 = vector.load %arg15[%c0_310, %c128_311] : memref<16x512xf32, #tpu.memory_space<vmem>>, vector<8x256xf32>
    tpu.vector_store %arg15[%c0_310, %c128_311], %444 {strides = array<i32>} : memref<16x512xf32, #tpu.memory_space<vmem>>, vector<8x256xf32>,
    %cst_312 = arith.constant 0.000000e+00 : f32
    %446 = vector.broadcast %cst_312 : f32 to vector<4x256xf32>
    %c0_313 = arith.constant 0 : index
    %c111_314 = arith.constant 111 : index
    %447 = vector.load %arg15[%c0_313, %c111_314] : memref<16x512xf32, #tpu.memory_space<vmem>>, vector<8x256xf32>
    %c1_i32_315 = arith.constant 1 : i32
    %448 = vector.broadcast %c1_i32_315 : i32 to vector<1x256xi32>
    %449 = arith.cmpi sge, %6, %448 : vector<1x256xi32>
    %cst_316 = arith.constant 0.000000e+00 : f32
    %450 = vector.shape_cast %449 : vector<1x256xi1> to vector<1x256xi1>
    %451 = vector.broadcast %450 : vector<1x256xi1> to vector<8x256xi1>
    %452 = vector.broadcast %cst_316 : f32 to vector<8x256xf32>
    %453 = arith.select %451, %447, %452 : vector<8x256xi1>, vector<8x256xf32>
    %c0_317 = arith.constant 0 : index
    %c0_318 = arith.constant 0 : index
    %c0_319 = arith.constant 0 : index
    %454 = vector.load %arg6[%c0_317, %c0_318, %c0_319] : memref<9x4x8xbf16, #tpu.memory_space<vmem>>, vector<1x4x8xbf16>
    %455 = vector.shape_cast %454 : vector<1x4x8xbf16> to vector<4x8xbf16>
    %456 = arith.truncf %453 : vector<8x256xf32> to vector<8x256xbf16>
    %cst_320 = arith.constant dense<0.000000e+00> : vector<4x256xf32>
    %457 = tpu.matmul %455, %456, %cst_320 {dimension_numbers = #tpu.dot_dimension_numbers<[1], [0], [0], [1], [0, 0, 1, 1], [], []>} : vector<4x8xbf16>, vector<8x256xbf16>, vector<4x256xf32> -> vector<4x256xf32>
    %458 = arith.addf %446, %457 : vector<4x256xf32>
    %c0_321 = arith.constant 0 : index
    %c112_322 = arith.constant 112 : index
    %459 = vector.load %arg15[%c0_321, %c112_322] : memref<16x512xf32, #tpu.memory_space<vmem>>, vector<8x256xf32>
    %c1_323 = arith.constant 1 : index
    %c0_324 = arith.constant 0 : index
    %c0_325 = arith.constant 0 : index
    %460 = vector.load %arg6[%c1_323, %c0_324, %c0_325] : memref<9x4x8xbf16, #tpu.memory_space<vmem>>, vector<1x4x8xbf16>
    %461 = vector.shape_cast %460 : vector<1x4x8xbf16> to vector<4x8xbf16>
    %462 = arith.truncf %459 : vector<8x256xf32> to vector<8x256xbf16>
    %cst_326 = arith.constant dense<0.000000e+00> : vector<4x256xf32>
    %463 = tpu.matmul %461, %462, %cst_326 {dimension_numbers = #tpu.dot_dimension_numbers<[1], [0], [0], [1], [0, 0, 1, 1], [], []>} : vector<4x8xbf16>, vector<8x256xbf16>, vector<4x256xf32> -> vector<4x256xf32>
    %464 = arith.addf %458, %463 : vector<4x256xf32>
    %c0_327 = arith.constant 0 : index
    %c113_328 = arith.constant 113 : index
    %465 = vector.load %arg15[%c0_327, %c113_328] : memref<16x512xf32, #tpu.memory_space<vmem>>, vector<8x256xf32>
    %c14_i32_329 = arith.constant 14 : i32
    %466 = vector.broadcast %c14_i32_329 : i32 to vector<1x256xi32>
    %467 = arith.cmpi sle, %6, %466 : vector<1x256xi32>
    %cst_330 = arith.constant 0.000000e+00 : f32
    %468 = vector.shape_cast %467 : vector<1x256xi1> to vector<1x256xi1>
    %469 = vector.broadcast %468 : vector<1x256xi1> to vector<8x256xi1>
    %470 = vector.broadcast %cst_330 : f32 to vector<8x256xf32>
    %471 = arith.select %469, %465, %470 : vector<8x256xi1>, vector<8x256xf32>
    %c2_331 = arith.constant 2 : index
    %c0_332 = arith.constant 0 : index
    %c0_333 = arith.constant 0 : index
    %472 = vector.load %arg6[%c2_331, %c0_332, %c0_333] : memref<9x4x8xbf16, #tpu.memory_space<vmem>>, vector<1x4x8xbf16>
    %473 = vector.shape_cast %472 : vector<1x4x8xbf16> to vector<4x8xbf16>
    %474 = arith.truncf %471 : vector<8x256xf32> to vector<8x256xbf16>
    %cst_334 = arith.constant dense<0.000000e+00> : vector<4x256xf32>
    %475 = tpu.matmul %473, %474, %cst_334 {dimension_numbers = #tpu.dot_dimension_numbers<[1], [0], [0], [1], [0, 0, 1, 1], [], []>} : vector<4x8xbf16>, vector<8x256xbf16>, vector<4x256xf32> -> vector<4x256xf32>
    %476 = arith.addf %464, %475 : vector<4x256xf32>
    %c0_335 = arith.constant 0 : index
    %c127_336 = arith.constant 127 : index
    %477 = vector.load %arg15[%c0_335, %c127_336] : memref<16x512xf32, #tpu.memory_space<vmem>>, vector<8x256xf32>
    %c1_i32_337 = arith.constant 1 : i32
    %478 = vector.broadcast %c1_i32_337 : i32 to vector<1x256xi32>
    %479 = arith.cmpi sge, %6, %478 : vector<1x256xi32>
    %cst_338 = arith.constant 0.000000e+00 : f32
    %480 = vector.shape_cast %479 : vector<1x256xi1> to vector<1x256xi1>
    %481 = vector.broadcast %480 : vector<1x256xi1> to vector<8x256xi1>
    %482 = vector.broadcast %cst_338 : f32 to vector<8x256xf32>
    %483 = arith.select %481, %477, %482 : vector<8x256xi1>, vector<8x256xf32>
    %c3_339 = arith.constant 3 : index
    %c0_340 = arith.constant 0 : index
    %c0_341 = arith.constant 0 : index
    %484 = vector.load %arg6[%c3_339, %c0_340, %c0_341] : memref<9x4x8xbf16, #tpu.memory_space<vmem>>, vector<1x4x8xbf16>
    %485 = vector.shape_cast %484 : vector<1x4x8xbf16> to vector<4x8xbf16>
    %486 = arith.truncf %483 : vector<8x256xf32> to vector<8x256xbf16>
    %cst_342 = arith.constant dense<0.000000e+00> : vector<4x256xf32>
    %487 = tpu.matmul %485, %486, %cst_342 {dimension_numbers = #tpu.dot_dimension_numbers<[1], [0], [0], [1], [0, 0, 1, 1], [], []>} : vector<4x8xbf16>, vector<8x256xbf16>, vector<4x256xf32> -> vector<4x256xf32>
    %488 = arith.addf %476, %487 : vector<4x256xf32>
    %c0_343 = arith.constant 0 : index
    %c128_344 = arith.constant 128 : index
    %489 = vector.load %arg15[%c0_343, %c128_344] : memref<16x512xf32, #tpu.memory_space<vmem>>, vector<8x256xf32>
    %c4_345 = arith.constant 4 : index
    %c0_346 = arith.constant 0 : index
    %c0_347 = arith.constant 0 : index
    %490 = vector.load %arg6[%c4_345, %c0_346, %c0_347] : memref<9x4x8xbf16, #tpu.memory_space<vmem>>, vector<1x4x8xbf16>
    %491 = vector.shape_cast %490 : vector<1x4x8xbf16> to vector<4x8xbf16>
    %492 = arith.truncf %489 : vector<8x256xf32> to vector<8x256xbf16>
    %cst_348 = arith.constant dense<0.000000e+00> : vector<4x256xf32>
    %493 = tpu.matmul %491, %492, %cst_348 {dimension_numbers = #tpu.dot_dimension_numbers<[1], [0], [0], [1], [0, 0, 1, 1], [], []>} : vector<4x8xbf16>, vector<8x256xbf16>, vector<4x256xf32> -> vector<4x256xf32>
    %494 = arith.addf %488, %493 : vector<4x256xf32>
    %c0_349 = arith.constant 0 : index
    %c129_350 = arith.constant 129 : index
    %495 = vector.load %arg15[%c0_349, %c129_350] : memref<16x512xf32, #tpu.memory_space<vmem>>, vector<8x256xf32>
    %c14_i32_351 = arith.constant 14 : i32
    %496 = vector.broadcast %c14_i32_351 : i32 to vector<1x256xi32>
    %497 = arith.cmpi sle, %6, %496 : vector<1x256xi32>
    %cst_352 = arith.constant 0.000000e+00 : f32
    %498 = vector.shape_cast %497 : vector<1x256xi1> to vector<1x256xi1>
    %499 = vector.broadcast %498 : vector<1x256xi1> to vector<8x256xi1>
    %500 = vector.broadcast %cst_352 : f32 to vector<8x256xf32>
    %501 = arith.select %499, %495, %500 : vector<8x256xi1>, vector<8x256xf32>
    %c5_353 = arith.constant 5 : index
    %c0_354 = arith.constant 0 : index
    %c0_355 = arith.constant 0 : index
    %502 = vector.load %arg6[%c5_353, %c0_354, %c0_355] : memref<9x4x8xbf16, #tpu.memory_space<vmem>>, vector<1x4x8xbf16>
    %503 = vector.shape_cast %502 : vector<1x4x8xbf16> to vector<4x8xbf16>
    %504 = arith.truncf %501 : vector<8x256xf32> to vector<8x256xbf16>
    %cst_356 = arith.constant dense<0.000000e+00> : vector<4x256xf32>
    %505 = tpu.matmul %503, %504, %cst_356 {dimension_numbers = #tpu.dot_dimension_numbers<[1], [0], [0], [1], [0, 0, 1, 1], [], []>} : vector<4x8xbf16>, vector<8x256xbf16>, vector<4x256xf32> -> vector<4x256xf32>
    %506 = arith.addf %494, %505 : vector<4x256xf32>
    %c0_357 = arith.constant 0 : index
    %c143_358 = arith.constant 143 : index
    %507 = vector.load %arg15[%c0_357, %c143_358] : memref<16x512xf32, #tpu.memory_space<vmem>>, vector<8x256xf32>
    %c1_i32_359 = arith.constant 1 : i32
    %508 = vector.broadcast %c1_i32_359 : i32 to vector<1x256xi32>
    %509 = arith.cmpi sge, %6, %508 : vector<1x256xi32>
    %cst_360 = arith.constant 0.000000e+00 : f32
    %510 = vector.shape_cast %509 : vector<1x256xi1> to vector<1x256xi1>
    %511 = vector.broadcast %510 : vector<1x256xi1> to vector<8x256xi1>
    %512 = vector.broadcast %cst_360 : f32 to vector<8x256xf32>
    %513 = arith.select %511, %507, %512 : vector<8x256xi1>, vector<8x256xf32>
    %c6_361 = arith.constant 6 : index
    %c0_362 = arith.constant 0 : index
    %c0_363 = arith.constant 0 : index
    %514 = vector.load %arg6[%c6_361, %c0_362, %c0_363] : memref<9x4x8xbf16, #tpu.memory_space<vmem>>, vector<1x4x8xbf16>
    %515 = vector.shape_cast %514 : vector<1x4x8xbf16> to vector<4x8xbf16>
    %516 = arith.truncf %513 : vector<8x256xf32> to vector<8x256xbf16>
    %cst_364 = arith.constant dense<0.000000e+00> : vector<4x256xf32>
    %517 = tpu.matmul %515, %516, %cst_364 {dimension_numbers = #tpu.dot_dimension_numbers<[1], [0], [0], [1], [0, 0, 1, 1], [], []>} : vector<4x8xbf16>, vector<8x256xbf16>, vector<4x256xf32> -> vector<4x256xf32>
    %518 = arith.addf %506, %517 : vector<4x256xf32>
    %c0_365 = arith.constant 0 : index
    %c144_366 = arith.constant 144 : index
    %519 = vector.load %arg15[%c0_365, %c144_366] : memref<16x512xf32, #tpu.memory_space<vmem>>, vector<8x256xf32>
    %c7_367 = arith.constant 7 : index
    %c0_368 = arith.constant 0 : index
    %c0_369 = arith.constant 0 : index
    %520 = vector.load %arg6[%c7_367, %c0_368, %c0_369] : memref<9x4x8xbf16, #tpu.memory_space<vmem>>, vector<1x4x8xbf16>
    %521 = vector.shape_cast %520 : vector<1x4x8xbf16> to vector<4x8xbf16>
    %522 = arith.truncf %519 : vector<8x256xf32> to vector<8x256xbf16>
    %cst_370 = arith.constant dense<0.000000e+00> : vector<4x256xf32>
    %523 = tpu.matmul %521, %522, %cst_370 {dimension_numbers = #tpu.dot_dimension_numbers<[1], [0], [0], [1], [0, 0, 1, 1], [], []>} : vector<4x8xbf16>, vector<8x256xbf16>, vector<4x256xf32> -> vector<4x256xf32>
    %524 = arith.addf %518, %523 : vector<4x256xf32>
    %c0_371 = arith.constant 0 : index
    %c145_372 = arith.constant 145 : index
    %525 = vector.load %arg15[%c0_371, %c145_372] : memref<16x512xf32, #tpu.memory_space<vmem>>, vector<8x256xf32>
    %c14_i32_373 = arith.constant 14 : i32
    %526 = vector.broadcast %c14_i32_373 : i32 to vector<1x256xi32>
    %527 = arith.cmpi sle, %6, %526 : vector<1x256xi32>
    %cst_374 = arith.constant 0.000000e+00 : f32
    %528 = vector.shape_cast %527 : vector<1x256xi1> to vector<1x256xi1>
    %529 = vector.broadcast %528 : vector<1x256xi1> to vector<8x256xi1>
    %530 = vector.broadcast %cst_374 : f32 to vector<8x256xf32>
    %531 = arith.select %529, %525, %530 : vector<8x256xi1>, vector<8x256xf32>
    %c8_375 = arith.constant 8 : index
    %c0_376 = arith.constant 0 : index
    %c0_377 = arith.constant 0 : index
    %532 = vector.load %arg6[%c8_375, %c0_376, %c0_377] : memref<9x4x8xbf16, #tpu.memory_space<vmem>>, vector<1x4x8xbf16>
    %533 = vector.shape_cast %532 : vector<1x4x8xbf16> to vector<4x8xbf16>
    %534 = arith.truncf %531 : vector<8x256xf32> to vector<8x256xbf16>
    %cst_378 = arith.constant dense<0.000000e+00> : vector<4x256xf32>
    %535 = tpu.matmul %533, %534, %cst_378 {dimension_numbers = #tpu.dot_dimension_numbers<[1], [0], [0], [1], [0, 0, 1, 1], [], []>} : vector<4x8xbf16>, vector<8x256xbf16>, vector<4x256xf32> -> vector<4x256xf32>
    %536 = arith.addf %524, %535 : vector<4x256xf32>
    %c0_379 = arith.constant 0 : index
    %c0_380 = arith.constant 0 : index
    %537 = vector.load %arg11[%c0_379, %c0_380] : memref<4x1xf32, #tpu.memory_space<vmem>>, vector<4x1xf32>
    %538 = vector.broadcast %537 : vector<4x1xf32> to vector<4x256xf32>
    %539 = arith.addf %536, %538 : vector<4x256xf32>
    %cst_381 = arith.constant 0.000000e+00 : f32
    %540 = vector.broadcast %cst_381 : f32 to vector<4x256xf32>
    %541 = arith.maximumf %539, %540 : vector<4x256xf32>
    %c0_382 = arith.constant 0 : index
    %c0_383 = arith.constant 0 : index
    %c0_384 = arith.constant 0 : index
    %542 = vector.load %arg14[%c0_382, %c0_383, %c0_384] : memref<1x4x256xf32, #tpu.memory_space<vmem>>, vector<1x4x256xf32>
    %543 = vector.shape_cast %542 : vector<1x4x256xf32> to vector<4x256xf32>
    %544 = vector.shape_cast %541 : vector<4x256xf32> to vector<1x4x256xf32>
    tpu.vector_store %arg14[%c0_382, %c0_383, %c0_384], %544 {strides = array<i32>} : memref<1x4x256xf32, #tpu.memory_space<vmem>>, vector<1x4x256xf32>,
    return
  }
  func.func @transform_0(%arg0: i32) -> (i32, i32, i32) {
    %c0_i32 = arith.constant 0 : i32
    %c0_i32_0 = arith.constant 0 : i32
    %c0_i32_1 = arith.constant 0 : i32
    return %arg0, %c0_i32, %c0_i32_0 : i32, i32, i32
  }
  func.func @transform_1(%arg0: i32) -> (i32, i32, i32) {
    %c0_i32 = arith.constant 0 : i32
    %c0_i32_0 = arith.constant 0 : i32
    %c0_i32_1 = arith.constant 0 : i32
    %c0_i32_2 = arith.constant 0 : i32
    return %c0_i32, %c0_i32_0, %c0_i32_1 : i32, i32, i32
  }
  func.func @transform_2(%arg0: i32) -> (i32, i32, i32) {
    %c0_i32 = arith.constant 0 : i32
    %c0_i32_0 = arith.constant 0 : i32
    %c0_i32_1 = arith.constant 0 : i32
    %c0_i32_2 = arith.constant 0 : i32
    return %c0_i32, %c0_i32_0, %c0_i32_1 : i32, i32, i32
  }
  func.func @transform_3(%arg0: i32) -> (i32, i32, i32) {
    %c0_i32 = arith.constant 0 : i32
    %c0_i32_0 = arith.constant 0 : i32
    %c0_i32_1 = arith.constant 0 : i32
    %c0_i32_2 = arith.constant 0 : i32
    return %c0_i32, %c0_i32_0, %c0_i32_1 : i32, i32, i32
  }
  func.func @transform_4(%arg0: i32) -> (i32, i32, i32) {
    %c0_i32 = arith.constant 0 : i32
    %c0_i32_0 = arith.constant 0 : i32
    %c0_i32_1 = arith.constant 0 : i32
    %c0_i32_2 = arith.constant 0 : i32
    return %c0_i32, %c0_i32_0, %c0_i32_1 : i32, i32, i32
  }
  func.func @transform_5(%arg0: i32) -> (i32, i32, i32) {
    %c0_i32 = arith.constant 0 : i32
    %c0_i32_0 = arith.constant 0 : i32
    %c0_i32_1 = arith.constant 0 : i32
    %c0_i32_2 = arith.constant 0 : i32
    return %c0_i32, %c0_i32_0, %c0_i32_1 : i32, i32, i32
  }
  func.func @transform_6(%arg0: i32) -> (i32, i32) {
    %c0_i32 = arith.constant 0 : i32
    %c0_i32_0 = arith.constant 0 : i32
    %c0_i32_1 = arith.constant 0 : i32
    return %c0_i32, %c0_i32_0 : i32, i32
  }
  func.func @transform_7(%arg0: i32) -> (i32, i32) {
    %c0_i32 = arith.constant 0 : i32
    %c0_i32_0 = arith.constant 0 : i32
    %c0_i32_1 = arith.constant 0 : i32
    return %c0_i32, %c0_i32_0 : i32, i32
  }
  func.func @transform_8(%arg0: i32) -> (i32, i32) {
    %c0_i32 = arith.constant 0 : i32
    %c0_i32_0 = arith.constant 0 : i32
    %c0_i32_1 = arith.constant 0 : i32
    return %c0_i32, %c0_i32_0 : i32, i32
  }
  func.func @transform_9(%arg0: i32) -> (i32, i32) {
    %c0_i32 = arith.constant 0 : i32
    %c0_i32_0 = arith.constant 0 : i32
    %c0_i32_1 = arith.constant 0 : i32
    return %c0_i32, %c0_i32_0 : i32, i32
  }
  func.func @transform_10(%arg0: i32) -> (i32, i32) {
    %c0_i32 = arith.constant 0 : i32
    %c0_i32_0 = arith.constant 0 : i32
    %c0_i32_1 = arith.constant 0 : i32
    return %c0_i32, %c0_i32_0 : i32, i32
  }
  func.func @transform_11(%arg0: i32) -> (i32, i32, i32) {
    %c0_i32 = arith.constant 0 : i32
    %c0_i32_0 = arith.constant 0 : i32
    %c0_i32_1 = arith.constant 0 : i32
    %c0_i32_2 = arith.constant 0 : i32
    return %c0_i32, %c0_i32_0, %c0_i32_1 : i32, i32, i32
  }
  func.func @transform_12(%arg0: i32) -> (i32, i32) {
    %c0_i32 = arith.constant 0 : i32
    %c0_i32_0 = arith.constant 0 : i32
    %c0_i32_1 = arith.constant 0 : i32
    return %c0_i32, %c0_i32_0 : i32, i32
  }
  func.func @transform_13(%arg0: i32) -> (i32, i32, i32) {
    %c0_i32 = arith.constant 0 : i32
    %c0_i32_0 = arith.constant 0 : i32
    %c0_i32_1 = arith.constant 0 : i32
    return %arg0, %c0_i32, %c0_i32_0 : i32, i32, i32
  }
}

</mosaic_0001>

<bundles_post_ra>
// kernel: ublock_forward.1
= control target key start
LH: loop header
LB: loop body
LE: loop exit
PB: predicated region body
PF: predicated region fallthrough
CT: control target
= control target key end

     0   :  { %s4648_s25 = smov 0   ;;  %s5491_s0 = inlined_call_operand.vmem [shape: f32[2,4,256], index: 0, kind: input, shape index: {}]   ;;  %s5492_s1 = inlined_call_operand.vmem [shape: bf16[9,8,8], index: 1, kind: input, shape index: {}]   ;;  %s5493_s2 = inlined_call_operand.vmem [shape: bf16[9,8,8], index: 2, kind: input, shape index: {}]   ;;  %s5494_s3 = inlined_call_operand.vmem [shape: bf16[9,16,8], index: 3, kind: input, shape index: {}]   ;;  %s5495_s4 = inlined_call_operand.vmem [shape: bf16[9,8,16], index: 4, kind: input, shape index: {}]   ;;  %s5496_s5 = inlined_call_operand.vmem [shape: bf16[9,4,8], index: 5, kind: input, shape index: {}]   ;;  %s5497_s6 = inlined_call_operand.vmem [shape: f32[8,1], index: 6, kind: input, shape index: {}]   ;;  %s5498_s7 = inlined_call_operand.vmem [shape: f32[8,1], index: 7, kind: input, shape index: {}]   ;;  %s5499_s8 = inlined_call_operand.vmem [shape: f32[16,1], index: 8, kind: input, shape index: {}]   ;;  %s5500_s9 = inlined_call_operand.vmem [shape: f32[8,1], index: 9, kind: input, shape index: {}]   ;;  %s5501_s10 = inlined_call_operand.vmem [shape: f32[4,1], index: 10, kind: input, shape index: {}]   ;;  %s5502_s11 = inlined_call_operand.vmem [shape: bf16[4,8,16], index: 11, kind: input, shape index: {}]   ;;  %s5503_s12 = inlined_call_operand.vmem [shape: f32[8,1], index: 12, kind: input, shape index: {}]   ;;  %s5504_s13 = inlined_call_operand.vmem [shape: f32[2,4,256], index: 13, kind: output, shape index: {}]  }
   0x1 LB: > { %s4070_s26 = sadd.s32 4294967295, %s4557_s25   ;;  %p4074_p0 = scmp.ge.s32.totalorder %s4557_s25, 1  ;;  %s4557_s25 = sphi %s4648_s25, %s23_s25  }
   0x2   : > { %p387_p1 = scmp.lt.s32.totalorder %s4557_s25, 3 }
   0x4   : > { %p388_p2 = pnand %p4074_p0, %p387_p1 }
   0x5   : > { %p431_p3 = scmp.lt.s32.totalorder (!%p388_p2), %s4070_s26, 1  ;;  %v4559_v0 = vmov (!%p388_p2), 0.0   ;;  %v4560_v1 = vmov (!%p388_p2), 0.0|0.0   ;;  %s4561_s27 = smov (!%p388_p2), 16   ;;  %v4562_v4 = vmov (!%p388_p2), 0   ;;  %v1090_v11 = vld [vmem:[%s5497_s6] sm:$0xff] (!%p388_p2)  ;;  %v446_v12 = vlaneseq (!%p388_p2) }
   0x6   : > { %391 = sbr.rel (%p388_p2) target bundleno = 2597 (0xa25), region = 72  ;;  %442 = vst [vmem:[#allocation2] sm:$0xff] (!%p388_p2), %v4559_v0  ;;  %461 = vst [vmem:[#allocation2 + $0x8] sm:$0xf0] (!%p388_p2), %v4559_v0  ;;  %499 = vrot.lane.b32.xlu0 (!%p388_p2), %v4560_v1, %s4561_s27  ;;  %551 = vmatprep.mubr.bf16.mxu0 (!%p388_p2), %v4562_v4  ;;  %s4563_s15 = smov (!%p388_p2), 17   ;;  %vm505_vm0 = vcmask (!%p388_p2), 130048  }
   0x7   : > { %462 = vst [vmem:[#allocation2 + $0x10] sm:$0xf0] (!%p388_p2), %v4559_v0  ;;  %601 = vmatprep.mubr.bf16.mxu1 (!%p388_p2), %v4562_v4  ;;  %4352 = vset.pattern.permute.xlu0 (!%p388_p2), %v4562_v4  ;;  %s4564_s16 = smov (!%p388_p2), 15   ;;  %s4565_s17 = smov (!%p388_p2), 1   ;;  %v4708_v14 = vand.u32 (!%p388_p2), 127, %v446_v12  ;;  %vm512_vm1 = vcmask (!%p388_p2), 1043456  }
   0x8   : > { %4413 = vset.pattern.permute.xlu1 (!%p388_p2), %v4562_v4  ;;  %s4566_s18 = smov (!%p388_p2), 127   ;;  %s4567_s19 = smov (!%p388_p2), 113   ;;  %v4079_v24 = vld [vmem:[%s5492_s1 + $0x4] sm:$0xf] (!%p388_p2)  ;;  %vm508_vm2 = vcmask (!%p388_p2), 64512   ;;  %vm481_vm3 = vcmask (!%p388_p2), 138240  }
   0x9   : > { %s4568_s20 = smov (!%p388_p2), 111   ;;  %s4569_s21 = smov (!%p388_p2), 112   ;;  %v4711_v15 = vadd.s32 (!%p388_p2), 128, %v4708_v14  ;;  %v4719_v21 = vand.u32 (!%p388_p2), 15, %v4708_v14  ;;  %vm622_vm7 = vcmask (!%p388_p2), 121856   ;;  %vm5509_vm9 = vcmask (!%p388_p2), 7168  }
   0xa   : > { %v488_v44 = vld [vmem:[%s5492_s1] sm:$0xf] (!%p388_p2)  ;;  %vm5508_vm10 = vcmask (!%p388_p2), 1039360   ;;  %v4084_v56 = vld [vmem:[%s5492_s1 + $0x8] sm:$0xf] (!%p388_p2)  ;;  %vm5507_vm11 = vcmask (!%p388_p2), 924672  }
   0xb   : > { %v4716_v20 = vand.u32 (!%p388_p2), 15, %v4711_v15  ;;  %vm466_vm5 = vcmp.ge.s32.totalorder (!%p388_p2), %v4719_v21, 1  ;;  %vm5510_vm8 = vcmp.le.s32.totalorder (!%p388_p2), %v4719_v21, 14  ;;  %vm5505_vm12 = vcmask (!%p388_p2), 908288   ;;  %s4570_s30 = smov (!%p388_p2), 32   ;;  %s4572_s22 = smov (!%p388_p2), 30  }
   0xc   : > { %vm5506_vm13 = vcmask (!%p388_p2), 916480   ;;  %s4573_s23 = smov (!%p388_p2), 2   ;;  %s4574_s24 = smov (!%p388_p2), 126   ;;  %vm1806_vm14 = vcmask (!%p388_p2), 261120   ;;  %vm1775_vm15 = vcmask (!%p388_p2), 277504  }
   0xd   : > { %s5551_s26 = smov (!%p431_p3, %s4070_s26), 1  ;;  %vm467_vm4 = vcmp.ge.s32.totalorder %v4716_v20, 1  ;;  %vm611_vm6 = vcmp.le.s32.totalorder %v4716_v20, 14  ;;  %s4575_s29 = smov 98  }
   0xe   : > { %s4262_s28 = sshll.u32 %s5551_s26, 3 }
   0xf   : > { %s435_s14 = scalar_lea.vmem %s5491_s0, %s4262_s28 }
  0x10   : > { %v455_v2 = vld [vmem:[%s435_s14] sm:$0xff]  ;;  %s4571_s14 = smov 34  }
  0x11   : > { %459 = vst [vmem:[#allocation2 + $0x8] sm:$0xf] %v455_v2  ;;  %v457_v3 = vcombine.high %v455_v2, %v455_v2 }
  0x13   : > { %460 = vst [vmem:[#allocation2 + $0x10] sm:$0xf] %v457_v3 }
  0x18   : > { %v464_v5 = vld [vmem:[#allocation2 + $0x8] sm:$0xff] }
  0x19   : > { %v4673_v6 = vpack.c.bf16 %v464_v5, %v464_v5  ;;  %v4322_v9 = vpack.i.bf16 %v464_v5, %v4559_v0 }
  0x1a   : > { %v465_v7 = vld [vmem:[#allocation2 + $0x10] sm:$0xff] }
  0x1b   : > { %501 = vrot.lane.b32.xlu0 %v4673_v6, %s4561_s27  ;;  %v4677_v8 = vpack.c.bf16 %v465_v7, %v465_v7  ;;  %v4337_v10 = vpack.i.bf16 %v465_v7, %v464_v5  ;;  %v760_v58 = vsel %vm512_vm1, %v4673_v6, 0 }
  0x1d   : > { %503 = vrot.lane.b32.xlu1 %v4677_v8, %s4561_s27 }
  0x1f   : > { %479 = vrot.lane.b32.xlu0 %v465_v7, %s4563_s15 }
  0x21   : > { %4323 = vrot.lane.b32.xlu1 %v4322_v9, %s4563_s15 }
  0x23   : > { %620 = vrot.lane.b32.xlu0 %v465_v7, %s4564_s16 }
  0x25   : > { %4328 = vrot.lane.b32.xlu1 %v4322_v9, %s4564_s16 }
  0x27   : > { %689 = vrot.lane.b32.xlu0 %v465_v7, %s4565_s17 }
  0x29   : > { %4333 = vrot.lane.b32.xlu1 %v4322_v9, %s4565_s17 }
  0x2b   : > { %818 = vrot.lane.b32.xlu0 %v4559_v0, %s4566_s18 }
  0x2d   : > { %4338 = vrot.lane.b32.xlu1 %v4337_v10, %s4566_s18 }
  0x2f   : > { %887 = vrot.lane.b32.xlu0 %v4559_v0, %s4567_s19 }
  0x31   : > { %4343 = vrot.lane.b32.xlu1 %v4337_v10, %s4567_s19 }
  0x33   : > { %1025 = vrot.lane.b32.xlu0 %v4559_v0, %s4568_s20 }
  0x35   : > { %4348 = vrot.lane.b32.xlu1 %v4337_v10, %s4568_s20 }
  0x37   : > { %962 = vrot.lane.b32.xlu0 %v4677_v8, %s4569_s21 }
  0x39   : > { %960 = vrot.lane.b32.xlu1 %v4673_v6, %s4569_s21 }
  0x3b   : > { %1093 = vperm.xlu0 %4352, %v1090_v11  }
  0x3d   : > { %964 = vrot.lane.b32.xlu1 %v4560_v1, %s4569_s21 }
  0x41   : > { %1131 = vrot.lane.b32.xlu1 %v4560_v1, %s4561_s27 }
  0x78   : > { %v500_v13 = vpop.permute.xlu0 %499 }
  0x8d   : > { %v502_v16 = vpop.permute.xlu0 %501 }
  0x8e   : > { %v506_v17 = vsel %vm505_vm0, %v500_v13, %v502_v16 }
  0x8f   : > { %v504_v18 = vpop.permute.xlu1 %503  ;;  %v514_v22 = vsel %vm512_vm1, %v506_v17, 0 }
  0x90   : > { %v507_v19 = vsel %vm505_vm0, %v502_v16, %v504_v18 }
  0x91   : > { %4080 = vmatprep.subr.msk.bf16.mxu0 %vm512_vm1, %v507_v19  ;;  %v480_v23 = vpop.permute.xlu0 %479 }
  0x92   : > { %520 = vmatpush1.bf16.msra.mxu0 %v514_v22 }
  0x93   : > { %v4324_v25 = vpop.permute.xlu1 %4323 }
  0x94   : > { %v4326_v26 = vunpack.i.h.bf16 %v4324_v25  ;;  %v4325_v27 = vunpack.i.l.bf16 %v4324_v25 }
  0x95   : > { %4081 = vmatmul.mubr.msk.bf16.vlgmr.msra.gmra.mrb[0].mxu0 %vm508_vm2, %v4079_v24  ;;  %v621_v28 = vpop.permute.xlu0 %620  ;;  %v4090_v24 = vld [vmem:[%s5492_s1 + $0x10] sm:$0xf] }
  0x96   : > { %v483_v29 = vsel %vm481_vm3, %v4326_v26, %v480_v23  ;;  %v482_v30 = vsel %vm481_vm3, %v4325_v27, %v4326_v26  ;;  %674 = vmatprep.mubr.bf16.mxu0 %v4562_v4 }
  0x97   : > { %v4329_v31 = vpop.permute.xlu1 %4328  ;;  %v487_v32 = vsel %vm467_vm4, %v483_v29, 0.0  ;;  %v486_v33 = vsel %vm466_vm5, %v482_v30, 0.0 }
  0x98   : > { %v4331_v34 = vunpack.i.h.bf16 %v4329_v31  ;;  %v4330_v35 = vunpack.i.l.bf16 %v4329_v31  ;;  %v490_v36 = vpack.c.bf16 %v487_v32, %v487_v32  ;;  %v489_v37 = vpack.c.bf16 %v486_v33, %v486_v33 }
  0x99   : > { %v690_v38 = vpop.permute.xlu0 %689 }
  0x9a   : > { %v624_v39 = vsel %vm622_vm7, %v4331_v34, %v621_v28  ;;  %4082 = vmatprep.subr.msk.bf16.mxu1 %vm512_vm1, %v490_v36  ;;  %v564_v40 = vsel %vm512_vm1, %v489_v37, 0  ;;  %v623_v41 = vsel %vm622_vm7, %v4330_v35, %v4331_v34  ;;  %v4093_v36 = vld [vmem:[%s5492_s1 + $0x14] sm:$0xf] }
  0x9b   : > { %v628_v42 = vsel %vm611_vm6, %v624_v39, 0.0  ;;  %v4334_v43 = vpop.permute.xlu1 %4333  ;;  %570 = vmatpush1.bf16.msra.mxu1 %v564_v40  ;;  %v627_v45 = vsel %vm5510_vm8, %v623_v41, 0.0 }
  0x9c   : > { %v632_v46 = vpack.c.bf16 %v628_v42, %v628_v42  ;;  %v4336_v47 = vunpack.i.h.bf16 %v4334_v43  ;;  %v4335_v48 = vunpack.i.l.bf16 %v4334_v43  ;;  %v631_v49 = vpack.c.bf16 %v627_v45, %v627_v45  ;;  %v4096_v42 = vld [vmem:[%s5492_s1 + $0x18] sm:$0xf] }
  0x9d   : > { %v819_v50 = vpop.permute.xlu0 %818 }
  0x9e   : > { %v693_v51 = vsel %vm5509_vm9, %v4336_v47, %v690_v38  ;;  %4083 = vmatmul.mubr.msk.bf16.vlgmr.msra.gmra.mrb[0].mxu1 %vm508_vm2, %v488_v44  ;;  %4085 = vmatprep.subr.msk.bf16.mxu0 %vm512_vm1, %v632_v46  ;;  %v637_v52 = vsel %vm512_vm1, %v631_v49, 0  ;;  %v692_v53 = vsel %vm5509_vm9, %v4335_v48, %v4336_v47  ;;  %v4099_v46 = vld [vmem:[%s5492_s1 + $0x1c] sm:$0xf]  ;;  %v4102_v47 = vld [vmem:[%s5492_s1 + $0x20] sm:$0xf] }
  0x9f   : > { %v697_v54 = vsel %vm467_vm4, %v693_v51, 0.0  ;;  %v4339_v55 = vpop.permute.xlu1 %4338  ;;  %643 = vmatpush1.bf16.msra.mxu0 %v637_v52  ;;  %v696_v57 = vsel %vm466_vm5, %v692_v53, 0.0  ;;  %743 = vmatprep.mubr.bf16.mxu1 %v4562_v4 }
  0xa0   : > { %v701_v59 = vpack.c.bf16 %v697_v54, %v697_v54  ;;  %v4341_v60 = vunpack.i.h.bf16 %v4339_v55  ;;  %v4340_v61 = vunpack.i.l.bf16 %v4339_v55  ;;  %v700_v62 = vpack.c.bf16 %v696_v57, %v696_v57  ;;  %4091 = vmatprep.subr.msk.bf16.mxu0 %vm512_vm1, %v4677_v8  ;;  %v4087_v8 = vld [vmem:[%s5492_s1 + $0xc] sm:$0xf] }
  0xa1   : > { %v888_v63 = vpop.permute.xlu0 %887 }
  0xa2   : > { %v822_v2 = vsel %vm5508_vm10, %v4341_v60, %v819_v50  ;;  %4086 = vmatmul.mubr.msk.bf16.vlgmr.msra.gmra.mrb[4].mxu0 %vm508_vm2, %v4084_v56  ;;  %4088 = vmatprep.subr.msk.bf16.mxu1 %vm512_vm1, %v701_v59  ;;  %v706_v3 = vsel %vm512_vm1, %v700_v62, 0  ;;  %v821_v5 = vsel %vm5508_vm10, %v4340_v61, %v4341_v60 }
  0xa3   : > { %v826_v6 = vsel %vm611_vm6, %v822_v2, 0.0  ;;  %v4344_v7 = vpop.permute.xlu1 %4343  ;;  %712 = vmatpush1.bf16.msra.mxu1 %v706_v3  ;;  %766 = vmatpush1.bf16.msra.mxu0 %v760_v58  ;;  %v825_v9 = vsel %vm5510_vm8, %v821_v5, 0.0 }
  0xa4   : > { %v830_v10 = vpack.c.bf16 %v826_v6, %v826_v6  ;;  %v4346_v11 = vunpack.i.h.bf16 %v4344_v7  ;;  %v4345_v12 = vunpack.i.l.bf16 %v4344_v7  ;;  %797 = vmatprep.mubr.bf16.mxu0 %v4562_v4  ;;  %v829_v13 = vpack.c.bf16 %v825_v9, %v825_v9 }
  0xa5   : > { %v1026_v16 = vpop.permute.xlu0 %1025 }
  0xa6   : > { %v891_v17 = vsel %vm5507_vm11, %v4346_v11, %v888_v63  ;;  %4089 = vmatmul.mubr.msk.bf16.vlgmr.msra.gmra.mrb[4].mxu1 %vm508_vm2, %v4087_v8  ;;  %4094 = vmatprep.subr.msk.bf16.mxu1 %vm512_vm1, %v830_v10  ;;  %v835_v18 = vsel %vm512_vm1, %v829_v13, 0  ;;  %v890_v19 = vsel %vm5507_vm11, %v4345_v12, %v4346_v11 }
  0xa7   : > { %v895_v22 = vsel %vm467_vm4, %v891_v17, 0.0  ;;  %v4349_v23 = vpop.permute.xlu1 %4348  ;;  %841 = vmatpush1.bf16.msra.mxu1 %v835_v18  ;;  %872 = vmatprep.mubr.bf16.mxu1 %v4562_v4  ;;  %v894_v25 = vsel %vm466_vm5, %v890_v19, 0.0 }
  0xa8   : > { %v899_v26 = vpack.c.bf16 %v895_v22, %v895_v22  ;;  %v4351_v27 = vunpack.i.h.bf16 %v4349_v23  ;;  %v4350_v28 = vunpack.i.l.bf16 %v4349_v23  ;;  %v898_v29 = vpack.c.bf16 %v894_v25, %v894_v25 }
  0xa9   : > { %v963_v30 = vpop.permute.xlu0 %962 }
  0xaa   : > { %v1029_v31 = vsel %vm5505_vm12, %v4351_v27, %v1026_v16  ;;  %4092 = vmatmul.mubr.msk.bf16.vlgmr.msra.gmra.mrb[8].mxu0 %vm508_vm2, %v4090_v24  ;;  %4097 = vmatprep.subr.msk.bf16.mxu0 %vm512_vm1, %v899_v26  ;;  %v904_v32 = vsel %vm512_vm1, %v898_v29, 0  ;;  %v1028_v33 = vsel %vm5505_vm12, %v4350_v28, %v4351_v27 }
  0xab   : > { %v1033_v34 = vsel %vm611_vm6, %v1029_v31, 0.0  ;;  %v961_v35 = vpop.permute.xlu1 %960  ;;  %910 = vmatpush1.bf16.msra.mxu0 %v904_v32  ;;  %941 = vmatprep.mubr.bf16.mxu0 %v4562_v4  ;;  %v1032_v37 = vsel %vm5510_vm8, %v1028_v33, 0.0 }
  0xac   : > { %v1037_v38 = vpack.c.bf16 %v1033_v34, %v1033_v34  ;;  %v967_v39 = vsel %vm5506_vm13, %v961_v35, %v963_v30  ;;  %v1036_v40 = vpack.c.bf16 %v1032_v37, %v1032_v37 }
  0xad   : > { %v973_v43 = vsel %vm512_vm1, %v967_v39, 0 }
  0xae   : > { %4095 = vmatmul.mubr.msk.bf16.vlgmr.msra.gmra.mrb[8].mxu1 %vm508_vm2, %v4093_v36  ;;  %4103 = vmatprep.subr.msk.bf16.mxu0 %vm512_vm1, %v1037_v38  ;;  %v1042_v45 = vsel %vm512_vm1, %v1036_v40, 0 }
  0xaf   : > { %v965_v41 = vpop.permute.xlu1 %964  ;;  %1010 = vmatprep.mubr.bf16.mxu1 %v4562_v4 }
  0xb0   : > { %v968_v44 = vsel %vm5506_vm13, %v963_v30, %v965_v41 }
  0xb1   : > { %4100 = vmatprep.subr.msk.bf16.mxu1 %vm512_vm1, %v968_v44 }
  0xb2   : > { %4098 = vmatmul.mubr.msk.bf16.vlgmr.msra.gmra.mrb[12].mxu0 %vm508_vm2, %v4096_v42  ;;  %979 = vmatpush1.bf16.msra.mxu1 %v973_v43 }
  0xb3   : > { %1048 = vmatpush1.bf16.msra.mxu0 %v1042_v45  ;;  %1079 = vmatprep.mubr.bf16.mxu0 %v4562_v4 }
  0xb6   : > { %4101 = vmatmul.mubr.msk.bf16.vlgmr.msra.gmra.mrb[12].mxu1 %vm508_vm2, %v4099_v46 }
  0xb7   : > { %1180 = vmatprep.mubr.bf16.mxu1 %v4562_v4 }
  0xba   : > { %4104 = vmatmul.mubr.msk.bf16.vlgmr.msra.gmra.mrb[16].mxu0 %vm508_vm2, %v4102_v47  ;;  %v1094_v38 = vpop.permute.xlu0 %1093 }
  0xbb   : > { %1230 = vmatprep.mubr.bf16.mxu0 %v4562_v4 }
 0x168   : > { %v553_v48 = vpop.f32.mrb[0].mxu0 }
 0x169   : > { %v555_v49 = vpop.f32.mrb[1].mxu0 }
 0x16a   : > { %v557_v50 = vpop.f32.mrb[2].mxu0 }
 0x16b   : > { %v558_v51 = vpop.f32.mrb[3].mxu0 }
 0x171   : > { %v603_v52 = vpop.f32.mrb[0].mxu1 }
 0x172   : > { %v604_v53 = vadd.f32 %v603_v52, %v553_v48  ;;  %v605_v54 = vpop.f32.mrb[1].mxu1  ;;  %v1707_v52 = vld [vmem:[%s5498_s7] sm:$0xff] }
 0x173   : > { %v606_v55 = vadd.f32 %v605_v54, %v555_v49  ;;  %v607_v56 = vpop.f32.mrb[2].mxu1 }
 0x174   : > { %v608_v57 = vpop.f32.mrb[3].mxu1 }
 0x175   : > { %v676_v58 = vpop.f32.mrb[4].mxu0 }
 0x176   : > { %v683_v59 = vadd.f32 %v676_v58, %v604_v53  ;;  %v678_v60 = vpop.f32.mrb[5].mxu0  ;;  %v1132_v53 = vpop.permute.xlu1 %1131 }
 0x177   : > { %v684_v61 = vadd.f32 %v678_v60, %v606_v55  ;;  %v680_v62 = vpop.f32.mrb[6].mxu0  ;;  %v4105_v60 = vld [vmem:[%s5493_s2 + $0x4] sm:$0xf] }
 0x178   : > { %v681_v63 = vpop.f32.mrb[7].mxu0 }
 0x179   : > { %v745_v2 = vpop.f32.mrb[4].mxu1 }
 0x17a   : > { %v752_v3 = vadd.f32 %v745_v2, %v683_v59  ;;  %v747_v5 = vpop.f32.mrb[5].mxu1 }
 0x17b   : > { %v753_v6 = vadd.f32 %v747_v5, %v684_v61  ;;  %v749_v7 = vpop.f32.mrb[6].mxu1 }
 0x17c   : > { %v750_v8 = vpop.f32.mrb[7].mxu1 }
 0x17d   : > { %v799_v9 = vpop.f32.mrb[8].mxu0 }
 0x17e   : > { %v806_v10 = vadd.f32 %v799_v9, %v752_v3  ;;  %v801_v11 = vpop.f32.mrb[9].mxu0 }
 0x17f   : > { %v807_v12 = vadd.f32 %v801_v11, %v753_v6  ;;  %v803_v13 = vpop.f32.mrb[10].mxu0 }
 0x180   : > { %v804_v16 = vpop.f32.mrb[11].mxu0 }
 0x181   : > { %v874_v17 = vpop.f32.mrb[8].mxu1 }
 0x182   : > { %v881_v18 = vadd.f32 %v874_v17, %v806_v10  ;;  %v876_v19 = vpop.f32.mrb[9].mxu1 }
 0x183   : > { %v882_v22 = vadd.f32 %v876_v19, %v807_v12  ;;  %v878_v23 = vpop.f32.mrb[10].mxu1 }
 0x184   : > { %v879_v24 = vpop.f32.mrb[11].mxu1 }
 0x185   : > { %v943_v25 = vpop.f32.mrb[12].mxu0 }
 0x186   : > { %v950_v26 = vadd.f32 %v943_v25, %v881_v18  ;;  %v945_v27 = vpop.f32.mrb[13].mxu0 }
 0x187   : > { %v951_v28 = vadd.f32 %v945_v27, %v882_v22  ;;  %v947_v29 = vpop.f32.mrb[14].mxu0  ;;  %v1120_v22 = vld [vmem:[%s5493_s2] sm:$0xf] }
 0x188   : > { %v948_v30 = vpop.f32.mrb[15].mxu0 }
 0x189   : > { %v1012_v31 = vpop.f32.mrb[12].mxu1 }
 0x18a   : > { %v1019_v32 = vadd.f32 %v1012_v31, %v950_v26  ;;  %v1014_v33 = vpop.f32.mrb[13].mxu1 }
 0x18b   : > { %v1020_v34 = vadd.f32 %v1014_v33, %v951_v28  ;;  %v1016_v35 = vpop.f32.mrb[14].mxu1 }
 0x18c   : > { %v1017_v36 = vpop.f32.mrb[15].mxu1 }
 0x18d   : > { %v1081_v37 = vpop.f32.mrb[16].mxu0 }
 0x18e   : > { %v1088_v39 = vadd.f32 %v1081_v37, %v1019_v32  ;;  %v1083_v40 = vpop.f32.mrb[17].mxu0 }
 0x18f   : > { %v1089_v41 = vadd.f32 %v1083_v40, %v1020_v34  ;;  %v1085_v42 = vpop.f32.mrb[18].mxu0  ;;  %v4110_v34 = vld [vmem:[%s5493_s2 + $0x8] sm:$0xf] }
 0x190   : > { %v1096_v43 = vadd.f32 %v1094_v38, %v1088_v39  ;;  %v1086_v44 = vpop.f32.mrb[19].mxu0 }
 0x191   : > { %v1097_v45 = vadd.f32 %v1094_v38, %v1089_v41 }
 0x192   : > { %v1098_v46 = vmax.f32 %v1096_v43, 0.0 }
 0x193   : > { %v1099_v47 = vmax.f32 %v1097_v45, 0.0 }
 0x194   : > { %v4828_v48 = vpack.c.bf16 %v1098_v46, %v1098_v46  ;;  %v4353_v51 = vpack.i.bf16 %v1098_v46, %v4559_v0 }
 0x195   : > { %v4830_v49 = vpack.c.bf16 %v1099_v47, %v1099_v47  ;;  %v4368_v50 = vpack.i.bf16 %v1099_v47, %v1098_v46 }
 0x196   : > { %1133 = vrot.lane.b32.xlu1 %v4828_v48, %s4561_s27  ;;  %v1381_v44 = vsel %vm512_vm1, %v4828_v48, 0 }
 0x197   : > { %1135 = vrot.lane.b32.xlu0 %v4830_v49, %s4561_s27 }
 0x19a   : > { %4354 = vrot.lane.b32.xlu1 %v4353_v51, %s4563_s15 }
 0x19b   : > { %1112 = vrot.lane.b32.xlu0 %v1099_v47, %s4563_s15 }
 0x19e   : > { %4359 = vrot.lane.b32.xlu1 %v4353_v51, %s4564_s16 }
 0x19f   : > { %1243 = vrot.lane.b32.xlu0 %v1099_v47, %s4564_s16 }
 0x1a2   : > { %4364 = vrot.lane.b32.xlu1 %v4353_v51, %s4565_s17 }
 0x1a3   : > { %1311 = vrot.lane.b32.xlu0 %v1099_v47, %s4565_s17  ;;  %v4113_v47 = vld [vmem:[%s5493_s2 + $0xc] sm:$0xf] }
 0x1a6   : > { %4369 = vrot.lane.b32.xlu1 %v4368_v50, %s4566_s18 }
 0x1a7   : > { %1439 = vrot.lane.b32.xlu0 %v4559_v0, %s4566_s18 }
 0x1aa   : > { %4374 = vrot.lane.b32.xlu1 %v4368_v50, %s4567_s19 }
 0x1ab   : > { %1507 = vrot.lane.b32.xlu0 %v4559_v0, %s4567_s19 }
 0x1ae   : > { %4379 = vrot.lane.b32.xlu1 %v4368_v50, %s4568_s20 }
 0x1af   : > { %1643 = vrot.lane.b32.xlu0 %v4559_v0, %s4568_s20 }
 0x1b2   : > { %1579 = vrot.lane.b32.xlu1 %v4828_v48, %s4569_s21 }
 0x1b3   : > { %1581 = vrot.lane.b32.xlu0 %v4830_v49, %s4569_s21 }
 0x1b6   : > { %1583 = vrot.lane.b32.xlu1 %v4560_v1, %s4569_s21 }
 0x1b7   : > { %1710 = vperm.xlu0 %4352, %v1707_v52  }
 0x208   : > { %v1134_v54 = vpop.permute.xlu1 %1133 }
 0x209   : > { %v1137_v55 = vsel %vm505_vm0, %v1132_v53, %v1134_v54  ;;  %v1136_v56 = vpop.permute.xlu0 %1135 }
 0x20a   : > { %v1143_v57 = vsel %vm512_vm1, %v1137_v55, 0  ;;  %v1138_v58 = vsel %vm505_vm0, %v1134_v54, %v1136_v56 }
 0x20b   : > { %4106 = vmatprep.subr.msk.bf16.mxu1 %vm512_vm1, %v1138_v58 }
 0x20c   : > { %1149 = vmatpush1.bf16.msra.mxu1 %v1143_v57  ;;  %v4355_v59 = vpop.permute.xlu1 %4354 }
 0x20d   : > { %v4357_v61 = vunpack.i.h.bf16 %v4355_v59  ;;  %v4356_v62 = vunpack.i.l.bf16 %v4355_v59  ;;  %v1113_v63 = vpop.permute.xlu0 %1112  ;;  %v4116_v59 = vld [vmem:[%s5493_s2 + $0x10] sm:$0xf] }
 0x20f   : > { %v1114_v2 = vsel %vm481_vm3, %v4356_v62, %v4357_v61  ;;  %v1115_v3 = vsel %vm481_vm3, %v4357_v61, %v1113_v63  ;;  %4107 = vmatmul.mubr.msk.bf16.vlgmr.msra.gmra.mrb[16].mxu1 %vm508_vm2, %v4105_v60 }
 0x210   : > { %v1119_v5 = vsel %vm467_vm4, %v1115_v3, 0.0  ;;  %v4360_v6 = vpop.permute.xlu1 %4359  ;;  %v1118_v7 = vsel %vm466_vm5, %v1114_v2, 0.0  ;;  %1296 = vmatprep.mubr.bf16.mxu1 %v4562_v4 }
 0x211   : > { %v1122_v8 = vpack.c.bf16 %v1119_v5, %v1119_v5  ;;  %v4362_v9 = vunpack.i.h.bf16 %v4360_v6  ;;  %v4361_v10 = vunpack.i.l.bf16 %v4360_v6  ;;  %v1244_v11 = vpop.permute.xlu0 %1243  ;;  %v1121_v12 = vpack.c.bf16 %v1118_v7, %v1118_v7 }
 0x213   : > { %v1245_v13 = vsel %vm622_vm7, %v4361_v10, %v4362_v9  ;;  %v1246_v16 = vsel %vm622_vm7, %v4362_v9, %v1244_v11  ;;  %4108 = vmatprep.subr.msk.bf16.mxu0 %vm512_vm1, %v1122_v8  ;;  %v1193_v17 = vsel %vm512_vm1, %v1121_v12, 0  ;;  %v4119_v10 = vld [vmem:[%s5493_s2 + $0x14] sm:$0xf] }
 0x214   : > { %v1250_v18 = vsel %vm611_vm6, %v1246_v16, 0.0  ;;  %v4365_v19 = vpop.permute.xlu1 %4364  ;;  %1199 = vmatpush1.bf16.msra.mxu0 %v1193_v17  ;;  %v1249_v23 = vsel %vm5510_vm8, %v1245_v13, 0.0 }
 0x215   : > { %v1254_v24 = vpack.c.bf16 %v1250_v18, %v1250_v18  ;;  %v4367_v25 = vunpack.i.h.bf16 %v4365_v19  ;;  %v4366_v26 = vunpack.i.l.bf16 %v4365_v19  ;;  %v1312_v27 = vpop.permute.xlu0 %1311  ;;  %v1253_v28 = vpack.c.bf16 %v1249_v23, %v1249_v23  ;;  %v4122_v19 = vld [vmem:[%s5493_s2 + $0x18] sm:$0xf] }
 0x217   : > { %v1313_v29 = vsel %vm5509_vm9, %v4366_v26, %v4367_v25  ;;  %v1314_v30 = vsel %vm5509_vm9, %v4367_v25, %v1312_v27  ;;  %4109 = vmatmul.mubr.msk.bf16.vlgmr.msra.gmra.mrb[20].mxu0 %vm508_vm2, %v1120_v22  ;;  %4111 = vmatprep.subr.msk.bf16.mxu1 %vm512_vm1, %v1254_v24  ;;  %v1259_v31 = vsel %vm512_vm1, %v1253_v28, 0  ;;  %v4125_v25 = vld [vmem:[%s5493_s2 + $0x1c] sm:$0xf]  ;;  %v4128_v26 = vld [vmem:[%s5493_s2 + $0x20] sm:$0xf] }
 0x218   : > { %v1318_v32 = vsel %vm467_vm4, %v1314_v30, 0.0  ;;  %v4370_v33 = vpop.permute.xlu1 %4369  ;;  %1265 = vmatpush1.bf16.msra.mxu1 %v1259_v31  ;;  %v1317_v35 = vsel %vm466_vm5, %v1313_v29, 0.0  ;;  %1364 = vmatprep.mubr.bf16.mxu0 %v4562_v4 }
 0x219   : > { %v1322_v36 = vpack.c.bf16 %v1318_v32, %v1318_v32  ;;  %v4372_v37 = vunpack.i.h.bf16 %v4370_v33  ;;  %v4371_v38 = vunpack.i.l.bf16 %v4370_v33  ;;  %v1440_v39 = vpop.permute.xlu0 %1439  ;;  %4117 = vmatprep.subr.msk.bf16.mxu1 %vm512_vm1, %v4830_v49  ;;  %v1321_v40 = vpack.c.bf16 %v1317_v35, %v1317_v35 }
 0x21b   : > { %v1441_v41 = vsel %vm5508_vm10, %v4371_v38, %v4372_v37  ;;  %v1442_v42 = vsel %vm5508_vm10, %v4372_v37, %v1440_v39  ;;  %4112 = vmatmul.mubr.msk.bf16.vlgmr.msra.gmra.mrb[20].mxu1 %vm508_vm2, %v4110_v34  ;;  %4114 = vmatprep.subr.msk.bf16.mxu0 %vm512_vm1, %v1322_v36  ;;  %v1327_v43 = vsel %vm512_vm1, %v1321_v40, 0 }
 0x21c   : > { %v1446_v45 = vsel %vm611_vm6, %v1442_v42, 0.0  ;;  %v4375_v46 = vpop.permute.xlu1 %4374  ;;  %1333 = vmatpush1.bf16.msra.mxu0 %v1327_v43  ;;  %1387 = vmatpush1.bf16.msra.mxu1 %v1381_v44  ;;  %v1445_v49 = vsel %vm5510_vm8, %v1441_v41, 0.0 }
 0x21d   : > { %v1450_v50 = vpack.c.bf16 %v1446_v45, %v1446_v45  ;;  %v4377_v51 = vunpack.i.h.bf16 %v4375_v46  ;;  %v4376_v52 = vunpack.i.l.bf16 %v4375_v46  ;;  %v1508_v53 = vpop.permute.xlu0 %1507  ;;  %v1449_v54 = vpack.c.bf16 %v1445_v49, %v1445_v49  ;;  %1418 = vmatprep.mubr.bf16.mxu1 %v4562_v4 }
 0x21f   : > { %v1509_v48 = vsel %vm5507_vm11, %v4376_v52, %v4377_v51  ;;  %v1510_v55 = vsel %vm5507_vm11, %v4377_v51, %v1508_v53  ;;  %4115 = vmatmul.mubr.msk.bf16.vlgmr.msra.gmra.mrb[24].mxu0 %vm508_vm2, %v4113_v47  ;;  %4120 = vmatprep.subr.msk.bf16.mxu0 %vm512_vm1, %v1450_v50  ;;  %v1455_v56 = vsel %vm512_vm1, %v1449_v54, 0  ;;  %vm1930_vm11 = vcmask 244736  }
 0x220   : > { %v1514_v57 = vsel %vm467_vm4, %v1510_v55, 0.0  ;;  %v4380_v58 = vpop.permute.xlu1 %4379  ;;  %1461 = vmatpush1.bf16.msra.mxu0 %v1455_v56  ;;  %v1513_v60 = vsel %vm466_vm5, %v1509_v48, 0.0  ;;  %1492 = vmatprep.mubr.bf16.mxu0 %v4562_v4 }
 0x221   : > { %v1518_v61 = vpack.c.bf16 %v1514_v57, %v1514_v57  ;;  %v4382_v62 = vunpack.i.h.bf16 %v4380_v58  ;;  %v4381_v63 = vunpack.i.l.bf16 %v4380_v58  ;;  %v1644_v2 = vpop.permute.xlu0 %1643  ;;  %v1517_v3 = vpack.c.bf16 %v1513_v60, %v1513_v60 }
 0x223   : > { %v1645_v5 = vsel %vm5505_vm12, %v4381_v63, %v4382_v62  ;;  %v1646_v6 = vsel %vm5505_vm12, %v4382_v62, %v1644_v2  ;;  %4118 = vmatmul.mubr.msk.bf16.vlgmr.msra.gmra.mrb[24].mxu1 %vm508_vm2, %v4116_v59  ;;  %4123 = vmatprep.subr.msk.bf16.mxu1 %vm512_vm1, %v1518_v61  ;;  %v1523_v7 = vsel %vm512_vm1, %v1517_v3, 0  ;;  %vm1761_vm12 = vcmp.ge.s32.totalorder %v4716_v20, 2 }
 0x224   : > { %v1650_v8 = vsel %vm611_vm6, %v1646_v6, 0.0  ;;  %v1580_v9 = vpop.permute.xlu1 %1579  ;;  %1529 = vmatpush1.bf16.msra.mxu1 %v1523_v7  ;;  %1560 = vmatprep.mubr.bf16.mxu1 %v4562_v4  ;;  %v1649_v11 = vsel %vm5510_vm8, %v1645_v5, 0.0 }
 0x225   : > { %v1654_v12 = vpack.c.bf16 %v1650_v8, %v1650_v8  ;;  %v1582_v13 = vpop.permute.xlu0 %1581  ;;  %v1653_v17 = vpack.c.bf16 %v1649_v11, %v1649_v11 }
 0x226   : > { %v1585_v16 = vsel %vm5506_vm13, %v1580_v9, %v1582_v13 }
 0x227   : > { %4121 = vmatmul.mubr.msk.bf16.vlgmr.msra.gmra.mrb[28].mxu0 %vm508_vm2, %v4119_v10  ;;  %4129 = vmatprep.subr.msk.bf16.mxu1 %vm512_vm1, %v1654_v12  ;;  %v1591_v23 = vsel %vm512_vm1, %v1585_v16, 0  ;;  %v1659_v24 = vsel %vm512_vm1, %v1653_v17, 0 }
 0x228   : > { %v1584_v18 = vpop.permute.xlu1 %1583  ;;  %1628 = vmatprep.mubr.bf16.mxu0 %v4562_v4 }
 0x229   : > { %v1586_v22 = vsel %vm5506_vm13, %v1582_v13, %v1584_v18 }
 0x22a   : > { %4126 = vmatprep.subr.msk.bf16.mxu0 %vm512_vm1, %v1586_v22 }
 0x22b   : > { %4124 = vmatmul.mubr.msk.bf16.vlgmr.msra.gmra.mrb[28].mxu1 %vm508_vm2, %v4122_v19  ;;  %1597 = vmatpush1.bf16.msra.mxu0 %v1591_v23 }
 0x22c   : > { %1665 = vmatpush1.bf16.msra.mxu1 %v1659_v24  ;;  %1696 = vmatprep.mubr.bf16.mxu1 %v4562_v4 }
 0x22f   : > { %4127 = vmatmul.mubr.msk.bf16.vlgmr.msra.gmra.mrb[32].mxu0 %vm508_vm2, %v4125_v25 }
 0x230   : > { %1850 = vmatprep.mubr.bf16.mxu0 %v4562_v4 }
 0x233   : > { %4130 = vmatmul.mubr.msk.bf16.vlgmr.msra.gmra.mrb[32].mxu1 %vm508_vm2, %v4128_v26 }
 0x234   : > { %2562 = vmatprep.mubr.bf16.mxu1 %v4562_v4 }
 0x236   : > { %v1711_v17 = vpop.permute.xlu0 %1710 }
 0x2e2   : > { %v1182_v27 = vpop.f32.mrb[16].mxu1 }
 0x2e3   : > { %v1184_v28 = vpop.f32.mrb[17].mxu1 }
 0x2e4   : > { %v1186_v29 = vpop.f32.mrb[18].mxu1 }
 0x2e5   : > { %v1187_v30 = vpop.f32.mrb[19].mxu1 }
 0x2ea   : > { %v1232_v31 = vpop.f32.mrb[20].mxu0 }
 0x2eb   : > { %v1233_v32 = vadd.f32 %v1232_v31, %v1182_v27  ;;  %v1234_v33 = vpop.f32.mrb[21].mxu0 }
 0x2ec   : > { %v1235_v34 = vadd.f32 %v1234_v33, %v1184_v28  ;;  %v1236_v35 = vpop.f32.mrb[22].mxu0 }
 0x2ed   : > { %v1237_v36 = vpop.f32.mrb[23].mxu0 }
 0x2ee   : > { %v1298_v37 = vpop.f32.mrb[20].mxu1 }
 0x2ef   : > { %v1305_v38 = vadd.f32 %v1298_v37, %v1233_v32  ;;  %v1300_v39 = vpop.f32.mrb[21].mxu1 }
 0x2f0   : > { %v1306_v40 = vadd.f32 %v1300_v39, %v1235_v34  ;;  %v1302_v41 = vpop.f32.mrb[22].mxu1 }
 0x2f1   : > { %v1303_v42 = vpop.f32.mrb[23].mxu1 }
 0x2f2   : > { %v1366_v43 = vpop.f32.mrb[24].mxu0 }
 0x2f3   : > { %v1373_v44 = vadd.f32 %v1366_v43, %v1305_v38  ;;  %v1368_v45 = vpop.f32.mrb[25].mxu0 }
 0x2f4   : > { %v1374_v46 = vadd.f32 %v1368_v45, %v1306_v40  ;;  %v1370_v47 = vpop.f32.mrb[26].mxu0  ;;  %v4993_v45 = vld [vmem:[#allocation2] sm:$0xff] }
 0x2f5   : > { %v1371_v49 = vpop.f32.mrb[27].mxu0  ;;  %v2468_v47 = vld [vmem:[%s5499_s8] sm:$0xff] }
 0x2f6   : > { %v1420_v50 = vpop.f32.mrb[24].mxu1 }
 0x2f7   : > { %v1427_v51 = vadd.f32 %v1420_v50, %v1373_v44  ;;  %v1422_v52 = vpop.f32.mrb[25].mxu1 }
 0x2f8   : > { %v1428_v53 = vadd.f32 %v1422_v52, %v1374_v46  ;;  %v1424_v54 = vpop.f32.mrb[26].mxu1  ;;  %v2469_v46 = vld [vmem:[%s5499_s8 + $0x8] sm:$0xff] }
 0x2f9   : > { %v1425_v48 = vpop.f32.mrb[27].mxu1 }
 0x2fa   : > { %v1494_v55 = vpop.f32.mrb[28].mxu0  ;;  %v4535_v48 = vld [vmem:[%s5494_s3 + $0x8] sm:$0xff]  }
 0x2fb   : > { %v1501_v56 = vadd.f32 %v1494_v55, %v1427_v51  ;;  %v1496_v57 = vpop.f32.mrb[29].mxu0 }
 0x2fc   : > { %v1502_v58 = vadd.f32 %v1496_v57, %v1428_v53  ;;  %v1498_v59 = vpop.f32.mrb[30].mxu0 }
 0x2fd   : > { %v1499_v60 = vpop.f32.mrb[31].mxu0 }
 0x2fe   : > { %v1562_v61 = vpop.f32.mrb[28].mxu1 }
 0x2ff   : > { %v1569_v62 = vadd.f32 %v1562_v61, %v1501_v56  ;;  %v1564_v63 = vpop.f32.mrb[29].mxu1 }
 0x300   : > { %v1570_v2 = vadd.f32 %v1564_v63, %v1502_v58  ;;  %v1566_v3 = vpop.f32.mrb[30].mxu1 }
 0x301   : > { %v1567_v5 = vpop.f32.mrb[31].mxu1 }
 0x302   : > { %v1630_v6 = vpop.f32.mrb[32].mxu0 }
 0x303   : > { %v1637_v7 = vadd.f32 %v1630_v6, %v1569_v62  ;;  %v1632_v8 = vpop.f32.mrb[33].mxu0 }
 0x304   : > { %v1638_v9 = vadd.f32 %v1632_v8, %v1570_v2  ;;  %v1634_v10 = vpop.f32.mrb[34].mxu0 }
 0x305   : > { %v1635_v11 = vpop.f32.mrb[35].mxu0 }
 0x306   : > { %v1698_v12 = vpop.f32.mrb[32].mxu1 }
 0x307   : > { %v1705_v13 = vadd.f32 %v1698_v12, %v1637_v7  ;;  %v1700_v16 = vpop.f32.mrb[33].mxu1 }
 0x308   : > { %v1706_v18 = vadd.f32 %v1700_v16, %v1638_v9  ;;  %v1702_v19 = vpop.f32.mrb[34].mxu1 }
 0x309   : > { %v1713_v22 = vadd.f32 %v1711_v17, %v1705_v13  ;;  %v1703_v23 = vpop.f32.mrb[35].mxu1 }
 0x30a   : > { %v1714_v24 = vadd.f32 %v1711_v17, %v1706_v18 }
 0x30b   : > { %v4966_v25 = vmax.f32 %v1713_v22, 0.0  ;;  %v4536_v22 = vld [vmem:[%s5494_s3] sm:$0xff]  }
 0x30c   : > { %v4968_v26 = vmax.f32 %v1714_v24, 0.0 }
 0x30d   : > { %1725 = vrot.lane.b32.xlu1 %v4966_v25, %s4566_s18 }
 0x30e   : > { %1727 = vrot.lane.b32.xlu0 %v4968_v26, %s4566_s18 }
 0x311   : > { %1729 = vrot.lane.b32.xlu1 %v4559_v0, %s4566_s18 }
 0x37f   : > { %v1726_v27 = vpop.permute.xlu1 %1725 }
 0x380   : > { %v1728_v28 = vpop.permute.xlu0 %1727 }
 0x381   : > { %v1731_v29 = vsel %vm5508_vm10, %v1726_v27, %v1728_v28 }
 0x382   : > { %v1735_v30 = vmax.f32 %v4966_v25, %v1731_v29 }
 0x383   : > { %v1730_v31 = vpop.permute.xlu1 %1729 }
 0x384   : > { %v1732_v32 = vsel %vm5508_vm10, %v1728_v28, %v1730_v31  ;;  %v1738_v33 = vmax.f32 %v1730_v31, 0.0  ;;  %1742 = vrot.lane.b32.xlu0 %v1735_v30, %s4569_s21  ;;  %vm1918_vm10 = vcmp.le.s32.totalorder %v4719_v21, 12 }
 0x385   : > { %v1736_v34 = vmax.f32 %v4968_v26, %v1732_v32  ;;  %v4537_v32 = vld [vmem:[%s5494_s3 + $0x10] sm:$0xff]  }
 0x387   : > { %1744 = vrot.lane.b32.xlu1 %v1736_v34, %s4569_s21 }
 0x388   : > { %1746 = vrot.lane.b32.xlu0 %v1738_v33, %s4569_s21 }
 0x38b   : > { %1800 = vrot.lane.b32.xlu1 %v4560_v1, %s4570_s30 }
 0x3f6   : > { %v1743_v35 = vpop.permute.xlu0 %1742 }
 0x3f9   : > { %v1745_v36 = vpop.permute.xlu1 %1744 }
 0x3fa   : > { %v1749_v37 = vsel %vm5506_vm13, %v1743_v35, %v1745_v36  ;;  %v1747_v38 = vpop.permute.xlu0 %1746 }
 0x3fb   : > { %v1753_v39 = vmax.f32 %v1735_v30, %v1749_v37  ;;  %v1750_v40 = vsel %vm5506_vm13, %v1745_v36, %v1747_v38  ;;  %vm1760_vm13 = vcmp.ge.s32.totalorder %v4719_v21, 2 }
 0x3fc   : > { %v1754_v41 = vmax.f32 %v1736_v34, %v1750_v40 }
 0x3fd   : > { %v4986_v42 = vpack.c.bf16 %v1753_v39, %v1753_v39  ;;  %v4383_v44 = vpack.i.bf16 %v1753_v39, %v4559_v0  ;;  %v5000_v0 = vpack.c.bf16 %v4993_v45, %v4993_v45  ;;  %v1801_v49 = vpop.permute.xlu1 %1800 }
 0x3fe   : > { %v4988_v43 = vpack.c.bf16 %v1754_v41, %v1754_v41  ;;  %v4398_v1 = vpack.i.bf16 %v1754_v41, %v1753_v39  ;;  %v4538_v39 = vld [vmem:[%s5494_s3 + $0x18] sm:$0xff]  }
 0x3ff   : > { %1802 = vrot.lane.b32.xlu0 %v4986_v42, %s4570_s30 }
 0x400   : > { %1804 = vrot.lane.b32.xlu1 %v4988_v43, %s4570_s30  ;;  %s4576_s30 = smov 96  }
 0x403   : > { %4384 = vrot.lane.b32.xlu0 %v4383_v44, %s4571_s14 }
 0x404   : > { %1773 = vrot.lane.b32.xlu1 %v1754_v41, %s4571_s14  ;;  %s4577_s14 = smov 94  }
 0x407   : > { %4389 = vrot.lane.b32.xlu0 %v4383_v44, %s4572_s22 }
 0x408   : > { %1928 = vrot.lane.b32.xlu1 %v1754_v41, %s4572_s22 }
 0x40b   : > { %4394 = vrot.lane.b32.xlu0 %v4383_v44, %s4573_s23 }
 0x40c   : > { %2007 = vrot.lane.b32.xlu1 %v1754_v41, %s4573_s23 }
 0x40f   : > { %4399 = vrot.lane.b32.xlu0 %v4398_v1, %s4574_s24 }
 0x410   : > { %2156 = vrot.lane.b32.xlu1 %v4993_v45, %s4574_s24 }
 0x413   : > { %4404 = vrot.lane.b32.xlu0 %v4398_v1, %s4575_s29 }
 0x414   : > { %2235 = vrot.lane.b32.xlu1 %v4993_v45, %s4575_s29 }
 0x417   : > { %2324 = vrot.lane.b32.xlu0 %v4986_v42, %s4576_s30 }
 0x418   : > { %2326 = vrot.lane.b32.xlu1 %v4988_v43, %s4576_s30 }
 0x41b   : > { %2328 = vrot.lane.b32.xlu0 %v5000_v0, %s4576_s30  ;;  %s440_s30 = scalar_lea.vmem %s5504_s13, %s4262_s28 }
 0x41c   : > { %4409 = vrot.lane.b32.xlu1 %v4398_v1, %s4577_s14 }
 0x41f   : > { %2393 = vrot.lane.b32.xlu0 %v4993_v45, %s4577_s14 }
 0x420   : > { %2472 = vperm.xlu1 %4413, %v2468_v47  }
 0x423   : > { %2477 = vperm.xlu0 %4352, %v2469_v46   ;;  %v2094_v46 = vsel %vm512_vm1, %v4986_v42, 0 }
 0x471   : > { %v1803_v50 = vpop.permute.xlu0 %1802 }
 0x472   : > { %v1807_v51 = vsel %vm1806_vm14, %v1801_v49, %v1803_v50  ;;  %v1805_v52 = vpop.permute.xlu1 %1804 }
 0x473   : > { %v1813_v53 = vsel %vm512_vm1, %v1807_v51, 0  ;;  %v1808_v54 = vsel %vm1806_vm14, %v1803_v50, %v1805_v52  ;;  %vm1919_vm14 = vcmp.le.s32.totalorder %v4716_v20, 12  ;;  %v4539_v52 = vld [vmem:[%s5494_s3 + $0x20] sm:$0xff]  }
 0x474   : > { %4134 = vmatprep.subr.msk.bf16.mxu0 %vm512_vm1, %v1808_v54 }
 0x475   : > { %1819 = vmatpush1.bf16.msra.mxu0 %v1813_v53  ;;  %v4385_v55 = vpop.permute.xlu0 %4384 }
 0x476   : > { %v4387_v56 = vunpack.i.h.bf16 %v4385_v55  ;;  %v4386_v57 = vunpack.i.l.bf16 %v4385_v55  ;;  %v1774_v58 = vpop.permute.xlu1 %1773 }
 0x478   : > { %v1776_v59 = vsel %vm1775_vm15, %v4386_v57, %v4387_v56  ;;  %v1777_v60 = vsel %vm1775_vm15, %v4387_v56, %v1774_v58  ;;  %4135 = vmatmul.mubr.msk.bf16.vlgmr.msra.gmra.mrb[36].mxu0 %vm508_vm2, %v4535_v48  ;;  %vm2009_vm15 = vcmask 15360  }
 0x479   : > { %v1781_v61 = vsel %vm1761_vm12, %v1777_v60, 0.0  ;;  %v4390_v62 = vpop.permute.xlu0 %4389  ;;  %v1780_v63 = vsel %vm1760_vm13, %v1776_v59, 0.0  ;;  %1907 = vmatprep.mubr.bf16.mxu0 %v4562_v4  ;;  %v4540_v60 = vld [vmem:[%s5494_s3 + $0x28] sm:$0xff]  }
 0x47a   : > { %v1785_v2 = vpack.c.bf16 %v1781_v61, %v1781_v61  ;;  %v4392_v3 = vunpack.i.h.bf16 %v4390_v62  ;;  %v4391_v5 = vunpack.i.l.bf16 %v4390_v62  ;;  %v1929_v6 = vpop.permute.xlu1 %1928  ;;  %v1784_v7 = vpack.c.bf16 %v1780_v63, %v1780_v63 }
 0x47c   : > { %v1931_v8 = vsel %vm1930_vm11, %v4391_v5, %v4392_v3  ;;  %v1932_v9 = vsel %vm1930_vm11, %v4392_v3, %v1929_v6  ;;  %4137 = vmatprep.subr.msk.bf16.mxu0 %vm512_vm1, %v1785_v2  ;;  %v1870_v10 = vsel %vm512_vm1, %v1784_v7, 0  ;;  %vm2158_vm11 = vcmask 1031168  }
 0x47d   : > { %v1936_v11 = vsel %vm1919_vm14, %v1932_v9, 0.0  ;;  %v4395_v12 = vpop.permute.xlu0 %4394  ;;  %1876 = vmatpush1.bf16.msra.mxu0 %v1870_v10  ;;  %v1935_v13 = vsel %vm1918_vm10, %v1931_v8, 0.0  ;;  %v4541_v8 = vld [vmem:[%s5494_s3 + $0x30] sm:$0xff]  }
 0x47e   : > { %v1941_v16 = vpack.c.bf16 %v1936_v11, %v1936_v11  ;;  %v4397_v17 = vunpack.i.h.bf16 %v4395_v12  ;;  %v2008_v18 = vpop.permute.xlu1 %2007  ;;  %v1940_v23 = vpack.c.bf16 %v1935_v13, %v1935_v13  ;;  %v4396_v27 = vunpack.i.l.bf16 %v4395_v12 }
 0x480   : > { %v2011_v19 = vsel %vm2009_vm15, %v4397_v17, %v2008_v18  ;;  %4142 = vmatprep.subr.msk.bf16.mxu0 %vm512_vm1, %v1941_v16  ;;  %v1951_v29 = vsel %vm512_vm1, %v1940_v23, 0  ;;  %v2010_v30 = vsel %vm2009_vm15, %v4396_v27, %v4397_v17  ;;  %vm2237_vm15 = vcmask 801792   ;;  %v4542_v18 = vld [vmem:[%s5494_s3 + $0x38] sm:$0xff]   ;;  %v4543_v23 = vld [vmem:[%s5494_s3 + $0x40] sm:$0xff]  }
 0x481   : > { %v2015_v24 = vsel %vm1761_vm12, %v2011_v19, 0.0  ;;  %v2014_v31 = vsel %vm1760_vm13, %v2010_v30, 0.0  ;;  %v4400_v34 = vpop.permute.xlu0 %4399  ;;  %v451_v27 = vand.u32 17, %v4708_v14  ;;  %v452_v30 = vand.u32 17, %v4711_v15 }
 0x482   : > { %v2020_v28 = vpack.c.bf16 %v2015_v24, %v2015_v24  ;;  %v2019_v33 = vpack.c.bf16 %v2014_v31, %v2014_v31  ;;  %v4402_v36 = vunpack.i.h.bf16 %v4400_v34  ;;  %v2157_v37 = vpop.permute.xlu1 %2156  ;;  %v4401_v41 = vunpack.i.l.bf16 %v4400_v34 }
 0x484   : > { %4138 = vmatmul.mubr.msk.bf16.vlgmr.msra.gmra.mrb[36].mxu0 %vm508_vm2, %v4536_v22  ;;  %v2030_v35 = vsel %vm512_vm1, %v2019_v33, 0  ;;  %v2160_v38 = vsel %vm2158_vm11, %v4402_v36, %v2157_v37 }
 0x485   : > { %1957 = vmatpush1.bf16.msra.mxu0 %v1951_v29  ;;  %1988 = vmatprep.mubr.bf16.mxu0 %v4562_v4  ;;  %v2164_v40 = vsel %vm1919_vm14, %v2160_v38, 0.0  ;;  %v4405_v44 = vpop.permute.xlu0 %4404 }
 0x486   : > { %4147 = vmatprep.subr.msk.bf16.mxu0 %vm512_vm1, %v2020_v28  ;;  %v2169_v1 = vpack.c.bf16 %v2164_v40, %v2164_v40  ;;  %v4407_v47 = vunpack.i.h.bf16 %v4405_v44  ;;  %v2236_v49 = vpop.permute.xlu1 %2235  ;;  %v4406_v54 = vunpack.i.l.bf16 %v4405_v44 }
 0x488   : > { %v2239_v51 = vsel %vm2237_vm15, %v4407_v47, %v2236_v49  ;;  %v2238_v56 = vsel %vm2237_vm15, %v4406_v54, %v4407_v47 }
 0x489   : > { %v2243_v42 = vsel %vm1761_vm12, %v2239_v51, 0.0  ;;  %v2325_v57 = vpop.permute.xlu0 %2324  ;;  %v2242_v59 = vsel %vm1760_vm13, %v2238_v56, 0.0  ;;  %vm2330_vm12 = vcmask 785408   ;;  %vm2395_vm13 = vcmask 769024  }
 0x48a   : > { %v2248_v48 = vpack.c.bf16 %v2243_v42, %v2243_v42  ;;  %v2327_v58 = vpop.permute.xlu1 %2326  ;;  %v2247_v61 = vpack.c.bf16 %v2242_v59, %v2242_v59 }
 0x48b   : > { %v2331_v9 = vsel %vm2330_vm12, %v2325_v57, %v2327_v58 }
 0x48c   : > { %v2258_v2 = vsel %vm512_vm1, %v2247_v61, 0  ;;  %v2337_v12 = vsel %vm512_vm1, %v2331_v9, 0  ;;  %v2504_v61 = vld [vmem:[%s5502_s11] sm:$0xf] }
 0x48d   : > { %v2329_v62 = vpop.permute.xlu0 %2328 }
 0x48e   : > { %v4410_v63 = vpop.permute.xlu1 %4409  ;;  %v2332_v3 = vsel %vm2330_vm12, %v2327_v58, %v2329_v62  ;;  %vm5230_vm12 = vmpackc.low %vm467_vm4, %vm467_vm4 }
 0x48f   : > { %v4412_v5 = vunpack.i.h.bf16 %v4410_v63  ;;  %v4411_v11 = vunpack.i.l.bf16 %v4410_v63 }
 0x490   : > { %4143 = vmatmul.mubr.msk.bf16.vlgmr.msra.gmra.mrb[36].mxu0 %vm508_vm2, %v4537_v32 }
 0x491   : > { %2036 = vmatpush1.bf16.msra.mxu0 %v2030_v35  ;;  %2067 = vmatprep.mubr.bf16.mxu0 %v4562_v4  ;;  %v2394_v6 = vpop.permute.xlu0 %2393  ;;  %v2396_v16 = vsel %vm2395_vm13, %v4411_v11, %v4412_v5 }
 0x492   : > { %4152 = vmatprep.subr.msk.bf16.mxu0 %vm512_vm1, %v4988_v43  ;;  %v2159_v43 = vsel %vm2158_vm11, %v4401_v41, %v4402_v36  ;;  %v2397_v7 = vsel %vm2395_vm13, %v4412_v5, %v2394_v6  ;;  %v2400_v17 = vsel %vm1918_vm10, %v2396_v16, 0.0  ;;  %v4177_v6 = vld [vmem:[%s5502_s11 + $0x8] sm:$0xf]  ;;  %vm5239_vm13 = vmpackc.low %vm466_vm5, %vm466_vm5 }
 0x493   : > { %v2163_v50 = vsel %vm1918_vm10, %v2159_v43, 0.0  ;;  %v2401_v10 = vsel %vm1919_vm14, %v2397_v7, 0.0  ;;  %v2405_v19 = vpack.c.bf16 %v2400_v17, %v2400_v17  ;;  %vm5108_vm10 = vcmp.eq.s32.totalorder %v451_v27, 0 }
 0x494   : > { %v2168_v53 = vpack.c.bf16 %v2163_v50, %v2163_v50  ;;  %v2406_v13 = vpack.c.bf16 %v2401_v10, %v2401_v10  ;;  %vm5112_vm14 = vcmp.eq.s32.totalorder %v452_v30, 0  ;;  %v2732_v50 = vld [vmem:[%s5503_s12] sm:$0xff]  ;;  %vm4548_vm15 = vmpackc.low %vm5108_vm10, %vm5108_vm10 }
 0x495   : > { %v2416_v22 = vsel %vm512_vm1, %v2405_v19, 0  ;;  %vm4545_vm11 = vmpackc.low %vm5112_vm14, %vm5112_vm14 }
 0x496   : > { %v2179_v55 = vsel %vm512_vm1, %v2168_v53, 0 }
 0x49c   : > { %4148 = vmatmul.mubr.msk.bf16.vlgmr.msra.gmra.mrb[36].mxu0 %vm508_vm2, %v4538_v39 }
 0x49d   : > { %2100 = vmatpush1.bf16.msra.mxu0 %v2094_v46  ;;  %2131 = vmatprep.mubr.bf16.mxu0 %v4562_v4 }
 0x49e   : > { %4157 = vmatprep.subr.msk.bf16.mxu0 %vm512_vm1, %v2169_v1 }
 0x49f   : > { %v2473_v24 = vpop.permute.xlu1 %2472 }
 0x4a2   : > { %v2478_v32 = vpop.permute.xlu0 %2477 }
 0x4a8   : > { %4153 = vmatmul.mubr.msk.bf16.vlgmr.msra.gmra.mrb[36].mxu0 %vm508_vm2, %v4539_v52 }
 0x4a9   : > { %2185 = vmatpush1.bf16.msra.mxu0 %v2179_v55  ;;  %2216 = vmatprep.mubr.bf16.mxu0 %v4562_v4  ;;  %v4174_v55 = vld [vmem:[%s5502_s11 + $0x4] sm:$0xf] }
 0x4aa   : > { %4162 = vmatprep.subr.msk.bf16.mxu0 %vm512_vm1, %v2248_v48 }
 0x4b4   : > { %4158 = vmatmul.mubr.msk.bf16.vlgmr.msra.gmra.mrb[36].mxu0 %vm508_vm2, %v4540_v60 }
 0x4b5   : > { %2264 = vmatpush1.bf16.msra.mxu0 %v2258_v2  ;;  %2295 = vmatprep.mubr.bf16.mxu0 %v4562_v4 }
 0x4b6   : > { %4167 = vmatprep.subr.msk.bf16.mxu0 %vm512_vm1, %v2332_v3 }
 0x4c0   : > { %4163 = vmatmul.mubr.msk.bf16.vlgmr.msra.gmra.mrb[36].mxu0 %vm508_vm2, %v4541_v8  ;;  %v4179_v8 = vld [vmem:[%s5502_s11 + $0xc] sm:$0xf] }
 0x4c1   : > { %2343 = vmatpush1.bf16.msra.mxu0 %v2337_v12  ;;  %2374 = vmatprep.mubr.bf16.mxu0 %v4562_v4 }
 0x4c2   : > { %4172 = vmatprep.subr.msk.bf16.mxu0 %vm512_vm1, %v2406_v13 }
 0x4cc   : > { %4168 = vmatmul.mubr.msk.bf16.vlgmr.msra.gmra.mrb[36].mxu0 %vm508_vm2, %v4542_v18 }
 0x4cd   : > { %2422 = vmatpush1.bf16.msra.mxu0 %v2416_v22  ;;  %2453 = vmatprep.mubr.bf16.mxu0 %v4562_v4 }
 0x4d8   : > { %4173 = vmatmul.mubr.msk.bf16.vlgmr.msra.gmra.mrb[36].mxu0 %vm508_vm2, %v4543_v23 }
 0x4d9   : > { %3160 = vmatprep.mubr.bf16.mxu0 %v4562_v4 }
 0x5ab   : > { %v2455_v28 = vpop.f32.mrb[36].mxu0 }
 0x5ac   : > { %v2480_v29 = vadd.f32 %v2473_v24, %v2455_v28  ;;  %v2457_v31 = vpop.f32.mrb[37].mxu0 }
 0x5ad   : > { %v2481_v33 = vadd.f32 %v2473_v24, %v2457_v31  ;;  %v2459_v34 = vpop.f32.mrb[38].mxu0 }
 0x5ae   : > { %v2484_v35 = vmax.f32 %v2480_v29, 0.0  ;;  %v2482_v36 = vadd.f32 %v2478_v32, %v2459_v34  ;;  %v2461_v37 = vpop.f32.mrb[39].mxu0 }
 0x5af   : > { %v2485_v39 = vmax.f32 %v2481_v33, 0.0  ;;  %v2483_v40 = vadd.f32 %v2478_v32, %v2461_v37 }
 0x5b0   : > { %v2486_v14 = vmax.f32 %v2482_v36, 0.0  ;;  %v2492_v15 = vsel %vm5108_vm10, %v2484_v35, 0.0 }
 0x5b1   : > { %v2487_v44 = vmax.f32 %v2483_v40, 0.0  ;;  %v2493_v46 = vsel %vm5112_vm14, %v2485_v39, 0.0 }
 0x5b2   : > { %v2494_v1 = vsel %vm5108_vm10, %v2486_v14, 0.0  ;;  %v4549_v60 = vpack.c.bf16 %v2486_v14, %v2484_v35  ;;  %vm5255_vm10 = vmpackc.low %vm611_vm6, %vm611_vm6 }
 0x5b3   : > { %v2495_v43 = vsel %vm5112_vm14, %v2487_v44, 0.0  ;;  %v2505_v47 = vpack.c.bf16 %v2494_v1, %v2492_v15  ;;  %v4546_v56 = vpack.c.bf16 %v2487_v44, %v2485_v39  ;;  %v4424_v44 = vpack.i.bf16 %v4993_v45, %v4993_v45  ;;  %vm5267_vm14 = vmpackc.low %vm5510_vm8, %vm5510_vm8 }
 0x5b4   : > { %v2506_v49 = vpack.c.bf16 %v2495_v43, %v2493_v46  ;;  %v4419_v15 = vpack.i.bf16 %v4968_v26, %v4966_v25  ;;  %v4464_v46 = vpack.i.bf16 %v4993_v45, %v4968_v26 }
 0x5b5   : > { %2517 = vrot.lane.b32.xlu1 %v2505_v47, %s4565_s17 }
 0x5b6   : > { %2519 = vrot.lane.b32.xlu0 %v2506_v49, %s4565_s17 }
 0x5b9   : > { %2515 = vrot.lane.b32.xlu1 %v5000_v0, %s4565_s17 }
 0x5ba   : > { %2619 = vrot.lane.b32.xlu0 %v2505_v47, %s4561_s27 }
 0x5bd   : > { %2621 = vrot.lane.b32.xlu1 %v2506_v49, %s4561_s27 }
 0x5be   : > { %2617 = vrot.lane.b32.xlu0 %v5000_v0, %s4561_s27 }
 0x5c1   : > { %2677 = vrot.lane.b32.xlu1 %v2505_v47, %s4563_s15 }
 0x5c2   : > { %2679 = vrot.lane.b32.xlu0 %v2506_v49, %s4563_s15 }
 0x5c5   : > { %2675 = vrot.lane.b32.xlu1 %v5000_v0, %s4563_s15 }
 0x5c6   : > { %2735 = vperm.xlu0 %4352, %v2732_v50  }
 0x627   : > { %v2518_v51 = vpop.permute.xlu1 %2517 }
 0x628   : > { %v2520_v52 = vpop.permute.xlu0 %2519 }
 0x629   : > { %v2523_v53 = vsel %vm5509_vm9, %v2518_v51, %v2520_v52 }
 0x62a   : > { %2530 = vmatprep.subr.bf16.mxu1 %v2523_v53  ;;  %v4181_v53 = vld [vmem:[%s5495_s4 + $0x4] sm:$0xf] }
 0x62b   : > { %v2516_v42 = vpop.permute.xlu1 %2515 }
 0x62c   : > { %v2522_v54 = vsel %vm5509_vm9, %v2516_v42, %v2518_v51  ;;  %v2620_v48 = vpop.permute.xlu0 %2619 }
 0x62d   : > { %2531 = vmatpush1.bf16.msra.mxu1 %v2522_v54 }
 0x62e   : > { %4547 = vmatprep.subr.msk.bf16.mxu1 %vm4545_vm11, %v4546_v56  ;;  %vm5523_vm11 = vcmask 1039360  }
 0x62f   : > { %v2622_v57 = vpop.permute.xlu1 %2621 }
 0x630   : > { %4175 = vmatmul.mubr.msk.bf16.vlgmr.msra.gmra.mrb[36].mxu1 %vm505_vm0, %v4174_v55  ;;  %v2618_v58 = vpop.permute.xlu0 %2617  ;;  %v2624_v59 = vsel %vm505_vm0, %v2620_v48, %v2622_v57 }
 0x631   : > { %4550 = vmatpush1.bf16.msk.msra.mxu1 %vm4548_vm15, %v4549_v60  ;;  %2606 = vmatprep.mubr.bf16.mxu1 %v4562_v4  ;;  %v2623_v2 = vsel %vm505_vm0, %v2618_v58, %v2620_v48  ;;  %vm5524_vm15 = vmmov %vm5523_vm11 }
 0x632   : > { %2630 = vmatprep.subr.bf16.mxu1 %v2624_v59 }
 0x633   : > { %v2678_v62 = vpop.permute.xlu1 %2677 }
 0x634   : > { %v2680_v63 = vpop.permute.xlu0 %2679 }
 0x635   : > { %v2683_v3 = vsel %vm481_vm3, %v2678_v62, %v2680_v63 }
 0x637   : > { %v2676_v5 = vpop.permute.xlu1 %2675 }
 0x638   : > { %4176 = vmatmul.mubr.msk.bf16.vlgmr.msra.gmra.mrb[40].mxu1 %vm505_vm0, %v2504_v61  ;;  %v2682_v7 = vsel %vm481_vm3, %v2676_v5, %v2678_v62 }
 0x639   : > { %2631 = vmatpush1.bf16.msra.mxu1 %v2623_v2  ;;  %2662 = vmatprep.mubr.bf16.mxu1 %v4562_v4 }
 0x63a   : > { %2689 = vmatprep.subr.bf16.mxu1 %v2683_v3 }
 0x640   : > { %4178 = vmatmul.mubr.msk.bf16.vlgmr.msra.gmra.mrb[44].mxu1 %vm505_vm0, %v4177_v6  ;;  %v4216_v6 = vld [vmem:[%s5495_s4 + $0x18] sm:$0xf] }
 0x641   : > { %2690 = vmatpush1.bf16.msra.mxu1 %v2682_v7  ;;  %2721 = vmatprep.mubr.bf16.mxu1 %v4562_v4 }
 0x645   : > { %v2736_v34 = vpop.permute.xlu0 %2735 }
 0x648   : > { %4180 = vmatmul.mubr.msk.bf16.vlgmr.msra.gmra.mrb[48].mxu1 %vm505_vm0, %v4179_v8 }
 0x649   : > { %2836 = vmatprep.mubr.bf16.mxu1 %v4562_v4 }
 0x703   : > { %v2564_v9 = vpop.f32.mrb[36].mxu1 }
 0x704   : > { %v2566_v10 = vpop.f32.mrb[37].mxu1 }
 0x705   : > { %v2568_v11 = vpop.f32.mrb[38].mxu1 }
 0x706   : > { %v2569_v12 = vpop.f32.mrb[39].mxu1 }
 0x70b   : > { %v2608_v13 = vpop.f32.mrb[40].mxu1 }
 0x70c   : > { %v2609_v16 = vadd.f32 %v2608_v13, %v2564_v9  ;;  %v2610_v17 = vpop.f32.mrb[41].mxu1 }
 0x70d   : > { %v2611_v18 = vadd.f32 %v2610_v17, %v2566_v10  ;;  %v2612_v19 = vpop.f32.mrb[42].mxu1 }
 0x70e   : > { %v2613_v22 = vpop.f32.mrb[43].mxu1  ;;  %v4226_v19 = vld [vmem:[%s5495_s4 + $0x20] sm:$0xf] }
 0x713   : > { %v2664_v23 = vpop.f32.mrb[44].mxu1 }
 0x714   : > { %v2671_v24 = vadd.f32 %v2664_v23, %v2609_v16  ;;  %v2666_v27 = vpop.f32.mrb[45].mxu1  ;;  %v2780_v16 = vld [vmem:[%s5495_s4] sm:$0xf] }
 0x715   : > { %v2672_v28 = vadd.f32 %v2666_v27, %v2611_v18  ;;  %v2668_v29 = vpop.f32.mrb[46].mxu1 }
 0x716   : > { %v2669_v30 = vpop.f32.mrb[47].mxu1 }
 0x71b   : > { %v2723_v31 = vpop.f32.mrb[48].mxu1 }
 0x71c   : > { %v2730_v32 = vadd.f32 %v2723_v31, %v2671_v24  ;;  %v2725_v33 = vpop.f32.mrb[49].mxu1 }
 0x71d   : > { %v2731_v35 = vadd.f32 %v2725_v33, %v2672_v28  ;;  %v2727_v36 = vpop.f32.mrb[50].mxu1 }
 0x71e   : > { %v2738_v37 = vadd.f32 %v2736_v34, %v2730_v32  ;;  %v2728_v38 = vpop.f32.mrb[51].mxu1 }
 0x71f   : > { %v2739_v39 = vadd.f32 %v2736_v34, %v2731_v35 }
 0x720   : > { %v5172_v40 = vpack.c.bf16 %v4966_v25, %v2738_v37  ;;  %v4469_v43 = vpack.i.bf16 %v4966_v25, %v2738_v37  ;;  %v3383_v25 = vld [vmem:[%s5500_s9] sm:$0xff] }
 0x721   : > { %v5175_v41 = vpack.c.bf16 %v4968_v26, %v2739_v39  ;;  %v4414_v14 = vpack.i.bf16 %v2739_v39, %v2738_v37  ;;  %v4459_v1 = vpack.i.bf16 %v4993_v45, %v2739_v39 }
 0x722   : > { %2793 = vrot.lane.b32.xlu1 %v5172_v40, %s4561_s27 }
 0x723   : > { %2795 = vrot.lane.b32.xlu0 %v5175_v41, %s4561_s27 }
 0x726   : > { %2791 = vrot.lane.b32.xlu1 %v5000_v0, %s4561_s27 }
 0x727   : > { %4415 = vrot.lane.b32.xlu0 %v4414_v14, %s4563_s15 }
 0x72a   : > { %4420 = vrot.lane.b32.xlu1 %v4419_v15, %s4563_s15 }
 0x72b   : > { %4425 = vrot.lane.b32.xlu0 %v4424_v44, %s4563_s15 }
 0x72e   : > { %4430 = vrot.lane.b32.xlu1 %v4414_v14, %s4564_s16 }
 0x72f   : > { %4435 = vrot.lane.b32.xlu0 %v4419_v15, %s4564_s16 }
 0x732   : > { %4440 = vrot.lane.b32.xlu1 %v4424_v44, %s4564_s16 }
 0x733   : > { %4445 = vrot.lane.b32.xlu0 %v4414_v14, %s4565_s17 }
 0x736   : > { %4450 = vrot.lane.b32.xlu1 %v4419_v15, %s4565_s17  ;;  %v4190_v15 = vld [vmem:[%s5495_s4 + $0x8] sm:$0xf] }
 0x737   : > { %4455 = vrot.lane.b32.xlu0 %v4424_v44, %s4565_s17 }
 0x73a   : > { %4460 = vrot.lane.b32.xlu1 %v4459_v1, %s4566_s18 }
 0x73b   : > { %4465 = vrot.lane.b32.xlu0 %v4464_v46, %s4566_s18 }
 0x73e   : > { %4470 = vrot.lane.b32.xlu1 %v4469_v43, %s4566_s18 }
 0x73f   : > { %4475 = vrot.lane.b32.xlu0 %v4459_v1, %s4567_s19 }
 0x742   : > { %4480 = vrot.lane.b32.xlu1 %v4464_v46, %s4567_s19 }
 0x743   : > { %4485 = vrot.lane.b32.xlu0 %v4469_v43, %s4567_s19 }
 0x746   : > { %4490 = vrot.lane.b32.xlu1 %v4459_v1, %s4568_s20 }
 0x747   : > { %3257 = vrot.lane.b32.xlu0 %v5000_v0, %s4569_s21 }
 0x74a   : > { %3255 = vrot.lane.b32.xlu1 %v5175_v41, %s4569_s21 }
 0x74b   : > { %4495 = vrot.lane.b32.xlu0 %v4464_v46, %s4568_s20 }
 0x74e   : > { %3253 = vrot.lane.b32.xlu1 %v5172_v40, %s4569_s21 }
 0x74f   : > { %4500 = vrot.lane.b32.xlu0 %v4469_v43, %s4568_s20 }
 0x752   : > { %3386 = vperm.xlu1 %4413, %v3383_v25  }
 0x753   : > { %3424 = vrot.lane.b32.xlu0 %v5000_v0, %s4561_s27 }
 0x794   : > { %v2794_v26 = vpop.permute.xlu1 %2793 }
 0x795   : > { %v2796_v47 = vpop.permute.xlu0 %2795 }
 0x796   : > { %v2798_v49 = vsel %vm505_vm0, %v2794_v26, %v2796_v47 }
 0x797   : > { %2804 = vmatprep.subr.bf16.mxu1 %v2798_v49 }
 0x798   : > { %v2792_v50 = vpop.permute.xlu1 %2791 }
 0x799   : > { %v2797_v51 = vsel %vm505_vm0, %v2792_v50, %v2794_v26  ;;  %v4416_v52 = vpop.permute.xlu0 %4415 }
 0x79a   : > { %2805 = vmatpush1.bf16.msra.mxu1 %v2797_v51  ;;  %v4418_v42 = vunpack.i.h.bf16 %v4416_v52  ;;  %v4417_v54 = vunpack.i.l.bf16 %v4416_v52 }
 0x79c   : > { %v4421_v48 = vpop.permute.xlu1 %4420  ;;  %v2769_v60 = vsel %vm481_vm3, %v4417_v54, %v4418_v42 }
 0x79d   : > { %v4423_v55 = vunpack.i.h.bf16 %v4421_v48  ;;  %v4422_v56 = vunpack.i.l.bf16 %v4421_v48  ;;  %v4426_v57 = vpop.permute.xlu0 %4425  ;;  %4182 = vmatmul.mubr.msk.bf16.vlgmr.msra.gmra.mrb[52].mxu1 %vm505_vm0, %v4181_v53 }
 0x79e   : > { %v4428_v58 = vunpack.i.h.bf16 %v4426_v57  ;;  %v4427_v59 = vunpack.i.l.bf16 %v4426_v57  ;;  %2880 = vmatprep.mubr.bf16.mxu1 %v4562_v4 }
 0x79f   : > { %v2771_v61 = vsel %vm481_vm3, %v4422_v56, %v4423_v55 }
 0x7a0   : > { %v4184_v63 = vpack.c.bf16 %v2771_v61, %v2769_v60  ;;  %v2768_v2 = vsel %vm481_vm3, %v4427_v59, %v4417_v54  ;;  %v2770_v3 = vsel %vm481_vm3, %v4428_v58, %v4422_v56  ;;  %v4431_v5 = vpop.permute.xlu1 %4430 }
 0x7a1   : > { %v4187_v7 = vpack.c.bf16 %v2770_v3, %v2768_v2  ;;  %v4433_v8 = vunpack.i.h.bf16 %v4431_v5  ;;  %v4432_v9 = vunpack.i.l.bf16 %v4431_v5  ;;  %v4436_v10 = vpop.permute.xlu0 %4435 }
 0x7a2   : > { %v4438_v11 = vunpack.i.h.bf16 %v4436_v10  ;;  %v4437_v12 = vunpack.i.l.bf16 %v4436_v10  ;;  %4185 = vmatprep.subr.msk.bf16.mxu1 %vm5230_vm12, %v4184_v63  ;;  %v4198_v63 = vld [vmem:[%s5495_s4 + $0xc] sm:$0xf]  ;;  %v4208_v10 = vld [vmem:[%s5495_s4 + $0x14] sm:$0xf] }
 0x7a3   : > { %v2902_v13 = vsel %vm622_vm7, %v4432_v9, %v4433_v8  ;;  %4188 = vmatpush1.bf16.msk.msra.mxu1 %vm5239_vm13, %v4187_v7 }
 0x7a4   : > { %v2904_v17 = vsel %vm622_vm7, %v4437_v12, %v4438_v11  ;;  %v4441_v18 = vpop.permute.xlu1 %4440 }
 0x7a5   : > { %v4192_v22 = vpack.c.bf16 %v2904_v17, %v2902_v13  ;;  %v4443_v23 = vunpack.i.h.bf16 %v4441_v18  ;;  %v4442_v24 = vunpack.i.l.bf16 %v4441_v18  ;;  %v4446_v27 = vpop.permute.xlu0 %4445 }
 0x7a6   : > { %4189 = vmatmul.mubr.msk.bf16.vlgmr.msra.gmra.mrb[56].mxu1 %vm505_vm0, %v2780_v16  ;;  %v4448_v30 = vunpack.i.h.bf16 %v4446_v27  ;;  %v4447_v31 = vunpack.i.l.bf16 %v4446_v27 }
 0x7a7   : > { %v2903_v28 = vsel %vm622_vm7, %v4443_v23, %v4437_v12  ;;  %v2901_v29 = vsel %vm622_vm7, %v4442_v24, %v4432_v9  ;;  %4193 = vmatprep.subr.msk.bf16.mxu1 %vm5255_vm10, %v4192_v22  ;;  %2952 = vmatprep.mubr.bf16.mxu1 %v4562_v4 }
 0x7a8   : > { %v4195_v33 = vpack.c.bf16 %v2903_v28, %v2901_v29  ;;  %v4451_v34 = vpop.permute.xlu1 %4450  ;;  %v2976_v14 = vsel %vm5509_vm9, %v4447_v31, %v4448_v30 }
 0x7a9   : > { %v4453_v35 = vunpack.i.h.bf16 %v4451_v34  ;;  %v4452_v36 = vunpack.i.l.bf16 %v4451_v34  ;;  %v4456_v37 = vpop.permute.xlu0 %4455 }
 0x7aa   : > { %v4458_v38 = vunpack.i.h.bf16 %v4456_v37  ;;  %v4457_v39 = vunpack.i.l.bf16 %v4456_v37  ;;  %4196 = vmatpush1.bf16.msk.msra.mxu1 %vm5267_vm14, %v4195_v33 }
 0x7ab   : > { %v2978_v44 = vsel %vm5509_vm9, %v4452_v36, %v4453_v35 }
 0x7ac   : > { %v4200_v1 = vpack.c.bf16 %v2978_v44, %v2976_v14  ;;  %v2975_v46 = vsel %vm5509_vm9, %v4457_v39, %v4447_v31  ;;  %v2977_v43 = vsel %vm5509_vm9, %v4458_v38, %v4452_v36  ;;  %v4461_v25 = vpop.permute.xlu1 %4460  ;;  %vm5525_vm9 = vmmov %vm5523_vm11  ;;  %v4224_v44 = vld [vmem:[%s5495_s4 + $0x1c] sm:$0xf] }
 0x7ad   : > { %v4203_v26 = vpack.c.bf16 %v2977_v43, %v2975_v46  ;;  %v4463_v47 = vunpack.i.h.bf16 %v4461_v25  ;;  %v4462_v49 = vunpack.i.l.bf16 %v4461_v25  ;;  %v4466_v50 = vpop.permute.xlu0 %4465  ;;  %vm5526_vm8 = vmmov %vm5525_vm9 }
 0x7ae   : > { %v4468_v51 = vunpack.i.h.bf16 %v4466_v50  ;;  %v4467_v52 = vunpack.i.l.bf16 %v4466_v50  ;;  %4197 = vmatmul.mubr.msk.bf16.vlgmr.msra.gmra.mrb[60].mxu1 %vm505_vm0, %v4190_v15  ;;  %4201 = vmatprep.subr.msk.bf16.mxu1 %vm5230_vm12, %v4200_v1 }
 0x7af   : > { %v3110_v53 = vsel %vm5523_vm11, %v4462_v49, %v4463_v47  ;;  %4204 = vmatpush1.bf16.msk.msra.mxu1 %vm5239_vm13, %v4203_v26  ;;  %3026 = vmatprep.mubr.bf16.mxu1 %v4562_v4 }
 0x7b0   : > { %v3112_v42 = vsel %vm5524_vm15, %v4467_v52, %v4468_v51  ;;  %v4471_v54 = vpop.permute.xlu1 %4470  ;;  %3042 = vmatprep.subr.bf16.mxu1 %v5175_v41 }
 0x7b1   : > { %v4210_v48 = vpack.c.bf16 %v3112_v42, %v3110_v53  ;;  %v4473_v55 = vunpack.i.h.bf16 %v4471_v54  ;;  %v4472_v56 = vunpack.i.l.bf16 %v4471_v54  ;;  %v4476_v57 = vpop.permute.xlu0 %4475 }
 0x7b2   : > { %v4478_v60 = vunpack.i.h.bf16 %v4476_v57  ;;  %v4477_v61 = vunpack.i.l.bf16 %v4476_v57 }
 0x7b3   : > { %v3111_v58 = vsel %vm5525_vm9, %v4473_v55, %v4467_v52  ;;  %v3109_v59 = vsel %vm5526_vm8, %v4472_v56, %v4462_v49  ;;  %4211 = vmatprep.subr.msk.bf16.mxu0 %vm5255_vm10, %v4210_v48  ;;  %vm5527_vm8 = vcmask 924672  }
 0x7b4   : > { %v4213_v2 = vpack.c.bf16 %v3111_v58, %v3109_v59  ;;  %v4481_v3 = vpop.permute.xlu1 %4480  ;;  %v3184_v11 = vsel %vm5527_vm8, %v4477_v61, %v4478_v60  ;;  %vm5528_vm9 = vmmov %vm5527_vm8 }
 0x7b5   : > { %v4483_v41 = vunpack.i.h.bf16 %v4481_v3  ;;  %v4482_v5 = vunpack.i.l.bf16 %v4481_v3  ;;  %v4486_v7 = vpop.permute.xlu0 %4485  ;;  %vm5529_vm11 = vmmov %vm5527_vm8 }
 0x7b6   : > { %v4488_v8 = vunpack.i.h.bf16 %v4486_v7  ;;  %v4487_v9 = vunpack.i.l.bf16 %v4486_v7  ;;  %4205 = vmatmul.mubr.msk.bf16.vlgmr.msra.gmra.mrb[64].mxu1 %vm505_vm0, %v4198_v63  ;;  %4214 = vmatpush1.bf16.msk.msra.mxu0 %vm5267_vm14, %v4213_v2  ;;  %vm5530_vm15 = vmmov %vm5527_vm8  ;;  %vm5531_vm8 = vcmask 916480  }
 0x7b7   : > { %v3186_v12 = vsel %vm5528_vm9, %v4482_v5, %v4483_v41  ;;  %3043 = vmatpush1.bf16.msra.mxu1 %v5172_v40  ;;  %3074 = vmatprep.mubr.bf16.mxu1 %v4562_v4  ;;  %v4206_v40 = vld [vmem:[%s5495_s4 + $0x10] sm:$0xf] }
 0x7b8   : > { %v4218_v13 = vpack.c.bf16 %v3186_v12, %v3184_v11  ;;  %v4491_v16 = vpop.permute.xlu1 %4490  ;;  %v3183_v18 = vsel %vm5529_vm11, %v4487_v9, %v4477_v61  ;;  %v3185_v22 = vsel %vm5530_vm15, %v4488_v8, %v4482_v5  ;;  %vm5534_vm11 = vmmov %vm5531_vm8 }
 0x7b9   : > { %v3258_v17 = vpop.permute.xlu0 %3257  ;;  %4215 = vmatmul.mubr.msk.bf16.vlgmr.msra.gmra.mrb[40].mxu0 %vm505_vm0, %v4208_v10  ;;  %v4493_v23 = vunpack.i.h.bf16 %v4491_v16  ;;  %v4492_v24 = vunpack.i.l.bf16 %v4491_v16  ;;  %v4221_v28 = vpack.c.bf16 %v3185_v22, %v3183_v18 }
 0x7ba   : > { %4219 = vmatprep.subr.msk.bf16.mxu1 %vm5230_vm12, %v4218_v13  ;;  %3298 = vmatprep.mubr.bf16.mxu0 %v4562_v4  ;;  %vm5532_vm12 = vcmask 908288  }
 0x7bb   : > { %v3322_v62 = vsel %vm5532_vm12, %v4492_v24, %v4493_v23  ;;  %vm5533_vm9 = vmmov %vm5532_vm12  ;;  %vm5543_vm12 = vcmask 924672  }
 0x7bc   : > { %v3256_v27 = vpop.permute.xlu1 %3255  ;;  %vm5536_vm15 = vmmov %vm5533_vm9 }
 0x7bd   : > { %v4496_v29 = vpop.permute.xlu0 %4495  ;;  %v3260_v30 = vsel %vm5531_vm8, %v3256_v27, %v3258_v17 }
 0x7be   : > { %v4498_v31 = vunpack.i.h.bf16 %v4496_v29  ;;  %v4497_v33 = vunpack.i.l.bf16 %v4496_v29  ;;  %4207 = vmatmul.mubr.msk.bf16.vlgmr.msra.gmra.mrb[68].mxu1 %vm505_vm0, %v4206_v40  ;;  %3266 = vmatprep.subr.bf16.mxu0 %v3260_v30 }
 0x7bf   : > { %4222 = vmatpush1.bf16.msk.msra.mxu1 %vm5239_vm13, %v4221_v28  ;;  %3234 = vmatprep.mubr.bf16.mxu1 %v4562_v4  ;;  %vm5535_vm13 = vmmov %vm5533_vm9 }
 0x7c0   : > { %v3324_v34 = vsel %vm5533_vm9, %v4497_v33, %v4498_v31  ;;  %v3254_v35 = vpop.permute.xlu1 %3253  ;;  %vm5544_vm9 = vmmov %vm5543_vm12 }
 0x7c1   : > { %v4228_v36 = vpack.c.bf16 %v3324_v34, %v3322_v62  ;;  %v3259_v37 = vsel %vm5534_vm11, %v3254_v35, %v3256_v27  ;;  %v4501_v38 = vpop.permute.xlu0 %4500  ;;  %vm5545_vm11 = vmmov %vm5535_vm13 }
 0x7c2   : > { %v4503_v39 = vunpack.i.h.bf16 %v4501_v38  ;;  %v4502_v14 = vunpack.i.l.bf16 %v4501_v38  ;;  %3267 = vmatpush1.bf16.msra.mxu0 %v3259_v37 }
 0x7c3   : > { %4229 = vmatprep.subr.msk.bf16.mxu1 %vm5255_vm10, %v4228_v36  ;;  %vm5540_vm10 = vcmask 1039360  }
 0x7c4   : > { %v3321_v15 = vsel %vm5535_vm13, %v4502_v14, %v4492_v24  ;;  %v3323_v1 = vsel %vm5536_vm15, %v4503_v39, %v4497_v33  ;;  %vm5546_vm13 = vmmov %vm5545_vm11 }
 0x7c5   : > { %v4231_v46 = vpack.c.bf16 %v3323_v1, %v3321_v15  ;;  %4225 = vmatmul.mubr.msk.bf16.vlgmr.msra.gmra.mrb[44].mxu0 %vm505_vm0, %v4224_v44 }
 0x7c6   : > { %4223 = vmatmul.mubr.msk.bf16.vlgmr.msra.gmra.mrb[72].mxu1 %vm505_vm0, %v4216_v6  ;;  %3473 = vmatprep.mubr.bf16.mxu0 %v4562_v4 }
 0x7c7   : > { %4232 = vmatpush1.bf16.msk.msra.mxu1 %vm5267_vm14, %v4231_v46  ;;  %3372 = vmatprep.mubr.bf16.mxu1 %v4562_v4  ;;  %vm5541_vm14 = vmmov %vm5540_vm10 }
 0x7ce   : > { %4233 = vmatmul.mubr.msk.bf16.vlgmr.msra.gmra.mrb[76].mxu1 %vm505_vm0, %v4226_v19 }
 0x7cf   : > { %3523 = vmatprep.mubr.bf16.mxu1 %v4562_v4 }
 0x7d1   : > { %v3387_v37 = vpop.permute.xlu1 %3386 }
 0x870   : > { %v2838_v43 = vpop.f32.mrb[52].mxu1 }
 0x871   : > { %v2840_v25 = vpop.f32.mrb[53].mxu1 }
 0x872   : > { %v2842_v26 = vpop.f32.mrb[54].mxu1 }
 0x873   : > { %v2843_v47 = vpop.f32.mrb[55].mxu1  ;;  %v4000_v26 = vld [vmem:[%s5501_s10] sm:$0xf] }
 0x874   : > { %v3425_v47 = vpop.permute.xlu0 %3424 }
 0x879   : > { %v2882_v49 = vpop.f32.mrb[56].mxu1 }
 0x87a   : > { %v2883_v32 = vadd.f32 %v2882_v49, %v2838_v43  ;;  %v2884_v50 = vpop.f32.mrb[57].mxu1 }
 0x87b   : > { %v2885_v51 = vadd.f32 %v2884_v50, %v2840_v25  ;;  %v2886_v52 = vpop.f32.mrb[58].mxu1 }
 0x87c   : > { %v2887_v53 = vpop.f32.mrb[59].mxu1 }
 0x87d   : > { %v4234_v53 = vld [vmem:[%s5496_s5 + $0x2] sm:$0x3] }
 0x881   : > { %v2954_v42 = vpop.f32.mrb[60].mxu1 }
 0x882   : > { %v2961_v54 = vadd.f32 %v2954_v42, %v2883_v32  ;;  %v2956_v48 = vpop.f32.mrb[61].mxu1 }
 0x883   : > { %v2962_v55 = vadd.f32 %v2956_v48, %v2885_v51  ;;  %v2958_v56 = vpop.f32.mrb[62].mxu1 }
 0x884   : > { %v2959_v57 = vpop.f32.mrb[63].mxu1 }
 0x889   : > { %v3028_v58 = vpop.f32.mrb[64].mxu1 }
 0x88a   : > { %v3035_v59 = vadd.f32 %v3028_v58, %v2961_v54  ;;  %v3030_v60 = vpop.f32.mrb[65].mxu1 }
 0x88b   : > { %v3036_v61 = vadd.f32 %v3030_v60, %v2962_v55  ;;  %v3032_v63 = vpop.f32.mrb[66].mxu1 }
 0x88c   : > { %v3033_v2 = vpop.f32.mrb[67].mxu1  ;;  %v3162_v3 = vpop.f32.mrb[40].mxu0 }
 0x88d   : > { %v3164_v41 = vpop.f32.mrb[41].mxu0 }
 0x88e   : > { %v3166_v5 = vpop.f32.mrb[42].mxu0 }
 0x88f   : > { %v3167_v7 = vpop.f32.mrb[43].mxu0 }
 0x891   : > { %v3076_v8 = vpop.f32.mrb[68].mxu1 }
 0x892   : > { %v3083_v9 = vadd.f32 %v3076_v8, %v3035_v59  ;;  %v3078_v10 = vpop.f32.mrb[69].mxu1 }
 0x893   : > { %v3084_v11 = vadd.f32 %v3078_v10, %v3036_v61  ;;  %v3080_v12 = vpop.f32.mrb[70].mxu1 }
 0x894   : > { %v3169_v13 = vadd.f32 %v3162_v3, %v3083_v9  ;;  %v3081_v16 = vpop.f32.mrb[71].mxu1  ;;  %v3413_v9 = vld [vmem:[%s5496_s5] sm:$0x3] }
 0x895   : > { %v3170_v17 = vadd.f32 %v3164_v41, %v3084_v11 }
 0x898   : > { %v3300_v18 = vpop.f32.mrb[44].mxu0 }
 0x899   : > { %v3236_v22 = vpop.f32.mrb[72].mxu1  ;;  %v3302_v40 = vpop.f32.mrb[45].mxu0 }
 0x89a   : > { %v3243_v23 = vadd.f32 %v3236_v22, %v3169_v13  ;;  %v3238_v24 = vpop.f32.mrb[73].mxu1  ;;  %v3304_v27 = vpop.f32.mrb[46].mxu0 }
 0x89b   : > { %v3244_v28 = vadd.f32 %v3238_v24, %v3170_v17  ;;  %v3240_v29 = vpop.f32.mrb[74].mxu1  ;;  %v3305_v30 = vpop.f32.mrb[47].mxu0  ;;  %v4239_v27 = vld [vmem:[%s5496_s5 + $0x4] sm:$0x3] }
 0x89c   : > { %v3307_v31 = vadd.f32 %v3300_v18, %v3243_v23  ;;  %v3241_v33 = vpop.f32.mrb[75].mxu1 }
 0x89d   : > { %v3308_v62 = vadd.f32 %v3302_v40, %v3244_v28 }
 0x8a1   : > { %v3374_v34 = vpop.f32.mrb[76].mxu1 }
 0x8a2   : > { %v3381_v35 = vadd.f32 %v3374_v34, %v3307_v31  ;;  %v3376_v36 = vpop.f32.mrb[77].mxu1 }
 0x8a3   : > { %v3382_v38 = vadd.f32 %v3376_v36, %v3308_v62  ;;  %v3378_v39 = vpop.f32.mrb[78].mxu1 }
 0x8a4   : > { %v3389_v14 = vadd.f32 %v3387_v37, %v3381_v35  ;;  %v3379_v44 = vpop.f32.mrb[79].mxu1 }
 0x8a5   : > { %v3390_v6 = vadd.f32 %v3387_v37, %v3382_v38 }
 0x8a6   : > { %v3391_v15 = vmax.f32 %v3389_v14, 0.0  ;;  %v4242_v14 = vld [vmem:[%s5496_s5 + $0x6] sm:$0x3] }
 0x8a7   : > { %v3392_v1 = vmax.f32 %v3390_v6, 0.0 }
 0x8a8   : > { %3393 = vst [vmem:[#allocation2 + $0x8] sm:$0xff] %v3391_v15  ;;  %v5347_v46 = vpack.c.bf16 %v3391_v15, %v3391_v15  ;;  %v4504_v25 = vpack.i.bf16 %v3391_v15, %v4993_v45 }
 0x8a9   : > { %3394 = vst [vmem:[#allocation2 + $0x10] sm:$0xff] %v3392_v1  ;;  %v5349_v19 = vpack.c.bf16 %v3392_v1, %v3392_v1  ;;  %v4519_v43 = vpack.i.bf16 %v3392_v1, %v3391_v15 }
 0x8aa   : > { %3426 = vrot.lane.b32.xlu1 %v5347_v46, %s4561_s27  ;;  %v3674_v37 = vsel %vm512_vm1, %v5347_v46, 0 }
 0x8ab   : > { %3428 = vrot.lane.b32.xlu0 %v5349_v19, %s4561_s27 }
 0x8ae   : > { %4505 = vrot.lane.b32.xlu1 %v4504_v25, %s4563_s15 }
 0x8af   : > { %3405 = vrot.lane.b32.xlu0 %v3392_v1, %s4563_s15 }
 0x8b2   : > { %4510 = vrot.lane.b32.xlu1 %v4504_v25, %s4564_s16 }
 0x8b3   : > { %3536 = vrot.lane.b32.xlu0 %v3392_v1, %s4564_s16 }
 0x8b6   : > { %4515 = vrot.lane.b32.xlu1 %v4504_v25, %s4565_s17 }
 0x8b7   : > { %3604 = vrot.lane.b32.xlu0 %v3392_v1, %s4565_s17 }
 0x8ba   : > { %4520 = vrot.lane.b32.xlu1 %v4519_v43, %s4566_s18 }
 0x8bb   : > { %3732 = vrot.lane.b32.xlu0 %v4993_v45, %s4566_s18 }
 0x8be   : > { %4525 = vrot.lane.b32.xlu1 %v4519_v43, %s4567_s19 }
 0x8bf   : > { %3800 = vrot.lane.b32.xlu0 %v4993_v45, %s4567_s19 }
 0x8c2   : > { %4530 = vrot.lane.b32.xlu1 %v4519_v43, %s4568_s20 }
 0x8c3   : > { %3936 = vrot.lane.b32.xlu0 %v4993_v45, %s4568_s20 }
 0x8c6   : > { %3872 = vrot.lane.b32.xlu1 %v5347_v46, %s4569_s21 }
 0x8c7   : > { %3874 = vrot.lane.b32.xlu0 %v5349_v19, %s4569_s21 }
 0x8ca   : > { %3876 = vrot.lane.b32.xlu1 %v5000_v0, %s4569_s21 }
 0x8cb   : > { %4003 = vperm.xlu0 %4352, %v4000_v26  }
 0x91c   : > { %v3427_v49 = vpop.permute.xlu1 %3426 }
 0x91d   : > { %v3430_v32 = vsel %vm505_vm0, %v3425_v47, %v3427_v49  ;;  %v3429_v50 = vpop.permute.xlu0 %3428 }
 0x91e   : > { %v3436_v45 = vsel %vm512_vm1, %v3430_v32, 0  ;;  %v3431_v51 = vsel %vm505_vm0, %v3427_v49, %v3429_v50  ;;  %vm5537_vm0 = vcmp.le.s32.totalorder %v4719_v21, 14  ;;  %v4245_v32 = vld [vmem:[%s5496_s5 + $0x8] sm:$0x3] }
 0x91f   : > { %4235 = vmatprep.subr.msk.bf16.mxu0 %vm512_vm1, %v3431_v51  ;;  %vm5542_vm8 = vmmov %vm5537_vm0 }
 0x920   : > { %3442 = vmatpush1.bf16.msra.mxu0 %v3436_v45  ;;  %v4506_v52 = vpop.permute.xlu1 %4505 }
 0x921   : > { %v4508_v42 = vunpack.i.h.bf16 %v4506_v52  ;;  %v4507_v0 = vunpack.i.l.bf16 %v4506_v52  ;;  %v3406_v54 = vpop.permute.xlu0 %3405 }
 0x923   : > { %v3407_v48 = vsel %vm481_vm3, %v4507_v0, %v4508_v42  ;;  %v3408_v55 = vsel %vm481_vm3, %v4508_v42, %v3406_v54  ;;  %4236 = vmatmul.mubr.msk.bf16.vlgmr.msra.gmra.mrb[48].mxu0 %vm508_vm2, %v4234_v53  ;;  %vm5538_vm3 = vcmask 7168  }
 0x924   : > { %v3412_v56 = vsel %vm467_vm4, %v3408_v55, 0.0  ;;  %v4511_v57 = vpop.permute.xlu1 %4510  ;;  %v3411_v58 = vsel %vm466_vm5, %v3407_v48, 0.0  ;;  %3589 = vmatprep.mubr.bf16.mxu0 %v4562_v4 }
 0x925   : > { %v3415_v59 = vpack.c.bf16 %v3412_v56, %v3412_v56  ;;  %v4513_v60 = vunpack.i.h.bf16 %v4511_v57  ;;  %v4512_v61 = vunpack.i.l.bf16 %v4511_v57  ;;  %v3537_v63 = vpop.permute.xlu0 %3536  ;;  %v3414_v2 = vpack.c.bf16 %v3411_v58, %v3411_v58  ;;  %v4248_v57 = vld [vmem:[%s5496_s5 + $0xa] sm:$0x3] }
 0x927   : > { %v3538_v3 = vsel %vm622_vm7, %v4512_v61, %v4513_v60  ;;  %v3539_v41 = vsel %vm622_vm7, %v4513_v60, %v3537_v63  ;;  %4237 = vmatprep.subr.msk.bf16.mxu1 %vm512_vm1, %v3415_v59  ;;  %v3486_v5 = vsel %vm512_vm1, %v3414_v2, 0  ;;  %vm5539_vm7 = vmmov %vm5538_vm3  ;;  %v4251_v2 = vld [vmem:[%s5496_s5 + $0xc] sm:$0x3] }
 0x928   : > { %v3543_v7 = vsel %vm611_vm6, %v3539_v41, 0.0  ;;  %v4516_v8 = vpop.permute.xlu1 %4515  ;;  %3492 = vmatpush1.bf16.msra.mxu1 %v3486_v5  ;;  %v3542_v10 = vsel %vm5537_vm0, %v3538_v3, 0.0  ;;  %v4254_v5 = vld [vmem:[%s5496_s5 + $0xe] sm:$0x3] }
 0x929   : > { %v3547_v11 = vpack.c.bf16 %v3543_v7, %v3543_v7  ;;  %v4518_v12 = vunpack.i.h.bf16 %v4516_v8  ;;  %v4517_v13 = vunpack.i.l.bf16 %v4516_v8  ;;  %v3605_v16 = vpop.permute.xlu0 %3604  ;;  %v3546_v17 = vpack.c.bf16 %v3542_v10, %v3542_v10  ;;  %v4257_v7 = vld [vmem:[%s5496_s5 + $0x10] sm:$0x3] }
 0x92b   : > { %v3606_v18 = vsel %vm5538_vm3, %v4517_v13, %v4518_v12  ;;  %v3607_v22 = vsel %vm5539_vm7, %v4518_v12, %v3605_v16  ;;  %4238 = vmatmul.mubr.msk.bf16.vlgmr.msra.gmra.mrb[80].mxu1 %vm508_vm2, %v3413_v9  ;;  %4240 = vmatprep.subr.msk.bf16.mxu0 %vm512_vm1, %v3547_v11  ;;  %v3552_v40 = vsel %vm512_vm1, %v3546_v17, 0 }
 0x92c   : > { %v3611_v23 = vsel %vm467_vm4, %v3607_v22, 0.0  ;;  %v4521_v24 = vpop.permute.xlu1 %4520  ;;  %3558 = vmatpush1.bf16.msra.mxu0 %v3552_v40  ;;  %v3610_v28 = vsel %vm466_vm5, %v3606_v18, 0.0  ;;  %3657 = vmatprep.mubr.bf16.mxu1 %v4562_v4 }
 0x92d   : > { %v3615_v29 = vpack.c.bf16 %v3611_v23, %v3611_v23  ;;  %v4523_v30 = vunpack.i.h.bf16 %v4521_v24  ;;  %v4522_v31 = vunpack.i.l.bf16 %v4521_v24  ;;  %v3733_v33 = vpop.permute.xlu0 %3732  ;;  %4246 = vmatprep.subr.msk.bf16.mxu0 %vm512_vm1, %v5349_v19  ;;  %v3614_v62 = vpack.c.bf16 %v3610_v28, %v3610_v28 }
 0x92f   : > { %v3734_v34 = vsel %vm5540_vm10, %v4522_v31, %v4523_v30  ;;  %v3735_v35 = vsel %vm5541_vm14, %v4523_v30, %v3733_v33  ;;  %4241 = vmatmul.mubr.msk.bf16.vlgmr.msra.gmra.mrb[52].mxu0 %vm508_vm2, %v4239_v27  ;;  %4243 = vmatprep.subr.msk.bf16.mxu1 %vm512_vm1, %v3615_v29  ;;  %v3620_v36 = vsel %vm512_vm1, %v3614_v62, 0 }
 0x930   : > { %v3739_v38 = vsel %vm611_vm6, %v3735_v35, 0.0  ;;  %v4526_v39 = vpop.permute.xlu1 %4525  ;;  %3626 = vmatpush1.bf16.msra.mxu1 %v3620_v36  ;;  %3680 = vmatpush1.bf16.msra.mxu0 %v3674_v37  ;;  %v3738_v44 = vsel %vm5542_vm8, %v3734_v34, 0.0 }
 0x931   : > { %v3743_v6 = vpack.c.bf16 %v3739_v38, %v3739_v38  ;;  %v4528_v15 = vunpack.i.h.bf16 %v4526_v39  ;;  %v4527_v1 = vunpack.i.l.bf16 %v4526_v39  ;;  %v3801_v19 = vpop.permute.xlu0 %3800  ;;  %v3742_v43 = vpack.c.bf16 %v3738_v44, %v3738_v44  ;;  %3711 = vmatprep.mubr.bf16.mxu0 %v4562_v4 }
 0x933   : > { %v3802_v46 = vsel %vm5543_vm12, %v4527_v1, %v4528_v15  ;;  %v3803_v25 = vsel %vm5544_vm9, %v4528_v15, %v3801_v19  ;;  %4244 = vmatmul.mubr.msk.bf16.vlgmr.msra.gmra.mrb[84].mxu1 %vm508_vm2, %v4242_v14  ;;  %4249 = vmatprep.subr.msk.bf16.mxu1 %vm512_vm1, %v3743_v6  ;;  %v3748_v26 = vsel %vm512_vm1, %v3742_v43, 0 }
 0x934   : > { %v3807_v47 = vsel %vm467_vm4, %v3803_v25, 0.0  ;;  %v4531_v49 = vpop.permute.xlu1 %4530  ;;  %3754 = vmatpush1.bf16.msra.mxu1 %v3748_v26  ;;  %v3806_v50 = vsel %vm466_vm5, %v3802_v46, 0.0  ;;  %3785 = vmatprep.mubr.bf16.mxu1 %v4562_v4  ;;  %vm5547_vm4 = vmmov %vm5537_vm0  ;;  %vm5548_vm5 = vcmask 916480  }
 0x935   : > { %v3811_v45 = vpack.c.bf16 %v3807_v47, %v3807_v47  ;;  %v4533_v51 = vunpack.i.h.bf16 %v4531_v49  ;;  %v4532_v52 = vunpack.i.l.bf16 %v4531_v49  ;;  %v3937_v53 = vpop.permute.xlu0 %3936  ;;  %v3810_v42 = vpack.c.bf16 %v3806_v50, %v3806_v50 }
 0x937   : > { %v3938_v0 = vsel %vm5545_vm11, %v4532_v52, %v4533_v51  ;;  %v3939_v54 = vsel %vm5546_vm13, %v4533_v51, %v3937_v53  ;;  %4247 = vmatmul.mubr.msk.bf16.vlgmr.msra.gmra.mrb[56].mxu0 %vm508_vm2, %v4245_v32  ;;  %4252 = vmatprep.subr.msk.bf16.mxu0 %vm512_vm1, %v3811_v45  ;;  %v3816_v48 = vsel %vm512_vm1, %v3810_v42, 0 }
 0x938   : > { %v3943_v55 = vsel %vm611_vm6, %v3939_v54, 0.0  ;;  %v3873_v56 = vpop.permute.xlu1 %3872  ;;  %3822 = vmatpush1.bf16.msra.mxu0 %v3816_v48  ;;  %3853 = vmatprep.mubr.bf16.mxu0 %v4562_v4  ;;  %v3942_v58 = vsel %vm5547_vm4, %v3938_v0, 0.0  ;;  %vm5549_vm6 = vmmov %vm5548_vm5 }
 0x939   : > { %v3947_v59 = vpack.c.bf16 %v3943_v55, %v3943_v55  ;;  %v3875_v60 = vpop.permute.xlu0 %3874  ;;  %v3946_v20 = vpack.c.bf16 %v3942_v58, %v3942_v58 }
 0x93a   : > { %v3878_v61 = vsel %vm5548_vm5, %v3873_v56, %v3875_v60 }
 0x93b   : > { %4250 = vmatmul.mubr.msk.bf16.vlgmr.msra.gmra.mrb[88].mxu1 %vm508_vm2, %v4248_v57  ;;  %4258 = vmatprep.subr.msk.bf16.mxu0 %vm512_vm1, %v3947_v59  ;;  %v3884_v21 = vsel %vm512_vm1, %v3878_v61, 0  ;;  %v3952_v41 = vsel %vm512_vm1, %v3946_v20, 0 }
 0x93c   : > { %v3877_v63 = vpop.permute.xlu1 %3876  ;;  %3921 = vmatprep.mubr.bf16.mxu1 %v4562_v4 }
 0x93d   : > { %v3879_v3 = vsel %vm5549_vm6, %v3875_v60, %v3877_v63 }
 0x93e   : > { %4255 = vmatprep.subr.msk.bf16.mxu1 %vm512_vm1, %v3879_v3 }
 0x93f   : > { %4253 = vmatmul.mubr.msk.bf16.vlgmr.msra.gmra.mrb[60].mxu0 %vm508_vm2, %v4251_v2  ;;  %3890 = vmatpush1.bf16.msra.mxu1 %v3884_v21 }
 0x940   : > { %3958 = vmatpush1.bf16.msra.mxu0 %v3952_v41  ;;  %3989 = vmatprep.mubr.bf16.mxu0 %v4562_v4 }
 0x943   : > { %4256 = vmatmul.mubr.msk.bf16.vlgmr.msra.gmra.mrb[92].mxu1 %vm508_vm2, %v4254_v5 }
 0x947   : > { %4259 = vmatmul.mubr.msk.bf16.vlgmr.msra.gmra.mrb[64].mxu0 %vm508_vm2, %v4257_v7 }
 0x94a   : > { %v4004_v55 = vpop.permute.xlu0 %4003 }
 0x9f6   : > { %v3475_v8 = vpop.f32.mrb[48].mxu0 }
 0x9f7   : > { %v3477_v9 = vpop.f32.mrb[49].mxu0 }
 0x9f8   : > { %v3479_v10 = vpop.f32.mrb[50].mxu0 }
 0x9f9   : > { %v3480_v11 = vpop.f32.mrb[51].mxu0 }
 0x9fe   : > { %v3525_v12 = vpop.f32.mrb[80].mxu1 }
 0x9ff   : > { %v3526_v13 = vadd.f32 %v3525_v12, %v3475_v8  ;;  %v3527_v16 = vpop.f32.mrb[81].mxu1 }
 0xa00   : > { %v3528_v17 = vadd.f32 %v3527_v16, %v3477_v9  ;;  %v3529_v18 = vpop.f32.mrb[82].mxu1 }
 0xa01   : > { %v3530_v22 = vpop.f32.mrb[83].mxu1 }
 0xa02   : > { %v3591_v40 = vpop.f32.mrb[52].mxu0 }
 0xa03   : > { %v3598_v4 = vadd.f32 %v3591_v40, %v3526_v13  ;;  %v3593_v23 = vpop.f32.mrb[53].mxu0 }
 0xa04   : > { %v3599_v24 = vadd.f32 %v3593_v23, %v3528_v17  ;;  %v3595_v27 = vpop.f32.mrb[54].mxu0 }
 0xa05   : > { %v3596_v28 = vpop.f32.mrb[55].mxu0 }
 0xa06   : > { %v3659_v29 = vpop.f32.mrb[84].mxu1 }
 0xa07   : > { %v3666_v30 = vadd.f32 %v3659_v29, %v3598_v4  ;;  %v3661_v31 = vpop.f32.mrb[85].mxu1 }
 0xa08   : > { %v3667_v33 = vadd.f32 %v3661_v31, %v3599_v24  ;;  %v3663_v62 = vpop.f32.mrb[86].mxu1 }
 0xa09   : > { %v3664_v34 = vpop.f32.mrb[87].mxu1 }
 0xa0a   : > { %v3713_v35 = vpop.f32.mrb[56].mxu0 }
 0xa0b   : > { %v3720_v36 = vadd.f32 %v3713_v35, %v3666_v30  ;;  %v3715_v37 = vpop.f32.mrb[57].mxu0 }
 0xa0c   : > { %v3721_v38 = vadd.f32 %v3715_v37, %v3667_v33  ;;  %v3717_v39 = vpop.f32.mrb[58].mxu0 }
 0xa0d   : > { %v3718_v14 = vpop.f32.mrb[59].mxu0 }
 0xa0e   : > { %v3787_v44 = vpop.f32.mrb[88].mxu1 }
 0xa0f   : > { %v3794_v6 = vadd.f32 %v3787_v44, %v3720_v36  ;;  %v3789_v15 = vpop.f32.mrb[89].mxu1 }
 0xa10   : > { %v3795_v1 = vadd.f32 %v3789_v15, %v3721_v38  ;;  %v3791_v19 = vpop.f32.mrb[90].mxu1 }
 0xa11   : > { %v3792_v43 = vpop.f32.mrb[91].mxu1 }
 0xa12   : > { %v3855_v46 = vpop.f32.mrb[60].mxu0 }
 0xa13   : > { %v3862_v25 = vadd.f32 %v3855_v46, %v3794_v6  ;;  %v3857_v26 = vpop.f32.mrb[61].mxu0 }
 0xa14   : > { %v3863_v47 = vadd.f32 %v3857_v26, %v3795_v1  ;;  %v3859_v49 = vpop.f32.mrb[62].mxu0 }
 0xa15   : > { %v3860_v32 = vpop.f32.mrb[63].mxu0 }
 0xa16   : > { %v3923_v50 = vpop.f32.mrb[92].mxu1 }
 0xa17   : > { %v3930_v45 = vadd.f32 %v3923_v50, %v3862_v25  ;;  %v3925_v51 = vpop.f32.mrb[93].mxu1 }
 0xa18   : > { %v3931_v52 = vadd.f32 %v3925_v51, %v3863_v47  ;;  %v3927_v53 = vpop.f32.mrb[94].mxu1 }
 0xa19   : > { %v3928_v42 = vpop.f32.mrb[95].mxu1 }
 0xa1a   : > { %v3991_v0 = vpop.f32.mrb[64].mxu0 }
 0xa1b   : > { %v3998_v54 = vadd.f32 %v3991_v0, %v3930_v45  ;;  %v3993_v48 = vpop.f32.mrb[65].mxu0 }
 0xa1c   : > { %v3999_v56 = vadd.f32 %v3993_v48, %v3931_v52  ;;  %v3995_v57 = vpop.f32.mrb[66].mxu0 }
 0xa1d   : > { %v4006_v58 = vadd.f32 %v4004_v55, %v3998_v54  ;;  %v3996_v59 = vpop.f32.mrb[67].mxu0 }
 0xa1e   : > { %v4007_v60 = vadd.f32 %v4004_v55, %v3999_v56 }
 0xa1f   : > { %v4008_v61 = vmax.f32 %v4006_v58, 0.0 }
 0xa20   : > { %v4009_v20 = vmax.f32 %v4007_v60, 0.0 }
 0xa22   : > { %v4012_v63 = vcombine.low %v4008_v61, %v4009_v20 }
 0xa24   : > { %4014 = vst [vmem:[%s440_s30] sm:$0xff] %v4012_v63 }
 0xa25 PF: > { %s23_s25 = sadd.s32 1, %s4557_s25  }
 0xa26   : > { %p20_p4 = scmp.ge.s32.totalorder %s23_s25, 4  }
 0xa28   :  { %22 = sbr.rel (!%p20_p4) target bundleno = 1 (0x1), region = 145 }

</bundles_post_ra>
